<compile_context>
chip_gen: v7x
topology: tpu7x:2x2x1
jax: 0.10.0
libtpu: 0.0.40
codegen_flags: <defaults>
</compile_context>

<pallas_src>
import jax
import jax.numpy as jnp
from jax.experimental import pallas as pl
from jax.experimental.pallas import tpu as pltpu


# Contractions with K <= SMALL_K are stored f32 and may run on the VPU
# (broadcast FMAs, v5e) or on the MXU with a cheap bf16 cast (v6e/v7x).
SMALL_K = 8


def _is_v5e():
    try:
        kind = jax.devices()[0].device_kind.lower()
    except Exception:
        return False
    return ("v5 lite" in kind) or ("v5e" in kind) or ("v5litepod" in kind)


# --------------------------------------------------------------------------
# Kernel factory
# --------------------------------------------------------------------------
def make_mlp_kernel(num_layers, skips, dim_xyz, dim_dir, num_neurons,
                    *, bf16_epilogue=True, small_k_on_mxu=True):
    has_dir = dim_dir is not None
    skips = set(skips)

    def mxu(a_bf16, w_ref):
        # bf16 operands, f32 accumulation on the MXU.
        return jnp.dot(a_bf16, w_ref[...], preferred_element_type=jnp.float32)

    def contract(x_f32, w_ref, k):
        # (tile_n, k) x (k, out) contraction for an f32 activation slice.
        if k > SMALL_K or small_k_on_mxu:
            return jnp.dot(x_f32.astype(jnp.bfloat16),
                           w_ref[...].astype(jnp.bfloat16),
                           preferred_element_type=jnp.float32)
        # v5e path: k broadcast FMAs on the VPU (avoids a near-empty MXU pass).
        w = w_ref[...]
        z = x_f32[:, 0:1] * w[0:1, :]
        for j in range(1, k):
            z = z + x_f32[:, j:j + 1] * w[j:j + 1, :]
        return z

    def epilogue(z_f32, b_ref, relu):
        # Returns a bf16 activation ready for the next MXU dot.
        if bf16_epilogue:                       # v6e/v7x: bf16 VALU
            z = z_f32.astype(jnp.bfloat16) + b_ref[...].astype(jnp.bfloat16)
            if relu:
                z = jnp.maximum(z, 0.0)
            return z
        z = z_f32 + b_ref[...]                  # v5e: f32 VPU epilogue
        if relu:
            z = jnp.maximum(z, 0.0)
        return z.astype(jnp.bfloat16)           # single cast after the ReLU

    def kernel(x_ref, *refs):
        out_ref = refs[-1]
        it = iter(refs[:-1])

        x_full = x_ref[...]                               # (tile_n, dim_xyz[+dim_dir]) f32
        x_xyz = x_full[:, :dim_xyz]
        x_dir = x_full[:, dim_xyz:dim_xyz + dim_dir] if has_dir else None

        h = x_xyz                                         # f32 only for layer 0
        h_is_f32 = True
        in_size = dim_xyz
        for i in range(num_layers):
            if i in skips:
                # cat((x_xyz, h)) @ W == x_xyz @ W[:dim_xyz] + h @ W[dim_xyz:]
                w_xyz_ref = next(it)
                w_h_ref = next(it)
                b_ref = next(it)
                z = contract(x_xyz, w_xyz_ref, dim_xyz)
                z = z + (contract(h, w_h_ref, in_size) if h_is_f32
                         else mxu(h, w_h_ref))
            else:
                w_ref = next(it)
                b_ref = next(it)
                z = contract(h, w_ref, in_size) if h_is_f32 else mxu(h, w_ref)
            h = epilogue(z, b_ref, relu=True)             # bf16 resident
            h_is_f32 = False
            in_size = num_neurons

        if not has_dir:
            w_ref = next(it)
            b_ref = next(it)
            out_ref[...] = (mxu(h, w_ref) + b_ref[...]).astype(out_ref.dtype)
            return

        # fc_alpha: elementwise mul (VPU) + lane reduction (XLU) — avoids the
        # 257-wide fused matmul that broke MXU N-tiling.  Stored immediately
        # so its (tile_n, 1) live range ends before fc_last / fc_rgb.
        w_a_ref = next(it)                                # (1, nn) f32 row
        b_a_ref = next(it)                                # (1, 1)  f32
        alpha = jnp.sum(h.astype(jnp.float32) * w_a_ref[...],
                        axis=-1, keepdims=True) + b_a_ref[...]
        out_ref[:, 3:4] = alpha.astype(out_ref.dtype)

        # fc_feat (no activation in the reference module).
        w_f_ref = next(it)
        b_f_ref = next(it)
        feat = epilogue(mxu(h, w_f_ref), b_f_ref, relu=False)

        # fc_last on cat((feat, x_dir)): MXU for feat part, small-K for dir part.
        w_lf_ref = next(it)
        w_ld_ref = next(it)
        b_l_ref = next(it)
        z_l = mxu(feat, w_lf_ref) + contract(x_dir, w_ld_ref, dim_dir)
        h2 = epilogue(z_l, b_l_ref, relu=True)

        # fc_rgb (f32 epilogue, stored f32).
        w_r_ref = next(it)
        b_r_ref = next(it)
        rgb = mxu(h2, w_r_ref) + b_r_ref[...]             # (tile_n, 3)
        out_ref[:, :3] = rgb.astype(out_ref.dtype)

    return kernel


# --------------------------------------------------------------------------
# Deterministic parameter init (nn.Linear-style U(-1/sqrt(fan_in), ...)),
# emitted directly in kernel consumption order:
#   MXU-bound weights -> bf16, small-K weights -> f32, biases -> f32,
#   fc_alpha stored as an f32 row (1, nn), skip / fc_last weights split.
# --------------------------------------------------------------------------
def init_params(key, num_layers, num_neurons, dim_xyz, dim_dir, skips):
    skips = set(skips)

    def linear(k, fan_in, fan_out):
        kw, kb = jax.random.split(k)
        bound = 1.0 / float(fan_in) ** 0.5
        w = jax.random.uniform(kw, (fan_in, fan_out), jnp.float32, -bound, bound)
        b = jax.random.uniform(kb, (1, fan_out), jnp.float32, -bound, bound)
        return w, b

    def stored(w):
        return w if w.shape[0] <= SMALL_K else w.astype(jnp.bfloat16)

    n_linears = num_layers + (4 if dim_dir is not None else 1)
    keys = list(jax.random.split(key, n_linears))
    params = []

    in_size = dim_xyz
    for i in range(num_layers):
        fan_in = in_size + (dim_xyz if i in skips else 0)
        w, b = linear(keys.pop(0), fan_in, num_neurons)
        if i in skips:
            params += [stored(w[:dim_xyz]), stored(w[dim_xyz:]), b]
        else:
            params += [stored(w), b]
        in_size = num_neurons

    if dim_dir is None:
        w, b = linear(keys.pop(0), num_neurons, 4)
        params += [stored(w), b]
    else:
        w_a, b_a = linear(keys.pop(0), num_neurons, 1)
        w_f, b_f = linear(keys.pop(0), num_neurons, num_neurons)
        w_l, b_l = linear(keys.pop(0), num_neurons + dim_dir, num_neurons // 2)
        w_r, b_r = linear(keys.pop(0), num_neurons // 2, 3)
        params += [jnp.transpose(w_a), b_a,                       # alpha row, f32
                   stored(w_f), b_f,
                   stored(w_l[:num_neurons]), stored(w_l[num_neurons:]), b_l,
                   stored(w_r), b_r]
    return params


def _flops_estimate(n, num_layers, num_neurons, dim_xyz, dim_dir, skips):
    skips = set(skips)
    flops = 0
    in_size = dim_xyz
    for i in range(num_layers):
        fan_in = in_size + (dim_xyz if i in skips else 0)
        flops += 2 * n * fan_in * num_neurons
        in_size = num_neurons
    if dim_dir is None:
        flops += 2 * n * num_neurons * 4
    else:
        flops += 2 * n * num_neurons                       # alpha reduce
        flops += 2 * n * num_neurons * num_neurons         # fc_feat
        flops += 2 * n * (num_neurons + dim_dir) * (num_neurons // 2)
        flops += 2 * n * (num_neurons // 2) * 3
    return flops


# --------------------------------------------------------------------------
# Wrapper around pallas_call
# --------------------------------------------------------------------------
def mlp_forward(x, params, *, num_layers, num_neurons, dim_xyz, dim_dir, skips,
                tile_n=2048, bf16_epilogue=True, small_k_on_mxu=True,
                even_grid_for_megacore=False,
                vmem_limit_bytes=48 * 1024 * 1024):
    # v7x tuning: keep tile_n <= 2048 (64 MiB VMEM/TC) and set
    # even_grid_for_megacore=True so both TensorCores get equal work.
    # v5e/v6e: tile_n up to 4096 is fine within the 48 MiB scoped limit.
    N, in_dim = x.shape
    out_dim = 4

    n_pad = int(pl.cdiv(N, tile_n)) * tile_n
    if even_grid_for_megacore and (n_pad // tile_n) % 2 == 1:
        n_pad += tile_n
    if n_pad != N:
        x = jnp.pad(x, ((0, n_pad - N), (0, 0)))

    kernel = make_mlp_kernel(num_layers, skips, dim_xyz, dim_dir, num_neurons,
                             bf16_epilogue=bf16_epilogue,
                             small_k_on_mxu=small_k_on_mxu)

    # Whole-array VMEM operands: constant across the grid, so no need for the
    # pipeline's double buffering (saves ~1.3 MiB of VMEM vs. blocked specs).
    param_specs = [pl.BlockSpec(memory_space=pltpu.MemorySpace.VMEM)
                   for _ in params]

    flops = _flops_estimate(n_pad, num_layers, num_neurons, dim_xyz, dim_dir, skips)
    bytes_accessed = (x.size * x.dtype.itemsize
                      + n_pad * out_dim * 4
                      + sum(int(p.size) * p.dtype.itemsize for p in params))

    out = pl.pallas_call(
        kernel,
        out_shape=jax.ShapeDtypeStruct((n_pad, out_dim), jnp.float32),
        grid_spec=pltpu.PrefetchScalarGridSpec(
            num_scalar_prefetch=0,
            grid=(n_pad // tile_n,),
            in_specs=[pl.BlockSpec((tile_n, in_dim), lambda i: (i, 0))]
                     + param_specs,
            out_specs=pl.BlockSpec((tile_n, out_dim), lambda i: (i, 0)),
        ),
        compiler_params=pltpu.CompilerParams(
            dimension_semantics=("parallel",),        # shard batch across TCs
            vmem_limit_bytes=vmem_limit_bytes,        # headroom < v7x 64 MiB
        ),
        cost_estimate=pl.CostEstimate(flops=flops, transcendentals=0,
                                      bytes_accessed=bytes_accessed),
    )(x, *params)

    return out[:N] if n_pad != N else out


# --------------------------------------------------------------------------
# Reference 1: mirrors the kernel's mixed-precision recipe exactly.
# --------------------------------------------------------------------------
def mlp_reference_mixed(x, params, *, num_layers, num_neurons, dim_xyz, dim_dir,
                        skips, bf16_epilogue=True, small_k_on_mxu=True):
    skips = set(skips)
    it = iter(params)

    def mxu(a_bf16, w_bf16):
        return jnp.dot(a_bf16, w_bf16, preferred_element_type=jnp.float32)

    def contract(a_f32, w, k):
        if k > SMALL_K or small_k_on_mxu:
            return jnp.dot(a_f32.astype(jnp.bfloat16), w.astype(jnp.bfloat16),
                           preferred_element_type=jnp.float32)
        return jnp.dot(a_f32, w.astype(jnp.float32),
                       preferred_element_type=jnp.float32,
                       precision=jax.lax.Precision.HIGHEST)

    def epilogue(z, b, relu):
        if bf16_epilogue:
            z = z.astype(jnp.bfloat16) + b.astype(jnp.bfloat16)
            if relu:
                z = jnp.maximum(z, 0.0)
            return z
        z = z + b
        if relu:
            z = jnp.maximum(z, 0.0)
        return z.astype(jnp.bfloat16)

    x_xyz = x[:, :dim_xyz]
    x_dir = None if dim_dir is None else x[:, dim_xyz:dim_xyz + dim_dir]
    h, h_is_f32, in_size = x_xyz, True, dim_xyz
    for i in range(num_layers):
        if i in skips:
            w_xyz, w_h, b = next(it), next(it), next(it)
            z = contract(x_xyz, w_xyz, dim_xyz)
            z = z + (contract(h, w_h, in_size) if h_is_f32 else mxu(h, w_h))
        else:
            w, b = next(it), next(it)
            z = contract(h, w, in_size) if h_is_f32 else mxu(h, w)
        h = epilogue(z, b, relu=True)
        h_is_f32, in_size = False, num_neurons

    if dim_dir is None:
        w, b = next(it), next(it)
        return mxu(h, w) + b

    w_a_row, b_a = next(it), next(it)
    alpha = jnp.sum(h.astype(jnp.float32) * w_a_row, axis=-1, keepdims=True) + b_a
    w_f, b_f = next(it), next(it)
    feat = epilogue(mxu(h, w_f), b_f, relu=False)
    w_lf, w_ld, b_l = next(it), next(it), next(it)
    h2 = epilogue(mxu(feat, w_lf) + contract(x_dir, w_ld, dim_dir), b_l, relu=True)
    w_r, b_r = next(it), next(it)
    rgb = mxu(h2, w_r) + b_r
    return jnp.concatenate([rgb, alpha], axis=-1)


# --------------------------------------------------------------------------
# Reference 2: independent full-f32 forward pass (precision=HIGHEST) using the
# same stored weights cast back to f32 — checked with a loose tolerance that
# bounds the accumulated bf16 compute error of the kernel.
# --------------------------------------------------------------------------
def mlp_reference_f32(x, params, *, num_layers, num_neurons, dim_xyz, dim_dir,
                      skips):
    skips = set(skips)
    it = iter(params)
    hi = jax.lax.Precision.HIGHEST

    def f32(a):
        return a.astype(jnp.float32)

    def dot(a, w):
        return jnp.dot(a, w, precision=hi)

    x_xyz = x[:, :dim_xyz]
    x_dir = None if dim_dir is None else x[:, dim_xyz:dim_xyz + dim_dir]
    h = x_xyz
    for i in range(num_layers):
        if i in skips:
            w_xyz, w_h, b = f32(next(it)), f32(next(it)), f32(next(it))
            z = dot(x_xyz, w_xyz) + dot(h, w_h) + b
        else:
            w, b = f32(next(it)), f32(next(it))
            z = dot(h, w) + b
        h = jax.nn.relu(z)
    if dim_dir is None:
        w, b = f32(next(it)), f32(next(it))
        return dot(h, w) + b
    w_a_row, b_a = f32(next(it)), f32(next(it))
    alpha = dot(h, w_a_row.T) + b_a
    w_f, b_f = f32(next(it)), f32(next(it))
    feat = dot(h, w_f) + b_f
    w_lf, w_ld, b_l = f32(next(it)), f32(next(it)), f32(next(it))
    h2 = jax.nn.relu(dot(feat, w_lf) + dot(x_dir, w_ld) + b_l)
    w_r, b_r = f32(next(it)), f32(next(it))
    rgb = dot(h2, w_r) + b_r
    return jnp.concatenate([rgb, alpha], axis=-1)


# --------------------------------------------------------------------------
if __name__ == "__main__":
    is_v5e = _is_v5e()
    bf16_ep = not is_v5e          # bf16 epilogue on v6e/v7x, f32 on v5e
    smallk_mxu = not is_v5e       # small-K on MXU (v6e/v7x) vs VPU (v5e)

    key = jax.random.PRNGKey(0)
    kx, kp, kx2, kp2 = jax.random.split(key, 4)

    # ---- Config A: canonical NeRF MLP (skip + view-dir branch, all heads) ----
    cfgA = dict(num_layers=8, num_neurons=256, dim_xyz=3, dim_dir=3, skips=[4])
    N = 500                      # exercises padding (500 -> 512) and grid=2
    x = jax.random.normal(kx, (N, cfgA["dim_xyz"] + cfgA["dim_dir"]), jnp.float32)
    params = init_params(kp, **cfgA)

    out = mlp_forward(x, params, **cfgA, tile_n=256,
                      bf16_epilogue=bf16_ep, small_k_on_mxu=smallk_mxu)
    out = jax.block_until_ready(out)
    assert out.shape == (N, 4), out.shape

    ref_mx = mlp_reference_mixed(x, params, **cfgA,
                                 bf16_epilogue=bf16_ep, small_k_on_mxu=smallk_mxu)
    ref_f32 = mlp_reference_f32(x, params, **cfgA)
    err_mx = float(jnp.max(jnp.abs(out - ref_mx)))
    err_f32 = float(jnp.max(jnp.abs(out - ref_f32)))
    assert jnp.allclose(out, ref_mx, atol=1e-2, rtol=1e-2), err_mx
    assert jnp.allclose(out, ref_f32, atol=3e-2, rtol=3e-2), err_f32

    # ---- Config B: no view-direction branch (fc_out head), with a skip ----
    cfgB = dict(num_layers=3, num_neurons=128, dim_xyz=3, dim_dir=None, skips=[1])
    N2 = 200
    x2 = jax.random.normal(kx2, (N2, cfgB["dim_xyz"]), jnp.float32)
    params2 = init_params(kp2, **cfgB)

    out2 = mlp_forward(x2, params2, **cfgB, tile_n=128,
                       bf16_epilogue=bf16_ep, small_k_on_mxu=smallk_mxu)
    out2 = jax.block_until_ready(out2)
    assert out2.shape == (N2, 4), out2.shape

    ref2_mx = mlp_reference_mixed(x2, params2, **cfgB,
                                  bf16_epilogue=bf16_ep, small_k_on_mxu=smallk_mxu)
    ref2_f32 = mlp_reference_f32(x2, params2, **cfgB)
    err2_mx = float(jnp.max(jnp.abs(out2 - ref2_mx)))
    err2_f32 = float(jnp.max(jnp.abs(out2 - ref2_f32)))
    assert jnp.allclose(out2, ref2_mx, atol=1e-2, rtol=1e-2), err2_mx
    assert jnp.allclose(out2, ref2_f32, atol=3e-2, rtol=3e-2), err2_f32

    print("KERNEL_OK")
</pallas_src>

<mosaic_0001>
module attributes {stable_mosaic.version = 11 : i64} {
  func.func @kernel(%arg0: i32, %arg1: memref<256x6xf32, #tpu.memory_space<vmem>>, %arg2: memref<3x256xf32, #tpu.memory_space<vmem>>, %arg3: memref<1x256xf32, #tpu.memory_space<vmem>>, %arg4: memref<256x256xbf16, #tpu.memory_space<vmem>>, %arg5: memref<1x256xf32, #tpu.memory_space<vmem>>, %arg6: memref<256x256xbf16, #tpu.memory_space<vmem>>, %arg7: memref<1x256xf32, #tpu.memory_space<vmem>>, %arg8: memref<256x256xbf16, #tpu.memory_space<vmem>>, %arg9: memref<1x256xf32, #tpu.memory_space<vmem>>, %arg10: memref<3x256xf32, #tpu.memory_space<vmem>>, %arg11: memref<256x256xbf16, #tpu.memory_space<vmem>>, %arg12: memref<1x256xf32, #tpu.memory_space<vmem>>, %arg13: memref<256x256xbf16, #tpu.memory_space<vmem>>, %arg14: memref<1x256xf32, #tpu.memory_space<vmem>>, %arg15: memref<256x256xbf16, #tpu.memory_space<vmem>>, %arg16: memref<1x256xf32, #tpu.memory_space<vmem>>, %arg17: memref<256x256xbf16, #tpu.memory_space<vmem>>, %arg18: memref<1x256xf32, #tpu.memory_space<vmem>>, %arg19: memref<1x256xf32, #tpu.memory_space<vmem>>, %arg20: memref<1x1xf32, #tpu.memory_space<vmem>>, %arg21: memref<256x256xbf16, #tpu.memory_space<vmem>>, %arg22: memref<1x256xf32, #tpu.memory_space<vmem>>, %arg23: memref<256x128xbf16, #tpu.memory_space<vmem>>, %arg24: memref<3x128xf32, #tpu.memory_space<vmem>>, %arg25: memref<1x128xf32, #tpu.memory_space<vmem>>, %arg26: memref<128x3xbf16, #tpu.memory_space<vmem>>, %arg27: memref<1x3xf32, #tpu.memory_space<vmem>>, %arg28: memref<256x4xf32, #tpu.memory_space<vmem>>) attributes {dimension_semantics = [#tpu.dimension_semantics<parallel>], iteration_bounds = array<i64: 2>, scalar_prefetch = 0 : i64, scratch_operands = 0 : i64, tpu.core_type = #tpu.core_type<tc>, window_params = [{transform_indices = @transform_0, window_bounds = array<i64: 256, 6>}, {pipeline_mode = #tpu.pipeline_mode<synchronous>, transform_indices = @transform_1, window_bounds = array<i64: 3, 256>}, {pipeline_mode = #tpu.pipeline_mode<synchronous>, transform_indices = @transform_2, window_bounds = array<i64: 1, 256>}, {pipeline_mode = #tpu.pipeline_mode<synchronous>, transform_indices = @transform_3, window_bounds = array<i64: 256, 256>}, {pipeline_mode = #tpu.pipeline_mode<synchronous>, transform_indices = @transform_4, window_bounds = array<i64: 1, 256>}, {pipeline_mode = #tpu.pipeline_mode<synchronous>, transform_indices = @transform_5, window_bounds = array<i64: 256, 256>}, {pipeline_mode = #tpu.pipeline_mode<synchronous>, transform_indices = @transform_6, window_bounds = array<i64: 1, 256>}, {pipeline_mode = #tpu.pipeline_mode<synchronous>, transform_indices = @transform_7, window_bounds = array<i64: 256, 256>}, {pipeline_mode = #tpu.pipeline_mode<synchronous>, transform_indices = @transform_8, window_bounds = array<i64: 1, 256>}, {pipeline_mode = #tpu.pipeline_mode<synchronous>, transform_indices = @transform_9, window_bounds = array<i64: 3, 256>}, {pipeline_mode = #tpu.pipeline_mode<synchronous>, transform_indices = @transform_10, window_bounds = array<i64: 256, 256>}, {pipeline_mode = #tpu.pipeline_mode<synchronous>, transform_indices = @transform_11, window_bounds = array<i64: 1, 256>}, {pipeline_mode = #tpu.pipeline_mode<synchronous>, transform_indices = @transform_12, window_bounds = array<i64: 256, 256>}, {pipeline_mode = #tpu.pipeline_mode<synchronous>, transform_indices = @transform_13, window_bounds = array<i64: 1, 256>}, {pipeline_mode = #tpu.pipeline_mode<synchronous>, transform_indices = @transform_14, window_bounds = array<i64: 256, 256>}, {pipeline_mode = #tpu.pipeline_mode<synchronous>, transform_indices = @transform_15, window_bounds = array<i64: 1, 256>}, {pipeline_mode = #tpu.pipeline_mode<synchronous>, transform_indices = @transform_16, window_bounds = array<i64: 256, 256>}, {pipeline_mode = #tpu.pipeline_mode<synchronous>, transform_indices = @transform_17, window_bounds = array<i64: 1, 256>}, {pipeline_mode = #tpu.pipeline_mode<synchronous>, transform_indices = @transform_18, window_bounds = array<i64: 1, 256>}, {pipeline_mode = #tpu.pipeline_mode<synchronous>, transform_indices = @transform_19, window_bounds = array<i64: 1, 1>}, {pipeline_mode = #tpu.pipeline_mode<synchronous>, transform_indices = @transform_20, window_bounds = array<i64: 256, 256>}, {pipeline_mode = #tpu.pipeline_mode<synchronous>, transform_indices = @transform_21, window_bounds = array<i64: 1, 256>}, {pipeline_mode = #tpu.pipeline_mode<synchronous>, transform_indices = @transform_22, window_bounds = array<i64: 256, 128>}, {pipeline_mode = #tpu.pipeline_mode<synchronous>, transform_indices = @transform_23, window_bounds = array<i64: 3, 128>}, {pipeline_mode = #tpu.pipeline_mode<synchronous>, transform_indices = @transform_24, window_bounds = array<i64: 1, 128>}, {pipeline_mode = #tpu.pipeline_mode<synchronous>, transform_indices = @transform_25, window_bounds = array<i64: 128, 3>}, {pipeline_mode = #tpu.pipeline_mode<synchronous>, transform_indices = @transform_26, window_bounds = array<i64: 1, 3>}, {transform_indices = @transform_27, window_bounds = array<i64: 256, 4>}]} {
    %c0 = arith.constant 0 : index
    %c0_0 = arith.constant 0 : index
    %0 = vector.load %arg1[%c0, %c0_0] : memref<256x6xf32, #tpu.memory_space<vmem>>, vector<256x6xf32>
    %1 = vector.extract_strided_slice %0 {offsets = [0, 0], sizes = [256, 3], strides = [1, 1]} : vector<256x6xf32> to vector<256x3xf32>
    %2 = vector.extract_strided_slice %0 {offsets = [0, 3], sizes = [256, 3], strides = [1, 1]} : vector<256x6xf32> to vector<256x3xf32>
    %3 = arith.truncf %1 : vector<256x3xf32> to vector<256x3xbf16>
    %c0_1 = arith.constant 0 : index
    %c0_2 = arith.constant 0 : index
    %4 = vector.load %arg2[%c0_1, %c0_2] : memref<3x256xf32, #tpu.memory_space<vmem>>, vector<3x256xf32>
    %5 = arith.truncf %4 : vector<3x256xf32> to vector<3x256xbf16>
    %cst = arith.constant dense<0.000000e+00> : vector<256x256xf32>
    %6 = tpu.matmul %3, %5, %cst {dimension_numbers = #tpu.dot_dimension_numbers<[1], [0], [0], [1], [0, 0, 1, 1], [], []>} : vector<256x3xbf16>, vector<3x256xbf16>, vector<256x256xf32> -> vector<256x256xf32>
    %7 = arith.truncf %6 : vector<256x256xf32> to vector<256x256xbf16>
    %c0_3 = arith.constant 0 : index
    %c0_4 = arith.constant 0 : index
    %8 = vector.load %arg3[%c0_3, %c0_4] : memref<1x256xf32, #tpu.memory_space<vmem>>, vector<1x256xf32>
    %9 = arith.truncf %8 : vector<1x256xf32> to vector<1x256xbf16>
    %10 = vector.broadcast %9 : vector<1x256xbf16> to vector<256x256xbf16>
    %11 = arith.addf %7, %10 : vector<256x256xbf16>
    %cst_5 = arith.constant 0.000000e+00 : bf16
    %12 = vector.broadcast %cst_5 : bf16 to vector<256x256xbf16>
    %13 = arith.maximumf %11, %12 : vector<256x256xbf16>
    %c0_6 = arith.constant 0 : index
    %c0_7 = arith.constant 0 : index
    %14 = vector.load %arg4[%c0_6, %c0_7] : memref<256x256xbf16, #tpu.memory_space<vmem>>, vector<256x256xbf16>
    %cst_8 = arith.constant dense<0.000000e+00> : vector<256x256xf32>
    %15 = tpu.matmul %13, %14, %cst_8 {dimension_numbers = #tpu.dot_dimension_numbers<[1], [0], [0], [1], [0, 0, 1, 1], [], []>} : vector<256x256xbf16>, vector<256x256xbf16>, vector<256x256xf32> -> vector<256x256xf32>
    %16 = arith.truncf %15 : vector<256x256xf32> to vector<256x256xbf16>
    %c0_9 = arith.constant 0 : index
    %c0_10 = arith.constant 0 : index
    %17 = vector.load %arg5[%c0_9, %c0_10] : memref<1x256xf32, #tpu.memory_space<vmem>>, vector<1x256xf32>
    %18 = arith.truncf %17 : vector<1x256xf32> to vector<1x256xbf16>
    %19 = vector.broadcast %18 : vector<1x256xbf16> to vector<256x256xbf16>
    %20 = arith.addf %16, %19 : vector<256x256xbf16>
    %cst_11 = arith.constant 0.000000e+00 : bf16
    %21 = vector.broadcast %cst_11 : bf16 to vector<256x256xbf16>
    %22 = arith.maximumf %20, %21 : vector<256x256xbf16>
    %c0_12 = arith.constant 0 : index
    %c0_13 = arith.constant 0 : index
    %23 = vector.load %arg6[%c0_12, %c0_13] : memref<256x256xbf16, #tpu.memory_space<vmem>>, vector<256x256xbf16>
    %cst_14 = arith.constant dense<0.000000e+00> : vector<256x256xf32>
    %24 = tpu.matmul %22, %23, %cst_14 {dimension_numbers = #tpu.dot_dimension_numbers<[1], [0], [0], [1], [0, 0, 1, 1], [], []>} : vector<256x256xbf16>, vector<256x256xbf16>, vector<256x256xf32> -> vector<256x256xf32>
    %25 = arith.truncf %24 : vector<256x256xf32> to vector<256x256xbf16>
    %c0_15 = arith.constant 0 : index
    %c0_16 = arith.constant 0 : index
    %26 = vector.load %arg7[%c0_15, %c0_16] : memref<1x256xf32, #tpu.memory_space<vmem>>, vector<1x256xf32>
    %27 = arith.truncf %26 : vector<1x256xf32> to vector<1x256xbf16>
    %28 = vector.broadcast %27 : vector<1x256xbf16> to vector<256x256xbf16>
    %29 = arith.addf %25, %28 : vector<256x256xbf16>
    %cst_17 = arith.constant 0.000000e+00 : bf16
    %30 = vector.broadcast %cst_17 : bf16 to vector<256x256xbf16>
    %31 = arith.maximumf %29, %30 : vector<256x256xbf16>
    %c0_18 = arith.constant 0 : index
    %c0_19 = arith.constant 0 : index
    %32 = vector.load %arg8[%c0_18, %c0_19] : memref<256x256xbf16, #tpu.memory_space<vmem>>, vector<256x256xbf16>
    %cst_20 = arith.constant dense<0.000000e+00> : vector<256x256xf32>
    %33 = tpu.matmul %31, %32, %cst_20 {dimension_numbers = #tpu.dot_dimension_numbers<[1], [0], [0], [1], [0, 0, 1, 1], [], []>} : vector<256x256xbf16>, vector<256x256xbf16>, vector<256x256xf32> -> vector<256x256xf32>
    %34 = arith.truncf %33 : vector<256x256xf32> to vector<256x256xbf16>
    %c0_21 = arith.constant 0 : index
    %c0_22 = arith.constant 0 : index
    %35 = vector.load %arg9[%c0_21, %c0_22] : memref<1x256xf32, #tpu.memory_space<vmem>>, vector<1x256xf32>
    %36 = arith.truncf %35 : vector<1x256xf32> to vector<1x256xbf16>
    %37 = vector.broadcast %36 : vector<1x256xbf16> to vector<256x256xbf16>
    %38 = arith.addf %34, %37 : vector<256x256xbf16>
    %cst_23 = arith.constant 0.000000e+00 : bf16
    %39 = vector.broadcast %cst_23 : bf16 to vector<256x256xbf16>
    %40 = arith.maximumf %38, %39 : vector<256x256xbf16>
    %41 = arith.truncf %1 : vector<256x3xf32> to vector<256x3xbf16>
    %c0_24 = arith.constant 0 : index
    %c0_25 = arith.constant 0 : index
    %42 = vector.load %arg10[%c0_24, %c0_25] : memref<3x256xf32, #tpu.memory_space<vmem>>, vector<3x256xf32>
    %43 = arith.truncf %42 : vector<3x256xf32> to vector<3x256xbf16>
    %cst_26 = arith.constant dense<0.000000e+00> : vector<256x256xf32>
    %44 = tpu.matmul %41, %43, %cst_26 {dimension_numbers = #tpu.dot_dimension_numbers<[1], [0], [0], [1], [0, 0, 1, 1], [], []>} : vector<256x3xbf16>, vector<3x256xbf16>, vector<256x256xf32> -> vector<256x256xf32>
    %c0_27 = arith.constant 0 : index
    %c0_28 = arith.constant 0 : index
    %45 = vector.load %arg11[%c0_27, %c0_28] : memref<256x256xbf16, #tpu.memory_space<vmem>>, vector<256x256xbf16>
    %cst_29 = arith.constant dense<0.000000e+00> : vector<256x256xf32>
    %46 = tpu.matmul %40, %45, %cst_29 {dimension_numbers = #tpu.dot_dimension_numbers<[1], [0], [0], [1], [0, 0, 1, 1], [], []>} : vector<256x256xbf16>, vector<256x256xbf16>, vector<256x256xf32> -> vector<256x256xf32>
    %47 = arith.addf %44, %46 : vector<256x256xf32>
    %48 = arith.truncf %47 : vector<256x256xf32> to vector<256x256xbf16>
    %c0_30 = arith.constant 0 : index
    %c0_31 = arith.constant 0 : index
    %49 = vector.load %arg12[%c0_30, %c0_31] : memref<1x256xf32, #tpu.memory_space<vmem>>, vector<1x256xf32>
    %50 = arith.truncf %49 : vector<1x256xf32> to vector<1x256xbf16>
    %51 = vector.broadcast %50 : vector<1x256xbf16> to vector<256x256xbf16>
    %52 = arith.addf %48, %51 : vector<256x256xbf16>
    %cst_32 = arith.constant 0.000000e+00 : bf16
    %53 = vector.broadcast %cst_32 : bf16 to vector<256x256xbf16>
    %54 = arith.maximumf %52, %53 : vector<256x256xbf16>
    %c0_33 = arith.constant 0 : index
    %c0_34 = arith.constant 0 : index
    %55 = vector.load %arg13[%c0_33, %c0_34] : memref<256x256xbf16, #tpu.memory_space<vmem>>, vector<256x256xbf16>
    %cst_35 = arith.constant dense<0.000000e+00> : vector<256x256xf32>
    %56 = tpu.matmul %54, %55, %cst_35 {dimension_numbers = #tpu.dot_dimension_numbers<[1], [0], [0], [1], [0, 0, 1, 1], [], []>} : vector<256x256xbf16>, vector<256x256xbf16>, vector<256x256xf32> -> vector<256x256xf32>
    %57 = arith.truncf %56 : vector<256x256xf32> to vector<256x256xbf16>
    %c0_36 = arith.constant 0 : index
    %c0_37 = arith.constant 0 : index
    %58 = vector.load %arg14[%c0_36, %c0_37] : memref<1x256xf32, #tpu.memory_space<vmem>>, vector<1x256xf32>
    %59 = arith.truncf %58 : vector<1x256xf32> to vector<1x256xbf16>
    %60 = vector.broadcast %59 : vector<1x256xbf16> to vector<256x256xbf16>
    %61 = arith.addf %57, %60 : vector<256x256xbf16>
    %cst_38 = arith.constant 0.000000e+00 : bf16
    %62 = vector.broadcast %cst_38 : bf16 to vector<256x256xbf16>
    %63 = arith.maximumf %61, %62 : vector<256x256xbf16>
    %c0_39 = arith.constant 0 : index
    %c0_40 = arith.constant 0 : index
    %64 = vector.load %arg15[%c0_39, %c0_40] : memref<256x256xbf16, #tpu.memory_space<vmem>>, vector<256x256xbf16>
    %cst_41 = arith.constant dense<0.000000e+00> : vector<256x256xf32>
    %65 = tpu.matmul %63, %64, %cst_41 {dimension_numbers = #tpu.dot_dimension_numbers<[1], [0], [0], [1], [0, 0, 1, 1], [], []>} : vector<256x256xbf16>, vector<256x256xbf16>, vector<256x256xf32> -> vector<256x256xf32>
    %66 = arith.truncf %65 : vector<256x256xf32> to vector<256x256xbf16>
    %c0_42 = arith.constant 0 : index
    %c0_43 = arith.constant 0 : index
    %67 = vector.load %arg16[%c0_42, %c0_43] : memref<1x256xf32, #tpu.memory_space<vmem>>, vector<1x256xf32>
    %68 = arith.truncf %67 : vector<1x256xf32> to vector<1x256xbf16>
    %69 = vector.broadcast %68 : vector<1x256xbf16> to vector<256x256xbf16>
    %70 = arith.addf %66, %69 : vector<256x256xbf16>
    %cst_44 = arith.constant 0.000000e+00 : bf16
    %71 = vector.broadcast %cst_44 : bf16 to vector<256x256xbf16>
    %72 = arith.maximumf %70, %71 : vector<256x256xbf16>
    %c0_45 = arith.constant 0 : index
    %c0_46 = arith.constant 0 : index
    %73 = vector.load %arg17[%c0_45, %c0_46] : memref<256x256xbf16, #tpu.memory_space<vmem>>, vector<256x256xbf16>
    %cst_47 = arith.constant dense<0.000000e+00> : vector<256x256xf32>
    %74 = tpu.matmul %72, %73, %cst_47 {dimension_numbers = #tpu.dot_dimension_numbers<[1], [0], [0], [1], [0, 0, 1, 1], [], []>} : vector<256x256xbf16>, vector<256x256xbf16>, vector<256x256xf32> -> vector<256x256xf32>
    %75 = arith.truncf %74 : vector<256x256xf32> to vector<256x256xbf16>
    %c0_48 = arith.constant 0 : index
    %c0_49 = arith.constant 0 : index
    %76 = vector.load %arg18[%c0_48, %c0_49] : memref<1x256xf32, #tpu.memory_space<vmem>>, vector<1x256xf32>
    %77 = arith.truncf %76 : vector<1x256xf32> to vector<1x256xbf16>
    %78 = vector.broadcast %77 : vector<1x256xbf16> to vector<256x256xbf16>
    %79 = arith.addf %75, %78 : vector<256x256xbf16>
    %cst_50 = arith.constant 0.000000e+00 : bf16
    %80 = vector.broadcast %cst_50 : bf16 to vector<256x256xbf16>
    %81 = arith.maximumf %79, %80 : vector<256x256xbf16>
    %82 = arith.extf %81 : vector<256x256xbf16> to vector<256x256xf32>
    %c0_51 = arith.constant 0 : index
    %c0_52 = arith.constant 0 : index
    %83 = vector.load %arg19[%c0_51, %c0_52] : memref<1x256xf32, #tpu.memory_space<vmem>>, vector<1x256xf32>
    %84 = vector.broadcast %83 : vector<1x256xf32> to vector<256x256xf32>
    %85 = arith.mulf %82, %84 : vector<256x256xf32>
    %cst_53 = arith.constant dense<0.000000e+00> : vector<256xf32>
    %86 = vector.multi_reduction <add>, %85, %cst_53 [1] : vector<256x256xf32> to vector<256xf32>
    %87 = vector.shape_cast %86 : vector<256xf32> to vector<256x1xf32>
    %c0_54 = arith.constant 0 : index
    %c0_55 = arith.constant 0 : index
    %88 = vector.load %arg20[%c0_54, %c0_55] : memref<1x1xf32, #tpu.memory_space<vmem>>, vector<1x1xf32>
    %89 = vector.broadcast %88 : vector<1x1xf32> to vector<256x1xf32>
    %90 = arith.addf %87, %89 : vector<256x1xf32>
    %c0_56 = arith.constant 0 : index
    %c3 = arith.constant 3 : index
    %91 = vector.load %arg28[%c0_56, %c3] : memref<256x4xf32, #tpu.memory_space<vmem>>, vector<256x1xf32>
    tpu.vector_store %arg28[%c0_56, %c3], %90 {strides = array<i32>} : memref<256x4xf32, #tpu.memory_space<vmem>>, vector<256x1xf32>,
    %c0_57 = arith.constant 0 : index
    %c0_58 = arith.constant 0 : index
    %92 = vector.load %arg21[%c0_57, %c0_58] : memref<256x256xbf16, #tpu.memory_space<vmem>>, vector<256x256xbf16>
    %cst_59 = arith.constant dense<0.000000e+00> : vector<256x256xf32>
    %93 = tpu.matmul %81, %92, %cst_59 {dimension_numbers = #tpu.dot_dimension_numbers<[1], [0], [0], [1], [0, 0, 1, 1], [], []>} : vector<256x256xbf16>, vector<256x256xbf16>, vector<256x256xf32> -> vector<256x256xf32>
    %94 = arith.truncf %93 : vector<256x256xf32> to vector<256x256xbf16>
    %c0_60 = arith.constant 0 : index
    %c0_61 = arith.constant 0 : index
    %95 = vector.load %arg22[%c0_60, %c0_61] : memref<1x256xf32, #tpu.memory_space<vmem>>, vector<1x256xf32>
    %96 = arith.truncf %95 : vector<1x256xf32> to vector<1x256xbf16>
    %97 = vector.broadcast %96 : vector<1x256xbf16> to vector<256x256xbf16>
    %98 = arith.addf %94, %97 : vector<256x256xbf16>
    %c0_62 = arith.constant 0 : index
    %c0_63 = arith.constant 0 : index
    %99 = vector.load %arg23[%c0_62, %c0_63] : memref<256x128xbf16, #tpu.memory_space<vmem>>, vector<256x128xbf16>
    %cst_64 = arith.constant dense<0.000000e+00> : vector<256x128xf32>
    %100 = tpu.matmul %98, %99, %cst_64 {dimension_numbers = #tpu.dot_dimension_numbers<[1], [0], [0], [1], [0, 0, 1, 1], [], []>} : vector<256x256xbf16>, vector<256x128xbf16>, vector<256x128xf32> -> vector<256x128xf32>
    %101 = arith.truncf %2 : vector<256x3xf32> to vector<256x3xbf16>
    %c0_65 = arith.constant 0 : index
    %c0_66 = arith.constant 0 : index
    %102 = vector.load %arg24[%c0_65, %c0_66] : memref<3x128xf32, #tpu.memory_space<vmem>>, vector<3x128xf32>
    %103 = arith.truncf %102 : vector<3x128xf32> to vector<3x128xbf16>
    %cst_67 = arith.constant dense<0.000000e+00> : vector<256x128xf32>
    %104 = tpu.matmul %101, %103, %cst_67 {dimension_numbers = #tpu.dot_dimension_numbers<[1], [0], [0], [1], [0, 0, 1, 1], [], []>} : vector<256x3xbf16>, vector<3x128xbf16>, vector<256x128xf32> -> vector<256x128xf32>
    %105 = arith.addf %100, %104 : vector<256x128xf32>
    %106 = arith.truncf %105 : vector<256x128xf32> to vector<256x128xbf16>
    %c0_68 = arith.constant 0 : index
    %c0_69 = arith.constant 0 : index
    %107 = vector.load %arg25[%c0_68, %c0_69] : memref<1x128xf32, #tpu.memory_space<vmem>>, vector<1x128xf32>
    %108 = arith.truncf %107 : vector<1x128xf32> to vector<1x128xbf16>
    %109 = vector.broadcast %108 : vector<1x128xbf16> to vector<256x128xbf16>
    %110 = arith.addf %106, %109 : vector<256x128xbf16>
    %cst_70 = arith.constant 0.000000e+00 : bf16
    %111 = vector.broadcast %cst_70 : bf16 to vector<256x128xbf16>
    %112 = arith.maximumf %110, %111 : vector<256x128xbf16>
    %c0_71 = arith.constant 0 : index
    %c0_72 = arith.constant 0 : index
    %113 = vector.load %arg26[%c0_71, %c0_72] : memref<128x3xbf16, #tpu.memory_space<vmem>>, vector<128x3xbf16>
    %cst_73 = arith.constant dense<0.000000e+00> : vector<256x3xf32>
    %114 = tpu.matmul %112, %113, %cst_73 {dimension_numbers = #tpu.dot_dimension_numbers<[1], [0], [0], [1], [0, 0, 1, 1], [], []>} : vector<256x128xbf16>, vector<128x3xbf16>, vector<256x3xf32> -> vector<256x3xf32>
    %c0_74 = arith.constant 0 : index
    %c0_75 = arith.constant 0 : index
    %115 = vector.load %arg27[%c0_74, %c0_75] : memref<1x3xf32, #tpu.memory_space<vmem>>, vector<1x3xf32>
    %116 = vector.broadcast %115 : vector<1x3xf32> to vector<256x3xf32>
    %117 = arith.addf %114, %116 : vector<256x3xf32>
    %c0_76 = arith.constant 0 : index
    %c0_77 = arith.constant 0 : index
    %118 = vector.load %arg28[%c0_76, %c0_77] : memref<256x4xf32, #tpu.memory_space<vmem>>, vector<256x3xf32>
    tpu.vector_store %arg28[%c0_76, %c0_77], %117 {strides = array<i32>} : memref<256x4xf32, #tpu.memory_space<vmem>>, vector<256x3xf32>,
    return
  }
  func.func @transform_0(%arg0: i32) -> (i32, i32) {
    %c0_i32 = arith.constant 0 : i32
    %c0_i32_0 = arith.constant 0 : i32
    return %arg0, %c0_i32 : i32, i32
  }
  func.func @transform_1(%arg0: i32) -> (i32, i32) {
    %c0_i32 = arith.constant 0 : i32
    %c0_i32_0 = arith.constant 0 : i32
    %c0_i32_1 = arith.constant 0 : i32
    return %c0_i32, %c0_i32_0 : i32, i32
  }
  func.func @transform_2(%arg0: i32) -> (i32, i32) {
    %c0_i32 = arith.constant 0 : i32
    %c0_i32_0 = arith.constant 0 : i32
    %c0_i32_1 = arith.constant 0 : i32
    return %c0_i32, %c0_i32_0 : i32, i32
  }
  func.func @transform_3(%arg0: i32) -> (i32, i32) {
    %c0_i32 = arith.constant 0 : i32
    %c0_i32_0 = arith.constant 0 : i32
    %c0_i32_1 = arith.constant 0 : i32
    return %c0_i32, %c0_i32_0 : i32, i32
  }
  func.func @transform_4(%arg0: i32) -> (i32, i32) {
    %c0_i32 = arith.constant 0 : i32
    %c0_i32_0 = arith.constant 0 : i32
    %c0_i32_1 = arith.constant 0 : i32
    return %c0_i32, %c0_i32_0 : i32, i32
  }
  func.func @transform_5(%arg0: i32) -> (i32, i32) {
    %c0_i32 = arith.constant 0 : i32
    %c0_i32_0 = arith.constant 0 : i32
    %c0_i32_1 = arith.constant 0 : i32
    return %c0_i32, %c0_i32_0 : i32, i32
  }
  func.func @transform_6(%arg0: i32) -> (i32, i32) {
    %c0_i32 = arith.constant 0 : i32
    %c0_i32_0 = arith.constant 0 : i32
    %c0_i32_1 = arith.constant 0 : i32
    return %c0_i32, %c0_i32_0 : i32, i32
  }
  func.func @transform_7(%arg0: i32) -> (i32, i32) {
    %c0_i32 = arith.constant 0 : i32
    %c0_i32_0 = arith.constant 0 : i32
    %c0_i32_1 = arith.constant 0 : i32
    return %c0_i32, %c0_i32_0 : i32, i32
  }
  func.func @transform_8(%arg0: i32) -> (i32, i32) {
    %c0_i32 = arith.constant 0 : i32
    %c0_i32_0 = arith.constant 0 : i32
    %c0_i32_1 = arith.constant 0 : i32
    return %c0_i32, %c0_i32_0 : i32, i32
  }
  func.func @transform_9(%arg0: i32) -> (i32, i32) {
    %c0_i32 = arith.constant 0 : i32
    %c0_i32_0 = arith.constant 0 : i32
    %c0_i32_1 = arith.constant 0 : i32
    return %c0_i32, %c0_i32_0 : i32, i32
  }
  func.func @transform_10(%arg0: i32) -> (i32, i32) {
    %c0_i32 = arith.constant 0 : i32
    %c0_i32_0 = arith.constant 0 : i32
    %c0_i32_1 = arith.constant 0 : i32
    return %c0_i32, %c0_i32_0 : i32, i32
  }
  func.func @transform_11(%arg0: i32) -> (i32, i32) {
    %c0_i32 = arith.constant 0 : i32
    %c0_i32_0 = arith.constant 0 : i32
    %c0_i32_1 = arith.constant 0 : i32
    return %c0_i32, %c0_i32_0 : i32, i32
  }
  func.func @transform_12(%arg0: i32) -> (i32, i32) {
    %c0_i32 = arith.constant 0 : i32
    %c0_i32_0 = arith.constant 0 : i32
    %c0_i32_1 = arith.constant 0 : i32
    return %c0_i32, %c0_i32_0 : i32, i32
  }
  func.func @transform_13(%arg0: i32) -> (i32, i32) {
    %c0_i32 = arith.constant 0 : i32
    %c0_i32_0 = arith.constant 0 : i32
    %c0_i32_1 = arith.constant 0 : i32
    return %c0_i32, %c0_i32_0 : i32, i32
  }
  func.func @transform_14(%arg0: i32) -> (i32, i32) {
    %c0_i32 = arith.constant 0 : i32
    %c0_i32_0 = arith.constant 0 : i32
    %c0_i32_1 = arith.constant 0 : i32
    return %c0_i32, %c0_i32_0 : i32, i32
  }
  func.func @transform_15(%arg0: i32) -> (i32, i32) {
    %c0_i32 = arith.constant 0 : i32
    %c0_i32_0 = arith.constant 0 : i32
    %c0_i32_1 = arith.constant 0 : i32
    return %c0_i32, %c0_i32_0 : i32, i32
  }
  func.func @transform_16(%arg0: i32) -> (i32, i32) {
    %c0_i32 = arith.constant 0 : i32
    %c0_i32_0 = arith.constant 0 : i32
    %c0_i32_1 = arith.constant 0 : i32
    return %c0_i32, %c0_i32_0 : i32, i32
  }
  func.func @transform_17(%arg0: i32) -> (i32, i32) {
    %c0_i32 = arith.constant 0 : i32
    %c0_i32_0 = arith.constant 0 : i32
    %c0_i32_1 = arith.constant 0 : i32
    return %c0_i32, %c0_i32_0 : i32, i32
  }
  func.func @transform_18(%arg0: i32) -> (i32, i32) {
    %c0_i32 = arith.constant 0 : i32
    %c0_i32_0 = arith.constant 0 : i32
    %c0_i32_1 = arith.constant 0 : i32
    return %c0_i32, %c0_i32_0 : i32, i32
  }
  func.func @transform_19(%arg0: i32) -> (i32, i32) {
    %c0_i32 = arith.constant 0 : i32
    %c0_i32_0 = arith.constant 0 : i32
    %c0_i32_1 = arith.constant 0 : i32
    return %c0_i32, %c0_i32_0 : i32, i32
  }
  func.func @transform_20(%arg0: i32) -> (i32, i32) {
    %c0_i32 = arith.constant 0 : i32
    %c0_i32_0 = arith.constant 0 : i32
    %c0_i32_1 = arith.constant 0 : i32
    return %c0_i32, %c0_i32_0 : i32, i32
  }
  func.func @transform_21(%arg0: i32) -> (i32, i32) {
    %c0_i32 = arith.constant 0 : i32
    %c0_i32_0 = arith.constant 0 : i32
    %c0_i32_1 = arith.constant 0 : i32
    return %c0_i32, %c0_i32_0 : i32, i32
  }
  func.func @transform_22(%arg0: i32) -> (i32, i32) {
    %c0_i32 = arith.constant 0 : i32
    %c0_i32_0 = arith.constant 0 : i32
    %c0_i32_1 = arith.constant 0 : i32
    return %c0_i32, %c0_i32_0 : i32, i32
  }
  func.func @transform_23(%arg0: i32) -> (i32, i32) {
    %c0_i32 = arith.constant 0 : i32
    %c0_i32_0 = arith.constant 0 : i32
    %c0_i32_1 = arith.constant 0 : i32
    return %c0_i32, %c0_i32_0 : i32, i32
  }
  func.func @transform_24(%arg0: i32) -> (i32, i32) {
    %c0_i32 = arith.constant 0 : i32
    %c0_i32_0 = arith.constant 0 : i32
    %c0_i32_1 = arith.constant 0 : i32
    return %c0_i32, %c0_i32_0 : i32, i32
  }
  func.func @transform_25(%arg0: i32) -> (i32, i32) {
    %c0_i32 = arith.constant 0 : i32
    %c0_i32_0 = arith.constant 0 : i32
    %c0_i32_1 = arith.constant 0 : i32
    return %c0_i32, %c0_i32_0 : i32, i32
  }
  func.func @transform_26(%arg0: i32) -> (i32, i32) {
    %c0_i32 = arith.constant 0 : i32
    %c0_i32_0 = arith.constant 0 : i32
    %c0_i32_1 = arith.constant 0 : i32
    return %c0_i32, %c0_i32_0 : i32, i32
  }
  func.func @transform_27(%arg0: i32) -> (i32, i32) {
    %c0_i32 = arith.constant 0 : i32
    %c0_i32_0 = arith.constant 0 : i32
    return %arg0, %c0_i32 : i32, i32
  }
}

</mosaic_0001>

<bundles_post_ra>
// kernel: tpu_custom_call.1
= control target key start
LH: loop header
LB: loop body
LE: loop exit
PB: predicated region body
PF: predicated region fallthrough
CT: control target
= control target key end

     0   :  { %s10445_s0 = inlined_call_operand.vmem [shape: f32[512,6], index: 0, kind: input, shape index: {}]   ;;  %s10446_s1 = inlined_call_operand.vmem [shape: f32[3,256], index: 1, kind: input, shape index: {}]   ;;  %s10447_s2 = inlined_call_operand.vmem [shape: f32[1,256], index: 2, kind: input, shape index: {}]   ;;  %s10448_s3 = inlined_call_operand.vmem [shape: bf16[256,256], index: 3, kind: input, shape index: {}]   ;;  %s10449_s4 = inlined_call_operand.vmem [shape: f32[1,256], index: 4, kind: input, shape index: {}]   ;;  %s10450_s5 = inlined_call_operand.vmem [shape: bf16[256,256], index: 5, kind: input, shape index: {}]   ;;  %s10451_s6 = inlined_call_operand.vmem [shape: f32[1,256], index: 6, kind: input, shape index: {}]   ;;  %s10452_s7 = inlined_call_operand.hbm [shape: bf16[256,256], index: 7, kind: input, shape index: {}]   ;;  %s10453_s8 = inlined_call_operand.vmem [shape: f32[1,256], index: 8, kind: input, shape index: {}]   ;;  %s10454_s9 = inlined_call_operand.vmem [shape: f32[3,256], index: 9, kind: input, shape index: {}]   ;;  %s10455_s10 = inlined_call_operand.hbm [shape: bf16[256,256], index: 10, kind: input, shape index: {}]   ;;  %s10456_s11 = inlined_call_operand.vmem [shape: f32[1,256], index: 11, kind: input, shape index: {}]   ;;  %s10457_s12 = inlined_call_operand.hbm [shape: bf16[256,256], index: 12, kind: input, shape index: {}]   ;;  %s10458_s13 = inlined_call_operand.vmem [shape: f32[1,256], index: 13, kind: input, shape index: {}]   ;;  %s10459_s14 = inlined_call_operand.hbm [shape: bf16[256,256], index: 14, kind: input, shape index: {}]   ;;  %s10460_s15 = inlined_call_operand.vmem [shape: f32[1,256], index: 15, kind: input, shape index: {}]   ;;  %s10461_s16 = inlined_call_operand.hbm [shape: bf16[256,256], index: 16, kind: input, shape index: {}]   ;;  %s10462_s17 = inlined_call_operand.vmem [shape: f32[1,256], index: 17, kind: input, shape index: {}]   ;;  %s10463_s18 = inlined_call_operand.vmem [shape: f32[1,256], index: 18, kind: input, shape index: {}]   ;;  %s10464_s19 = inlined_call_operand.<no memory space> [shape: f32[1,1], index: 19, kind: input, shape index: {}]   ;;  %s10465_s20 = inlined_call_operand.hbm [shape: bf16[256,256], index: 20, kind: input, shape index: {}]   ;;  %s10466_s21 = inlined_call_operand.vmem [shape: f32[1,256], index: 21, kind: input, shape index: {}]   ;;  %s10467_s22 = inlined_call_operand.hbm [shape: bf16[256,128], index: 22, kind: input, shape index: {}]   ;;  %s10468_s23 = inlined_call_operand.vmem [shape: f32[3,128], index: 23, kind: input, shape index: {}]   ;;  %s10469_s24 = inlined_call_operand.vmem [shape: f32[1,128], index: 24, kind: input, shape index: {}]   ;;  %s10470_s25 = inlined_call_operand.vmem [shape: bf16[128,3], index: 25, kind: input, shape index: {}]   ;;  %s10471_s26 = inlined_call_operand.vmem [shape: f32[1,3], index: 26, kind: input, shape index: {}]   ;;  %s10472_s27 = inlined_call_operand.vmem [shape: f32[512,4], index: 27, kind: output, shape index: {}]  }
   0x1   :  { %10483 = sst [smem:[#allocation18_spill]] %s10445_s0  ;;  %v32_v0 = vstv %s10464_s19 }
   0x2   :  { %10484 = sst [smem:[#allocation19_spill]] %s10446_s1  ;;  %33 = vst [vmem:[#allocation2] sm:$0x1] %v32_v0 }
   0x3   :  { %10485 = sst [smem:[#allocation20_spill]] %s10447_s2 }
   0x4   :  { %10486 = sst [smem:[#allocation21_spill]] %s10448_s3 }
   0x5   :  { %10487 = sst [smem:[#allocation22_spill]] %s10449_s4 }
   0x6   :  { %10488 = sst [smem:[#allocation23_spill]] %s10450_s5 }
   0x7   :  { %10489 = sst [smem:[#allocation24_spill]] %s10451_s6 }
   0x8   :  { %10490 = sst [smem:[#allocation25_spill]] %s10452_s7 }
   0x9   :  { %10491 = sst [smem:[#allocation26_spill]] %s10453_s8 }
   0xa   :  { %10492 = sst [smem:[#allocation27_spill]] %s10454_s9 }
   0xb   :  { %10493 = sst [smem:[#allocation28_spill]] %s10455_s10 }
   0xc   :  { %10494 = sst [smem:[#allocation29_spill]] %s10456_s11 }
   0xd   :  { %10495 = sst [smem:[#allocation30_spill]] %s10466_s21 }
   0xe   :  { %10496 = sst [smem:[#allocation31_spill]] %s10469_s24 }
   0xf   :  { %10497 = sst [smem:[#allocation32_spill]] %s10470_s25 }
  0x10   :  { %10498 = sst [smem:[#allocation33_spill]] %s10471_s26 }
  0x11   :  { %10499 = sst [smem:[#allocation34_spill]] %s10472_s27 }
  0x12   :  { %34 = vsyncpa [#allocation4], 0 }
  0x13   :  { %35 = vsyncpa [#allocation6], 0 }
  0x14   :  { %36 = vsyncpa [#allocation9], 0 }
  0x15   :  { %37 = vsyncpa [#allocation12], 0  ;;  %s8596_s8 = smov 0  }
  0x16 LB: > { %s10477_s30 = sadd.s32 4294967295, %s8436_s8   ;;  %p7037_p0 = scmp.ge.s32.totalorder %s8436_s8, 1  ;;  %s8436_s8 = sphi %s8596_s8, %s43_s8  }
  0x17   : > { %p646_p1 = scmp.lt.s32.totalorder %s8436_s8, 3  ;;  %p8606_p2 = scmp.eq.s32.totalorder %s10477_s30, 0 }
  0x18   : > { %s8438_s5 = smov [#allocation5]   ;;  %s8439_s0 = smov [#allocation8]  }
  0x19   : > { %s10500_s19 = scalar_select %p8606_p2, 1, 0 }
  0x1a   : > { %p8610_p3 = pnand %p7037_p0, %p646_p1  ;;  %s695_s28 = sshll.u32 %s8438_s5, 4  ;;  %s8614_s28 = int_to_ptr.vmem [resolvable:$true] %s695_s28 }
  0x1b   : > { %s727_s10 = sshll.u32 %s8439_s0, 4  ;;  %s8440_s1 = smov [#allocation11]   ;;  %s8618_s10 = int_to_ptr.vmem [resolvable:$true] %s727_s10 }
  0x1c   : > { %s10501_s9 = scalar_select %p8610_p3, 1, 0 }
  0x1d   : > { %p7749_p4 = pneg %p8610_p3  ;;  %s765_s6 = sshll.u32 %s8440_s1, 4  ;;  %s8626_s6 = int_to_ptr.vmem [resolvable:$true] %s765_s6 }
  0x1e   : > { %s8441_s11 = smov [#allocation3]   ;;  %s10503_s4 = sld [smem:[#allocation28_spill]] }
  0x1f   : > { %p8622_p5 = pnand %p8606_p2, %p7749_p4  ;;  %s8628_s2 = sshll.u32 %s8441_s11, 4  ;;  %s677_s2 = int_to_ptr.vmem [resolvable:$true] %s8628_s2 }
  0x21   : > { %p8638_p7 = pneg %p8622_p5 }
  0x24   : > { %s8218_s5 = scalar_lea.hbm %s10503_s4, 4096 }
  0x25   : > { %p8219_p6 = scmp.ne.s32.totalorder %s10503_s4, %s8218_s5  ;;  %p8225_p10 = scmp.lt.u32.totalorder %s8218_s5, %s10503_s4 }
  0x27   : > { %p8221_p8 = pnand %p8638_p7, %p8219_p6 }
  0x29   : > { %p8222_p9 = pneg %p8221_p8 }
  0x2b   : > { %p8227_p11 = pnand %p8225_p10, %p8222_p9 }
  0x2d   : > { %8230 = shalt.err (!%p8227_p11)
}
  0x2e   : > { %s8231_s30 = scalar_lea.vmem %s8614_s28, 4096  ;;  %p8239_p1 = scmp.lt.s32.totalorder %s8614_s28, %s8614_s28 }
  0x2f   : > { %p8232_p12 = scmp.ne.s32.totalorder %s8614_s28, %s8231_s30  ;;  %p8240_p4 = scmp.lt.s32.totalorder %s8231_s30, %s8231_s30 }
  0x31   : > { %p8234_p13 = pnand %p8232_p12, %p8638_p7  ;;  %p8241_p6 = por %p8240_p4, %p8239_p1 }
  0x33   : > { %p8235_p0 = pneg %p8234_p13 }
  0x35   : > { %p8242_p8 = pnand %p8241_p6, %p8235_p0 }
  0x37   : > { %8245 = shalt.err (!%p8242_p8)
}
  0x38   : > { %s8442_s3 = smov 128   ;;  %s8443_s7 = smov 8  }
  0x39   : > { %7755 = dma.hbm_to_vmem [thread:$0]  (!%p8622_p5), %s10503_s4, 4096, %s8614_s28, [#allocation6], %s8442_s3, %s8442_s3, %s8443_s7  }
  0x3a   : > { %s8246_s30 = scalar_lea.hbm %s10459_s14, 4096 }
  0x3b   : > { %p8247_p9 = scmp.ne.s32.totalorder %s10459_s14, %s8246_s30  ;;  %p8253_p12 = scmp.lt.u32.totalorder %s8246_s30, %s10459_s14 }
  0x3d   : > { %p8249_p10 = pnand %p8247_p9, %p8638_p7 }
  0x3f   : > { %p8250_p11 = pneg %p8249_p10 }
  0x41   : > { %p8255_p13 = pnand %p8253_p12, %p8250_p11 }
  0x43   : > { %8258 = shalt.err (!%p8255_p13)
}
  0x44   : > { %s8259_s28 = scalar_lea.vmem %s8618_s10, 4096  ;;  %p8267_p6 = scmp.lt.s32.totalorder %s8618_s10, %s8618_s10 }
  0x45   : > { %p8260_p0 = scmp.ne.s32.totalorder %s8618_s10, %s8259_s28  ;;  %p8268_p8 = scmp.lt.s32.totalorder %s8259_s28, %s8259_s28 }
  0x47   : > { %p8262_p1 = pnand %p8260_p0, %p8638_p7  ;;  %p8269_p9 = por %p8268_p8, %p8267_p6 }
  0x49   : > { %p8263_p4 = pneg %p8262_p1 }
  0x4b   : > { %p8270_p10 = pnand %p8269_p9, %p8263_p4 }
  0x4d   : > { %8273 = shalt.err (!%p8270_p10)
}
  0x4e   : > { %7761 = dma.hbm_to_vmem [thread:$0]  (!%p8622_p5), %s10459_s14, 4096, %s8618_s10, [#allocation9], %s8442_s3, %s8442_s3, %s8443_s7  }
  0x4f   : > { %s8274_s5 = scalar_lea.hbm %s10465_s20, 4096 }
  0x50   : > { %p8275_p11 = scmp.ne.s32.totalorder %s10465_s20, %s8274_s5  ;;  %p8281_p0 = scmp.lt.u32.totalorder %s8274_s5, %s10465_s20 }
  0x52   : > { %p8277_p12 = pnand %p8275_p11, %p8638_p7 }
  0x54   : > { %p8278_p13 = pneg %p8277_p12 }
  0x56   : > { %p8283_p1 = pnand %p8281_p0, %p8278_p13 }
  0x58   : > { %8286 = shalt.err (!%p8283_p1)
}
  0x59   : > { %s8287_s10 = scalar_lea.vmem %s8626_s6, 4096  ;;  %p8295_p9 = scmp.lt.s32.totalorder %s8626_s6, %s8626_s6 }
  0x5a   : > { %p8288_p4 = scmp.ne.s32.totalorder %s8626_s6, %s8287_s10  ;;  %p8296_p10 = scmp.lt.s32.totalorder %s8287_s10, %s8287_s10 }
  0x5c   : > { %p8290_p6 = pnand %p8288_p4, %p8638_p7  ;;  %p8297_p11 = por %p8296_p10, %p8295_p9 }
  0x5e   : > { %p8291_p8 = pneg %p8290_p6 }
  0x60   : > { %p8298_p12 = pnand %p8297_p11, %p8291_p8 }
  0x62   : > { %8301 = shalt.err (!%p8298_p12)
}
  0x63   : > { %7767 = dma.hbm_to_vmem [thread:$0]  (!%p8622_p5), %s10465_s20, 4096, %s8626_s6, [#allocation12], %s8442_s3, %s8442_s3, %s8443_s7  }
  0x64   : > { %s10505_s27 = sld [smem:[#allocation25_spill]] }
  0x6a   : > { %s8302_s5 = scalar_lea.hbm %s10505_s27, 4096 }
  0x6b   : > { %p8303_p13 = scmp.ne.s32.totalorder %s10505_s27, %s8302_s5  ;;  %p8309_p4 = scmp.lt.u32.totalorder %s8302_s5, %s10505_s27 }
  0x6d   : > { %p8305_p0 = pnand %p8303_p13, %p8638_p7 }
  0x6f   : > { %p8306_p1 = pneg %p8305_p0 }
  0x71   : > { %p8311_p6 = pnand %p8309_p4, %p8306_p1 }
  0x73   : > { %8314 = shalt.err (!%p8311_p6)
}
  0x74   : > { %s8315_s10 = scalar_lea.vmem %s677_s2, 4096  ;;  %p8323_p11 = scmp.lt.s32.totalorder %s677_s2, %s677_s2 }
  0x75   : > { %p8316_p8 = scmp.ne.s32.totalorder %s677_s2, %s8315_s10  ;;  %p8324_p12 = scmp.lt.s32.totalorder %s8315_s10, %s8315_s10 }
  0x77   : > { %p8318_p9 = pnand %p8316_p8, %p8638_p7  ;;  %p8325_p2 = por %p8324_p12, %p8323_p11 }
  0x79   : > { %p8319_p10 = pneg %p8318_p9 }
  0x7b   : > { %p8326_p3 = pnand %p8325_p2, %p8319_p10 }
  0x7d   : > { %8329 = shalt.err (!%p8326_p3)
}
  0x7e   : > { %7752 = dma.hbm_to_vmem [thread:$0]  (!%p8622_p5), %s10505_s27, 4096, %s677_s2, [#allocation4], %s8442_s3, %s8442_s3, %s8443_s7  }
  0x7f   : > { %s8444_s21 = smov [#allocation7]   ;;  %s8445_s25 = smov [#allocation10]  }
  0x80   : > { %s711_s24 = sshll.u32 %s8444_s21, 4  ;;  %s743_s5 = sshll.u32 %s8445_s25, 4  ;;  %s712_s24 = int_to_ptr.vmem [resolvable:$true] %s711_s24  ;;  %s744_s5 = int_to_ptr.vmem [resolvable:$true] %s743_s5 }
  0x81   : > { %s8330_s11 = scalar_lea.hbm %s10457_s12, 4096 }
  0x82   : > { %p8331_p2 = scmp.ne.s32.totalorder %s10457_s12, %s8330_s11  ;;  %p8337_p0 = scmp.lt.u32.totalorder %s8330_s11, %s10457_s12 }
  0x84   : > { %p8333_p3 = pnand %p8331_p2, %p8638_p7 }
  0x86   : > { %p8334_p13 = pneg %p8333_p3 }
  0x88   : > { %p8339_p1 = pnand %p8337_p0, %p8334_p13 }
  0x8a   : > { %8342 = shalt.err (!%p8339_p1)
}
  0x8b   : > { %s8343_s2 = scalar_lea.vmem %s712_s24, 4096  ;;  %p8351_p9 = scmp.lt.s32.totalorder %s712_s24, %s712_s24 }
  0x8c   : > { %p8344_p4 = scmp.ne.s32.totalorder %s712_s24, %s8343_s2  ;;  %p8352_p10 = scmp.lt.s32.totalorder %s8343_s2, %s8343_s2 }
  0x8e   : > { %p8346_p6 = pnand %p8344_p4, %p8638_p7  ;;  %p8353_p11 = por %p8352_p10, %p8351_p9 }
  0x90   : > { %p8347_p8 = pneg %p8346_p6 }
  0x92   : > { %p8354_p12 = pnand %p8353_p11, %p8347_p8 }
  0x94   : > { %8357 = shalt.err (!%p8354_p12)
}
  0x95   : > { %7758 = dma.hbm_to_vmem [thread:$0]  (!%p8622_p5), %s10457_s12, 4096, %s712_s24, [#allocation6], %s8442_s3, %s8442_s3, %s8443_s7  }
  0x96   : > { %s8358_s0 = scalar_lea.hbm %s10461_s16, 4096 }
  0x97   : > { %p8359_p2 = scmp.ne.s32.totalorder %s10461_s16, %s8358_s0  ;;  %p8365_p0 = scmp.lt.u32.totalorder %s8358_s0, %s10461_s16 }
  0x99   : > { %p8361_p3 = pnand %p8359_p2, %p8638_p7 }
  0x9b   : > { %p8362_p13 = pneg %p8361_p3 }
  0x9d   : > { %p8367_p1 = pnand %p8365_p0, %p8362_p13 }
  0x9f   : > { %8370 = shalt.err (!%p8367_p1)
}
  0xa0   : > { %s8371_s6 = scalar_lea.vmem %s744_s5, 4096  ;;  %p8379_p9 = scmp.lt.s32.totalorder %s744_s5, %s744_s5 }
  0xa1   : > { %p8372_p4 = scmp.ne.s32.totalorder %s744_s5, %s8371_s6  ;;  %p8380_p10 = scmp.lt.s32.totalorder %s8371_s6, %s8371_s6 }
  0xa3   : > { %p8374_p6 = pnand %p8372_p4, %p8638_p7  ;;  %p8381_p11 = por %p8380_p10, %p8379_p9 }
  0xa5   : > { %p8375_p8 = pneg %p8374_p6 }
  0xa7   : > { %p8382_p12 = pnand %p8381_p11, %p8375_p8 }
  0xa9   : > { %8385 = shalt.err (!%p8382_p12)
}
  0xaa   : > { %7764 = dma.hbm_to_vmem [thread:$0]  (!%p8622_p5), %s10461_s16, 4096, %s744_s5, [#allocation9], %s8442_s3, %s8442_s3, %s8443_s7  }
  0xab   : > { %s8446_s4 = smov [#allocation13]   ;;  %s8386_s0 = scalar_lea.hbm %s10467_s22, 2048 }
  0xac   : > { %s781_s28 = sshll.u32 %s8446_s4, 4  ;;  %p8387_p2 = scmp.ne.s32.totalorder %s10467_s22, %s8386_s0  ;;  %s782_s28 = int_to_ptr.vmem [resolvable:$true] %s781_s28 }
  0xad   : > { %p8393_p0 = scmp.lt.u32.totalorder %s8386_s0, %s10467_s22 }
  0xae   : > { %p8389_p3 = pnand %p8387_p2, %p8638_p7 }
  0xb0   : > { %p8390_p13 = pneg %p8389_p3 }
  0xb2   : > { %p8395_p1 = pnand %p8393_p0, %p8390_p13 }
  0xb4   : > { %8398 = shalt.err (!%p8395_p1)
}
  0xb5   : > { %s8399_s3 = scalar_lea.vmem %s782_s28, 2048  ;;  %p8407_p9 = scmp.lt.s32.totalorder %s782_s28, %s782_s28 }
  0xb6   : > { %p8400_p4 = scmp.ne.s32.totalorder %s782_s28, %s8399_s3  ;;  %p8408_p10 = scmp.lt.s32.totalorder %s8399_s3, %s8399_s3 }
  0xb8   : > { %p8402_p6 = pnand %p8400_p4, %p8638_p7  ;;  %p8409_p11 = por %p8408_p10, %p8407_p9 }
  0xba   : > { %p8403_p8 = pneg %p8402_p6 }
  0xbc   : > { %p8410_p12 = pnand %p8409_p11, %p8403_p8 }
  0xbe   : > { %8413 = shalt.err (!%p8410_p12)
}
  0xbf   : > { %s8447_s7 = smov 64   ;;  %s8448_s5 = smov 4  }
  0xc0   : > { %7770 = dma.hbm_to_vmem [thread:$0]  (!%p8622_p5), %s10467_s22, 2048, %s782_s28, [#allocation12], %s8447_s7, %s8447_s7, %s8448_s5  }
  0xc1   : > { %p10506_p2 = scmp.ne.s32.totalorder %s10501_s9, 0 }
  0xc2   : > { %p10507_p3 = scmp.ne.s32.totalorder (!%p10506_p2), %s10500_s19, 0 }
  0xc3   : > { %818 = sbr.rel (%p10506_p2) target bundleno = 2914 (0xb62), region = 128 }
  0xca   : > { %8419 = dma.done.wait (%p10507_p3), [#allocation4], 4096  }
  0xcb   : > { %8421 = vsyncadd (%p10507_p3), [#allocation4], 4294963200 }
  0xcc   : > { %8423 = dma.done.wait (%p10507_p3), [#allocation6], 8192  }
  0xcd   : > { %8425 = vsyncadd (%p10507_p3), [#allocation6], 4294959104 }
  0xce   : > { %8427 = dma.done.wait (%p10507_p3), [#allocation9], 8192  }
  0xcf   : > { %8429 = vsyncadd (%p10507_p3), [#allocation9], 4294959104 }
  0xd0   : > { %8431 = dma.done.wait (%p10507_p3), [#allocation12], 6144  }
  0xd1   : > { %8433 = vsyncadd (%p10507_p3), [#allocation12], 4294961152  ;;  %v8449_v1 = vmov 0   ;;  %s10508_s26 = sadd.s32 4294967295, %s8436_s8   ;;  %vm1030_vm0 = vcmask 1040384   ;;  %vm1031_vm1 = vcmask 1041408  }
  0xd2   : > { %1072 = vmatprep.mubr.bf16.mxu0 %v8449_v1  ;;  %s7054_s9 = sshll.u32 %s10508_s26, 5  ;;  %v8450_v2 = vmov 65535   ;;  %s10509_s19 = sld [smem:[#allocation19_spill]]  ;;  %vm981_vm2 = vcmask 23552   ;;  %vm5528_vm3 = vcmask 31768  }
  0xd3   : > { %p915_p5 = scmp.lt.s32.totalorder %s7054_s9, 63  ;;  %v1032_v3 = vsel %vm1030_vm0, 4294967295, %v8450_v2  ;;  %s10510_s25 = sld [smem:[#allocation18_spill]] }
  0xd4   : > { %v8823_v6 = vsel %vm1031_vm1, %v1032_v3, 0  ;;  %s10511_s30 = sld [smem:[#allocation21_spill]]  ;;  %s10512_s6 = sld [smem:[#allocation23_spill]] }
  0xd5   : > { %s10525_s9 = smov (!%p915_p5, %s7054_s9), 63  ;;  %s10514_s21 = sld [smem:[#allocation22_spill]] }
  0xd6   : > { %s7055_s29 = sshll.u32 %s10525_s9, 3  ;;  %s10515_s11 = sld [smem:[#allocation24_spill]] }
  0xd7   : > { %s10516_s7 = sld [smem:[#allocation27_spill]]  ;;  %s10517_s26 = sld [smem:[#allocation26_spill]] }
  0xd8   : > { %v975_v4 = vld [vmem:[%s10509_s19] sm:$0x77]  ;;  %s8451_s1 = smov 125   ;;  %s10521_s5 = sld [smem:[#allocation34_spill]] }
  0xd9   : > { %v977_v5 = vcombine.high %v975_v4, %v975_v4  ;;  %v979_v7 = vpack.c.bf16 %v975_v4, %v975_v4  ;;  %s8830_s0 = scalar_lea.vmem %s10510_s25, %s7055_s29  ;;  %s10513_s25 = sld [smem:[#allocation20_spill]] }
  0xda   : > { %v927_v10 = vld [vmem:[%s8830_s0] sm:$0xff]  ;;  %v928_v11 = vld [vmem:[%s8830_s0 + $0x8] sm:$0xff]  ;;  %v929_v14 = vld [vmem:[%s8830_s0 + $0x10] sm:$0xff]  ;;  %s10522_s3 = sld [smem:[#allocation31_spill]]  ;;  %s10523_s9 = sld [smem:[#allocation33_spill]] }
  0xdb   : > { %v980_v8 = vpack.c.bf16 %v977_v5, %v977_v5  ;;  %v1035_v9 = vand.u32 %v8823_v6, %v979_v7  ;;  %v8836_v13 = vpack.c.bf16 %v928_v11, %v927_v10  ;;  %v930_v15 = vld [vmem:[%s8830_s0 + $0x18] sm:$0xff]  ;;  %v7809_v16 = vld [vmem:[%s10511_s30 + $0x4] ss:$8 sps:$4 sm:$0xff]   ;;  %v7811_v17 = vld [vmem:[%s10511_s30] ss:$8 sps:$4 sm:$0xff]  }
  0xdc   : > { %1549 = vmatprep.subr.bf16.mxu1 %v7809_v16  ;;  %v7812_v18 = vld [vmem:[%s10511_s30 + $0x14] ss:$8 sps:$4 sm:$0xff]   ;;  %v7814_v19 = vld [vmem:[%s10511_s30 + $0x10] ss:$8 sps:$4 sm:$0xff]   ;;  %v8855_v20 = vpack.c.bf16 %v930_v15, %v929_v14  ;;  %v7815_v21 = vld [vmem:[%s10511_s30 + $0x24] ss:$8 sps:$4 sm:$0xff]  }
  0xdd   : > { %v1038_v12 = vand.u32 %v8823_v6, %v980_v8  ;;  %1550 = vmatpush1.bf16.msra.mxu1 %v7811_v17  ;;  %v931_v22 = vld [vmem:[%s8830_s0 + $0x20] sm:$0xff]  ;;  %v7818_v24 = vld [vmem:[%s10511_s30 + $0x34] ss:$8 sps:$4 sm:$0xff]   ;;  %v932_v25 = vld [vmem:[%s8830_s0 + $0x28] sm:$0xff]  ;;  %6088 = vrot.lane.b32.xlu0 %v8836_v13, %s8451_s1 }
  0xde   : > { %1551 = vmatprep.subr.bf16.mxu1 %v7812_v18  ;;  %v7817_v23 = vld [vmem:[%s10511_s30 + $0x20] ss:$8 sps:$4 sm:$0xff]   ;;  %v7820_v26 = vld [vmem:[%s10511_s30 + $0x30] ss:$8 sps:$4 sm:$0xff]   ;;  %v8874_v27 = vpack.c.bf16 %v932_v25, %v931_v22  ;;  %v7821_v28 = vld [vmem:[%s10511_s30 + $0x44] ss:$8 sps:$4 sm:$0xff]   ;;  %s10106_s24 = scalar_lea.vmem %s10521_s5, %s7055_s29 }
  0xdf   : > { %1040 = vmatprep.subr.bf16.mxu0 %v1038_v12  ;;  %v933_v29 = vld [vmem:[%s8830_s0 + $0x30] sm:$0xff]  ;;  %v934_v30 = vld [vmem:[%s8830_s0 + $0x38] sm:$0xff]  ;;  %v7823_v31 = vld [vmem:[%s10511_s30 + $0x40] ss:$8 sps:$4 sm:$0xff]  }
  0xe0   : > { %1041 = vmatpush1.bf16.msra.mxu0 %v1035_v9  ;;  %v7824_v32 = vld [vmem:[%s10511_s30 + $0x54] ss:$8 sps:$4 sm:$0xff]   ;;  %v7826_v33 = vld [vmem:[%s10511_s30 + $0x50] ss:$8 sps:$4 sm:$0xff]   ;;  %v7827_v34 = vld [vmem:[%s10511_s30 + $0x64] ss:$8 sps:$4 sm:$0xff]   ;;  %v8896_v35 = vpack.c.bf16 %v934_v30, %v933_v29  ;;  %6092 = vrot.lane.b32.xlu1 %v8874_v27, %s8451_s1 }
  0xe1   : > { %1552 = vmatpush1.bf16.msra.mxu1 %v7814_v19  ;;  %v7829_v36 = vld [vmem:[%s10511_s30 + $0x60] ss:$8 sps:$4 sm:$0xff]   ;;  %v7830_v37 = vld [vmem:[%s10511_s30 + $0x74] ss:$8 sps:$4 sm:$0xff]   ;;  %v7832_v40 = vld [vmem:[%s10511_s30 + $0x70] ss:$8 sps:$4 sm:$0xff]   ;;  %6090 = vrot.lane.b32.xlu0 %v8855_v20, %s8451_s1 }
  0xe2   : > { %1553 = vmatprep.subr.bf16.mxu1 %v7815_v21  ;;  %v935_v38 = vld [vmem:[%s8830_s0 + $0x40] sm:$0xff]  ;;  %v936_v39 = vld [vmem:[%s8830_s0 + $0x48] sm:$0xff]  ;;  %v7836_v44 = vld [vmem:[%s10511_s30 + $0x94] ss:$8 sps:$4 sm:$0xff]  }
  0xe3   : > { %7058 = vmatmul.mubr.msk.bf16.vlgmr.msra.gmra.mrb[0].mxu0 %vm981_vm2, %v8836_v13  ;;  %v7833_v41 = vld [vmem:[%s10511_s30 + $0x84] ss:$8 sps:$4 sm:$0xff]   ;;  %v8915_v42 = vpack.c.bf16 %v936_v39, %v935_v38  ;;  %v7835_v43 = vld [vmem:[%s10511_s30 + $0x80] ss:$8 sps:$4 sm:$0xff]   ;;  %v937_v45 = vld [vmem:[%s8830_s0 + $0x50] sm:$0xff] }
  0xe4   : > { %1082 = vmatprep.mubr.bf16.mxu0 %v8449_v1  ;;  %v938_v46 = vld [vmem:[%s8830_s0 + $0x58] sm:$0xff]  ;;  %v7839_v48 = vld [vmem:[%s10511_s30 + $0xa4] ss:$8 sps:$4 sm:$0xff]   ;;  %v7841_v50 = vld [vmem:[%s10511_s30 + $0xa0] ss:$8 sps:$4 sm:$0xff]   ;;  %6094 = vrot.lane.b32.xlu1 %v8896_v35, %s8451_s1 }
  0xe5   : > { %1554 = vmatpush1.bf16.msra.mxu1 %v7817_v23  ;;  %v7838_v47 = vld [vmem:[%s10511_s30 + $0x90] ss:$8 sps:$4 sm:$0xff]   ;;  %v8934_v49 = vpack.c.bf16 %v938_v46, %v937_v45  ;;  %v7842_v51 = vld [vmem:[%s10511_s30 + $0xb4] ss:$8 sps:$4 sm:$0xff]   ;;  %v939_v52 = vld [vmem:[%s8830_s0 + $0x60] sm:$0xff]  ;;  %6096 = vrot.lane.b32.xlu0 %v8915_v42, %s8451_s1 }
  0xe6   : > { %1555 = vmatprep.subr.bf16.mxu1 %v7818_v24  ;;  %v940_v53 = vld [vmem:[%s8830_s0 + $0x68] sm:$0xff]  ;;  %v7844_v54 = vld [vmem:[%s10511_s30 + $0xb0] ss:$8 sps:$4 sm:$0xff]   ;;  %v7848_v58 = vld [vmem:[%s10511_s30 + $0xd4] ss:$8 sps:$4 sm:$0xff]  }
  0xe7   : > { %v7845_v55 = vld [vmem:[%s10511_s30 + $0xc4] ss:$8 sps:$4 sm:$0xff]   ;;  %v8953_v56 = vpack.c.bf16 %v940_v53, %v939_v52  ;;  %v7847_v57 = vld [vmem:[%s10511_s30 + $0xc0] ss:$8 sps:$4 sm:$0xff]   ;;  %v941_v59 = vld [vmem:[%s8830_s0 + $0x70] sm:$0xff] }
  0xe8   : > { %v942_v60 = vld [vmem:[%s8830_s0 + $0x78] sm:$0xff]  ;;  %v943_v62 = vld [vmem:[%s8830_s0 + $0x80] sm:$0xff]  ;;  %v944_v63 = vld [vmem:[%s8830_s0 + $0x88] sm:$0xff]  ;;  %6098 = vrot.lane.b32.xlu1 %v8934_v49, %s8451_s1 }
  0xe9   : > { %1556 = vmatpush1.bf16.msra.mxu1 %v7820_v26  ;;  %v8966_v61 = vpack.c.bf16 %v942_v60, %v941_v59  ;;  %v8973_v0 = vpack.c.bf16 %v944_v63, %v943_v62  ;;  %v945_v2 = vld [vmem:[%s8830_s0 + $0x90] sm:$0xff]  ;;  %v946_v3 = vld [vmem:[%s8830_s0 + $0x98] sm:$0xff]  ;;  %v947_v5 = vld [vmem:[%s8830_s0 + $0xa0] sm:$0xff]  ;;  %6100 = vrot.lane.b32.xlu0 %v8953_v56, %s8451_s1 }
  0xea   : > { %1557 = vmatprep.subr.bf16.mxu1 %v7821_v28  ;;  %v8980_v4 = vpack.c.bf16 %v946_v3, %v945_v2  ;;  %v948_v7 = vld [vmem:[%s8830_s0 + $0xa8] sm:$0xff]  ;;  %v949_v9 = vld [vmem:[%s8830_s0 + $0xb0] sm:$0xff]  ;;  %v950_v10 = vld [vmem:[%s8830_s0 + $0xb8] sm:$0xff] }
  0xeb   : > { %7059 = vmatmul.mubr.msk.bf16.gmra.mrb[4].mxu0 %vm981_vm2, %v8855_v20  ;;  %v8987_v8 = vpack.c.bf16 %v948_v7, %v947_v5  ;;  %v7850_v11 = vld [vmem:[%s10511_s30 + $0xd0] ss:$8 sps:$4 sm:$0xff]   ;;  %v8997_v12 = vpack.c.bf16 %v950_v10, %v949_v9  ;;  %v7851_v14 = vld [vmem:[%s10511_s30 + $0xe4] ss:$8 sps:$4 sm:$0xff]   ;;  %v7853_v15 = vld [vmem:[%s10511_s30 + $0xe0] ss:$8 sps:$4 sm:$0xff]  }
  0xec   : > { %1092 = vmatprep.mubr.bf16.mxu0 %v8449_v1  ;;  %v951_v16 = vld [vmem:[%s8830_s0 + $0xc0] sm:$0xff]  ;;  %v952_v17 = vld [vmem:[%s8830_s0 + $0xc8] sm:$0xff]  ;;  %v7854_v18 = vld [vmem:[%s10511_s30 + $0xf4] ss:$8 sps:$4 sm:$0xff]   ;;  %6102 = vrot.lane.b32.xlu1 %v8966_v61, %s8451_s1 }
  0xed   : > { %1558 = vmatpush1.bf16.msra.mxu1 %v7823_v31  ;;  %v7856_v19 = vld [vmem:[%s10511_s30 + $0xf0] ss:$8 sps:$4 sm:$0xff]   ;;  %v9016_v21 = vpack.c.bf16 %v952_v17, %v951_v16  ;;  %v955_v25 = vld [vmem:[%s8830_s0 + $0xe0] sm:$0xff]  ;;  %v956_v26 = vld [vmem:[%s8830_s0 + $0xe8] sm:$0xff]  ;;  %6104 = vrot.lane.b32.xlu0 %v8973_v0, %s8451_s1 }
  0xee   : > { %1559 = vmatprep.subr.bf16.mxu1 %v7824_v32  ;;  %v953_v22 = vld [vmem:[%s8830_s0 + $0xd0] sm:$0xff]  ;;  %v954_v23 = vld [vmem:[%s8830_s0 + $0xd8] sm:$0xff]  ;;  %v9030_v28 = vpack.c.bf16 %v956_v26, %v955_v25  ;;  %v7857_v32 = vld [vmem:[%s10512_s6] ss:$8 sps:$4 sm:$0xff]  }
  0xef   : > { %v9023_v24 = vpack.c.bf16 %v954_v23, %v953_v22  ;;  %v957_v29 = vld [vmem:[%s8830_s0 + $0xf0] sm:$0xff]  ;;  %v958_v30 = vld [vmem:[%s8830_s0 + $0xf8] sm:$0xff]  ;;  %v7863_v45 = vld [vmem:[%s10512_s6 + $0x20] ss:$8 sps:$4 sm:$0xff]   ;;  %s10518_s0 = sld [smem:[#allocation29_spill]] }
  0xf0   : > { %v9037_v31 = vpack.c.bf16 %v958_v30, %v957_v29  ;;  %v7862_v38 = vld [vmem:[%s10512_s6 + $0x14] ss:$8 sps:$4 sm:$0xff]   ;;  %v7865_v46 = vld [vmem:[%s10512_s6 + $0x24] ss:$8 sps:$4 sm:$0xff]   ;;  %v7866_v52 = vld [vmem:[%s10512_s6 + $0x30] ss:$8 sps:$4 sm:$0xff]   ;;  %6106 = vrot.lane.b32.xlu1 %v8980_v4, %s8451_s1 }
  0xf1   : > { %1560 = vmatpush1.bf16.msra.mxu1 %v7826_v33  ;;  %v7859_v33 = vld [vmem:[%s10512_s6 + $0x4] ss:$8 sps:$4 sm:$0xff]   ;;  %v7868_v53 = vld [vmem:[%s10512_s6 + $0x34] ss:$8 sps:$4 sm:$0xff]   ;;  %v7869_v63 = vld [vmem:[%s10512_s6 + $0x40] ss:$8 sps:$4 sm:$0xff]   ;;  %6108 = vrot.lane.b32.xlu0 %v8987_v8, %s8451_s1 }
  0xf2   : > { %1561 = vmatprep.subr.bf16.mxu1 %v7827_v34  ;;  %v1267_v34 = vlaneseq  ;;  %2058 = vmatprep.subr.bf16.mxu0 %v7859_v33  ;;  %v7871_v2 = vld [vmem:[%s10512_s6 + $0x44] ss:$8 sps:$4 sm:$0xff]   ;;  %v7874_v5 = vld [vmem:[%s10512_s6 + $0x54] ss:$8 sps:$4 sm:$0xff]   ;;  %v7872_v10 = vld [vmem:[%s10512_s6 + $0x50] ss:$8 sps:$4 sm:$0xff]  }
  0xf3   : > { %7060 = vmatmul.mubr.msk.bf16.gmra.mrb[8].mxu0 %vm981_vm2, %v8874_v27  ;;  %v7880_v25 = vld [vmem:[%s10512_s6 + $0x74] ss:$8 sps:$4 sm:$0xff]   ;;  %v7883_v33 = vld [vmem:[%s10512_s6 + $0x84] ss:$8 sps:$4 sm:$0xff]  }
  0xf4   : > { %1102 = vmatprep.mubr.bf16.mxu0 %v8449_v1  ;;  %2059 = vmatpush1.bf16.msra.mxu0 %v7857_v32  ;;  %v7878_v32 = vld [vmem:[%s10512_s6 + $0x70] ss:$8 sps:$4 sm:$0xff]  }
  0xf5   : > { %1562 = vmatpush1.bf16.msra.mxu1 %v7829_v36  ;;  %v1268_v36 = vshrl.u32 %v1267_v34, 7  ;;  %2060 = vmatprep.subr.bf16.mxu0 %v7862_v38 }
  0xf6   : > { %1563 = vmatprep.subr.bf16.mxu1 %v7830_v37  ;;  %v7860_v37 = vld [vmem:[%s10512_s6 + $0x10] ss:$8 sps:$4 sm:$0xff]   ;;  %6110 = vrot.lane.b32.xlu1 %v8997_v12, %s8451_s1 }
  0xf7   : > { %v9053_v39 = vsub.s32 0, %v1268_v36  ;;  %6112 = vrot.lane.b32.xlu0 %v9016_v21, %s8451_s1 }
  0xf8   : > { %2061 = vmatpush1.bf16.msra.mxu0 %v7860_v37 }
  0xf9   : > { %1564 = vmatpush1.bf16.msra.mxu1 %v7832_v40  ;;  %v1265_v40 = vld [vmem:[%s10513_s25] sm:$0x3]  ;;  %2062 = vmatprep.subr.bf16.mxu0 %v7865_v46  ;;  %v7886_v46 = vld [vmem:[%s10512_s6 + $0x94] ss:$8 sps:$4 sm:$0xff]  }
  0xfa   : > { %1565 = vmatprep.subr.bf16.mxu1 %v7833_v41  ;;  %v9058_v41 = vsub.s32 1, %v1268_v36  ;;  %6114 = vrot.lane.b32.xlu1 %v9023_v24, %s8451_s1 }
  0xfb   : > { %7061 = vmatmul.mubr.msk.bf16.gmra.mrb[12].mxu0 %vm981_vm2, %v8896_v35  ;;  %6116 = vrot.lane.b32.xlu0 %v9030_v28, %s8451_s1 }
  0xfc   : > { %1112 = vmatprep.mubr.bf16.mxu0 %v8449_v1  ;;  %2063 = vmatpush1.bf16.msra.mxu0 %v7863_v45 }
  0xfd   : > { %1566 = vmatpush1.bf16.msra.mxu1 %v7835_v43  ;;  %v1270_v43 = vrot.slane %v1265_v40, %v9053_v39  ;;  %2064 = vmatprep.subr.bf16.mxu0 %v7868_v53 }
  0xfe   : > { %1567 = vmatprep.subr.bf16.mxu1 %v7836_v44  ;;  %v1274_v44 = vrot.slane %v1265_v40, %v9058_v41  ;;  %6118 = vrot.lane.b32.xlu1 %v9037_v31, %s8451_s1 }
 0x100   : > { %2065 = vmatpush1.bf16.msra.mxu0 %v7866_v52  ;;  %v7889_v52 = vld [vmem:[%s10512_s6 + $0xa4] ss:$8 sps:$4 sm:$0xff]  }
 0x101   : > { %1568 = vmatpush1.bf16.msra.mxu1 %v7838_v47  ;;  %v1277_v47 = vpack.c.bf16 %v1270_v43, %v1270_v43  ;;  %2066 = vmatprep.subr.bf16.mxu0 %v7871_v2  ;;  %v7881_v43 = vld [vmem:[%s10512_s6 + $0x80] ss:$8 sps:$4 sm:$0xff]  }
 0x102   : > { %1569 = vmatprep.subr.bf16.mxu1 %v7839_v48  ;;  %v1278_v48 = vpack.c.bf16 %v1274_v44, %v1274_v44 }
 0x103   : > { %7062 = vmatmul.mubr.msk.bf16.gmra.mrb[16].mxu0 %vm981_vm2, %v8915_v42 }
 0x104   : > { %1122 = vmatprep.mubr.bf16.mxu0 %v8449_v1  ;;  %2067 = vmatpush1.bf16.msra.mxu0 %v7869_v63 }
 0x105   : > { %1570 = vmatpush1.bf16.msra.mxu1 %v7841_v50  ;;  %v1280_v50 = vpack.i.b16 %v1277_v47, %v1277_v47  ;;  %2068 = vmatprep.subr.bf16.mxu0 %v7874_v5 }
 0x106   : > { %1571 = vmatprep.subr.bf16.mxu1 %v7842_v51  ;;  %v1287_v51 = vpack.i.b16 %v1278_v48, %v1278_v48 }
 0x108   : > { %v9078_v59 = vrot.slane %v1287_v51, %v9053_v39  ;;  %2069 = vmatpush1.bf16.msra.mxu0 %v7872_v10  ;;  %v7884_v51 = vld [vmem:[%s10512_s6 + $0x90] ss:$8 sps:$4 sm:$0xff]  }
 0x109   : > { %1572 = vmatpush1.bf16.msra.mxu1 %v7844_v54  ;;  %v7890_v10 = vld [vmem:[%s10512_s6 + $0xb0] ss:$8 sps:$4 sm:$0xff]  }
 0x10a   : > { %1573 = vmatprep.subr.bf16.mxu1 %v7845_v55 }
 0x10b   : > { %7063 = vmatmul.mubr.msk.bf16.gmra.mrb[20].mxu0 %vm981_vm2, %v8934_v49 }
 0x10c   : > { %1132 = vmatprep.mubr.bf16.mxu0 %v8449_v1 }
 0x10d   : > { %1574 = vmatpush1.bf16.msra.mxu1 %v7847_v57  ;;  %v9075_v57 = vrot.slane %v1280_v50, %v9053_v39 }
 0x10e   : > { %1575 = vmatprep.subr.bf16.mxu1 %v7848_v58 }
 0x111   : > { %1576 = vmatpush1.bf16.msra.mxu1 %v7850_v11  ;;  %v7877_v11 = vld [vmem:[%s10512_s6 + $0x64] ss:$8 sps:$4 sm:$0xff]  }
 0x112   : > { %1577 = vmatprep.subr.bf16.mxu1 %v7851_v14  ;;  %2070 = vmatprep.subr.bf16.mxu0 %v7877_v11  ;;  %v7895_v11 = vld [vmem:[%s10512_s6 + $0xc4] ss:$8 sps:$4 sm:$0xff]  }
 0x113   : > { %7064 = vmatmul.mubr.msk.bf16.gmra.mrb[24].mxu0 %vm981_vm2, %v8953_v56 }
 0x114   : > { %1142 = vmatprep.mubr.bf16.mxu0 %v8449_v1 }
 0x115   : > { %1578 = vmatpush1.bf16.msra.mxu1 %v7853_v15 }
 0x116   : > { %1579 = vmatprep.subr.bf16.mxu1 %v7854_v18 }
 0x119   : > { %1580 = vmatpush1.bf16.msra.mxu1 %v7856_v19  ;;  %v7875_v19 = vld [vmem:[%s10512_s6 + $0x60] ss:$8 sps:$4 sm:$0xff]  }
 0x11a   : > { %2071 = vmatpush1.bf16.msra.mxu0 %v7875_v19  ;;  %v7893_v19 = vld [vmem:[%s10512_s6 + $0xc0] ss:$8 sps:$4 sm:$0xff]  }
 0x11b   : > { %7065 = vmatmul.mubr.msk.bf16.gmra.mrb[28].mxu0 %vm981_vm2, %v8966_v61  ;;  %2072 = vmatprep.subr.bf16.mxu0 %v7880_v25  ;;  %v7898_v25 = vld [vmem:[%s10512_s6 + $0xd4] ss:$8 sps:$4 sm:$0xff]  }
 0x11c   : > { %1152 = vmatprep.mubr.bf16.mxu0 %v8449_v1 }
 0x11e   : > { %2073 = vmatpush1.bf16.msra.mxu0 %v7878_v32  ;;  %v7896_v32 = vld [vmem:[%s10512_s6 + $0xd0] ss:$8 sps:$4 sm:$0xff]  }
 0x11f   : > { %2074 = vmatprep.subr.bf16.mxu0 %v7883_v33  ;;  %v7901_v33 = vld [vmem:[%s10512_s6 + $0xe4] ss:$8 sps:$4 sm:$0xff]  }
 0x122   : > { %2075 = vmatpush1.bf16.msra.mxu0 %v7881_v43  ;;  %v7899_v43 = vld [vmem:[%s10512_s6 + $0xe0] ss:$8 sps:$4 sm:$0xff]  }
 0x123   : > { %7066 = vmatmul.mubr.msk.bf16.gmra.mrb[32].mxu0 %vm981_vm2, %v8973_v0  ;;  %2076 = vmatprep.subr.bf16.mxu0 %v7886_v46 }
 0x124   : > { %1162 = vmatprep.mubr.bf16.mxu0 %v8449_v1 }
 0x126   : > { %2077 = vmatpush1.bf16.msra.mxu0 %v7884_v51 }
 0x127   : > { %2078 = vmatprep.subr.bf16.mxu0 %v7889_v52 }
 0x12b   : > { %7067 = vmatmul.mubr.msk.bf16.gmra.mrb[36].mxu0 %vm981_vm2, %v8980_v4 }
 0x12c   : > { %1172 = vmatprep.mubr.bf16.mxu0 %v8449_v1 }
 0x133   : > { %7068 = vmatmul.mubr.msk.bf16.gmra.mrb[40].mxu0 %vm981_vm2, %v8987_v8 }
 0x134   : > { %1182 = vmatprep.mubr.bf16.mxu0 %v8449_v1 }
 0x13b   : > { %7069 = vmatmul.mubr.msk.bf16.gmra.mrb[44].mxu0 %vm981_vm2, %v8997_v12 }
 0x13c   : > { %1192 = vmatprep.mubr.bf16.mxu0 %v8449_v1 }
 0x143   : > { %7070 = vmatmul.mubr.msk.bf16.gmra.mrb[48].mxu0 %vm981_vm2, %v9016_v21 }
 0x144   : > { %1202 = vmatprep.mubr.bf16.mxu0 %v8449_v1 }
 0x14b   : > { %7071 = vmatmul.mubr.msk.bf16.gmra.mrb[52].mxu0 %vm981_vm2, %v9023_v24 }
 0x14c   : > { %1212 = vmatprep.mubr.bf16.mxu0 %v8449_v1 }
 0x153   : > { %7072 = vmatmul.mubr.msk.bf16.gmra.mrb[56].mxu0 %vm981_vm2, %v9030_v28 }
 0x154   : > { %1222 = vmatprep.mubr.bf16.mxu0 %v8449_v1 }
 0x15b   : > { %7073 = vmatmul.mubr.msk.bf16.gmra.mrb[60].mxu0 %vm981_vm2, %v9037_v31 }
 0x1b6   : > { %v1074_v54 = vpop.f32.mrb[0].mxu0 }
 0x1b7   : > { %v1076_v55 = vpop.f32.mrb[1].mxu0 }
 0x1b8   : > { %v1078_v58 = vpop.f32.mrb[2].mxu0 }
 0x1b9   : > { %v1233_v60 = vpack.c.bf16 %v1078_v58, %v1074_v54  ;;  %v1080_v62 = vpop.f32.mrb[3].mxu0 }
 0x1ba   : > { %v1234_v3 = vpack.c.bf16 %v1080_v62, %v1076_v55  ;;  %v7887_v62 = vld [vmem:[%s10512_s6 + $0xa0] ss:$8 sps:$4 sm:$0xff]  }
 0x1bb   : > { %v1293_v7 = vadd.bf16 %v9075_v57, %v1233_v60  ;;  %2079 = vmatpush1.bf16.msra.mxu0 %v7887_v62 }
 0x1bc   : > { %v1294_v9 = vadd.bf16 %v9078_v59, %v1234_v3  ;;  %v7892_v3 = vld [vmem:[%s10512_s6 + $0xb4] ss:$8 sps:$4 sm:$0xff]  }
 0x1bd   : > { %v1325_v17 = vmax.bf16 %v8449_v1, %v1293_v7  ;;  %2080 = vmatprep.subr.bf16.mxu0 %v7892_v3 }
 0x1be   : > { %v1084_v14 = vpop.f32.mrb[4].mxu0  ;;  %v1326_v15 = vmax.bf16 %v8449_v1, %v1294_v9 }
 0x1bf   : > { %v1086_v16 = vpop.f32.mrb[5].mxu0  ;;  %2081 = vmatpush1.bf16.msra.mxu0 %v7890_v10 }
 0x1c0   : > { %v1088_v18 = vpop.f32.mrb[6].mxu0  ;;  %1581 = vmatprep.mubr.bf16.mxu1 %v1326_v15  ;;  %2082 = vmatprep.subr.bf16.mxu0 %v7895_v11 }
 0x1c1   : > { %v1235_v22 = vpack.c.bf16 %v1088_v18, %v1084_v14  ;;  %v1090_v23 = vpop.f32.mrb[7].mxu0  ;;  %1582 = vmatmul.mubr.bf16.vlgmr.msra.gmra.mrb[0].mxu1 %v1325_v17 }
 0x1c2   : > { %v1236_v26 = vpack.c.bf16 %v1090_v23, %v1086_v16 }
 0x1c3   : > { %v1295_v29 = vadd.bf16 %v9075_v57, %v1235_v22  ;;  %2083 = vmatpush1.bf16.msra.mxu0 %v7893_v19 }
 0x1c4   : > { %v1296_v30 = vadd.bf16 %v9078_v59, %v1236_v26  ;;  %2084 = vmatprep.subr.bf16.mxu0 %v7898_v25 }
 0x1c5   : > { %v1327_v38 = vmax.bf16 %v8449_v1, %v1295_v29 }
 0x1c6   : > { %v1094_v34 = vpop.f32.mrb[8].mxu0  ;;  %v1328_v36 = vmax.bf16 %v8449_v1, %v1296_v30 }
 0x1c7   : > { %v1096_v37 = vpop.f32.mrb[9].mxu0  ;;  %2085 = vmatpush1.bf16.msra.mxu0 %v7896_v32 }
 0x1c8   : > { %v1098_v40 = vpop.f32.mrb[10].mxu0  ;;  %1591 = vmatprep.mubr.bf16.mxu1 %v1328_v36  ;;  %2086 = vmatprep.subr.bf16.mxu0 %v7901_v33 }
 0x1c9   : > { %v1237_v44 = vpack.c.bf16 %v1098_v40, %v1094_v34  ;;  %v1100_v45 = vpop.f32.mrb[11].mxu0  ;;  %1592 = vmatmul.mubr.bf16.gmra.mrb[4].mxu1 %v1327_v38 }
 0x1ca   : > { %v1238_v47 = vpack.c.bf16 %v1100_v45, %v1096_v37 }
 0x1cb   : > { %v1297_v48 = vadd.bf16 %v9075_v57, %v1237_v44  ;;  %2087 = vmatpush1.bf16.msra.mxu0 %v7899_v43 }
 0x1cc   : > { %v1298_v50 = vadd.bf16 %v9078_v59, %v1238_v47 }
 0x1cd   : > { %v1329_v58 = vmax.bf16 %v8449_v1, %v1297_v48 }
 0x1ce   : > { %v1104_v53 = vpop.f32.mrb[12].mxu0  ;;  %v1330_v54 = vmax.bf16 %v8449_v1, %v1298_v50 }
 0x1cf   : > { %v1106_v55 = vpop.f32.mrb[13].mxu0 }
 0x1d0   : > { %v1108_v60 = vpop.f32.mrb[14].mxu0  ;;  %1601 = vmatprep.mubr.bf16.mxu1 %v1330_v54 }
 0x1d1   : > { %v1239_v63 = vpack.c.bf16 %v1108_v60, %v1104_v53  ;;  %v1110_v2 = vpop.f32.mrb[15].mxu0  ;;  %1602 = vmatmul.mubr.bf16.gmra.mrb[8].mxu1 %v1329_v58 }
 0x1d2   : > { %v1240_v5 = vpack.c.bf16 %v1110_v2, %v1106_v55 }
 0x1d3   : > { %v1299_v7 = vadd.bf16 %v9075_v57, %v1239_v63 }
 0x1d4   : > { %v1300_v9 = vadd.bf16 %v9078_v59, %v1240_v5 }
 0x1d5   : > { %v1331_v17 = vmax.bf16 %v8449_v1, %v1299_v7 }
 0x1d6   : > { %v1114_v14 = vpop.f32.mrb[16].mxu0  ;;  %v1332_v15 = vmax.bf16 %v8449_v1, %v1300_v9 }
 0x1d7   : > { %v1116_v16 = vpop.f32.mrb[17].mxu0 }
 0x1d8   : > { %v1118_v18 = vpop.f32.mrb[18].mxu0  ;;  %1611 = vmatprep.mubr.bf16.mxu1 %v1332_v15 }
 0x1d9   : > { %v1241_v22 = vpack.c.bf16 %v1118_v18, %v1114_v14  ;;  %v1120_v23 = vpop.f32.mrb[19].mxu0  ;;  %1612 = vmatmul.mubr.bf16.gmra.mrb[12].mxu1 %v1331_v17 }
 0x1da   : > { %v1242_v26 = vpack.c.bf16 %v1120_v23, %v1116_v16 }
 0x1db   : > { %v1301_v29 = vadd.bf16 %v9075_v57, %v1241_v22 }
 0x1dc   : > { %v1302_v30 = vadd.bf16 %v9078_v59, %v1242_v26 }
 0x1dd   : > { %v1333_v38 = vmax.bf16 %v8449_v1, %v1301_v29 }
 0x1de   : > { %v1124_v34 = vpop.f32.mrb[20].mxu0  ;;  %v1334_v36 = vmax.bf16 %v8449_v1, %v1302_v30 }
 0x1df   : > { %v1126_v37 = vpop.f32.mrb[21].mxu0 }
 0x1e0   : > { %v1128_v40 = vpop.f32.mrb[22].mxu0  ;;  %1621 = vmatprep.mubr.bf16.mxu1 %v1334_v36 }
 0x1e1   : > { %v1243_v44 = vpack.c.bf16 %v1128_v40, %v1124_v34  ;;  %v1130_v45 = vpop.f32.mrb[23].mxu0  ;;  %1622 = vmatmul.mubr.bf16.gmra.mrb[16].mxu1 %v1333_v38 }
 0x1e2   : > { %v1244_v46 = vpack.c.bf16 %v1130_v45, %v1126_v37 }
 0x1e3   : > { %v1303_v47 = vadd.bf16 %v9075_v57, %v1243_v44 }
 0x1e4   : > { %v1304_v48 = vadd.bf16 %v9078_v59, %v1244_v46 }
 0x1e5   : > { %v1335_v53 = vmax.bf16 %v8449_v1, %v1303_v47 }
 0x1e6   : > { %v1134_v50 = vpop.f32.mrb[24].mxu0  ;;  %v1336_v51 = vmax.bf16 %v8449_v1, %v1304_v48 }
 0x1e7   : > { %v1136_v52 = vpop.f32.mrb[25].mxu0 }
 0x1e8   : > { %v1138_v54 = vpop.f32.mrb[26].mxu0  ;;  %1631 = vmatprep.mubr.bf16.mxu1 %v1336_v51 }
 0x1e9   : > { %v1245_v55 = vpack.c.bf16 %v1138_v54, %v1134_v50  ;;  %v1140_v58 = vpop.f32.mrb[27].mxu0  ;;  %1632 = vmatmul.mubr.bf16.gmra.mrb[20].mxu1 %v1335_v53 }
 0x1ea   : > { %v1246_v60 = vpack.c.bf16 %v1140_v58, %v1136_v52 }
 0x1eb   : > { %v1305_v62 = vadd.bf16 %v9075_v57, %v1245_v55 }
 0x1ec   : > { %v1306_v63 = vadd.bf16 %v9078_v59, %v1246_v60 }
 0x1ed   : > { %v1337_v7 = vmax.bf16 %v8449_v1, %v1305_v62 }
 0x1ee   : > { %v1144_v2 = vpop.f32.mrb[28].mxu0  ;;  %v1338_v3 = vmax.bf16 %v8449_v1, %v1306_v63 }
 0x1ef   : > { %v1146_v5 = vpop.f32.mrb[29].mxu0 }
 0x1f0   : > { %v1148_v9 = vpop.f32.mrb[30].mxu0  ;;  %1641 = vmatprep.mubr.bf16.mxu1 %v1338_v3 }
 0x1f1   : > { %v1247_v10 = vpack.c.bf16 %v1148_v9, %v1144_v2  ;;  %v1150_v11 = vpop.f32.mrb[31].mxu0  ;;  %1642 = vmatmul.mubr.bf16.gmra.mrb[24].mxu1 %v1337_v7 }
 0x1f2   : > { %v1248_v14 = vpack.c.bf16 %v1150_v11, %v1146_v5 }
 0x1f3   : > { %v1307_v15 = vadd.bf16 %v9075_v57, %v1247_v10 }
 0x1f4   : > { %v1308_v16 = vadd.bf16 %v9078_v59, %v1248_v14 }
 0x1f5   : > { %v1339_v22 = vmax.bf16 %v8449_v1, %v1307_v15 }
 0x1f6   : > { %v1154_v17 = vpop.f32.mrb[32].mxu0  ;;  %v1340_v18 = vmax.bf16 %v8449_v1, %v1308_v16 }
 0x1f7   : > { %v1156_v19 = vpop.f32.mrb[33].mxu0 }
 0x1f8   : > { %v1158_v23 = vpop.f32.mrb[34].mxu0  ;;  %1651 = vmatprep.mubr.bf16.mxu1 %v1340_v18 }
 0x1f9   : > { %v1249_v25 = vpack.c.bf16 %v1158_v23, %v1154_v17  ;;  %v1160_v26 = vpop.f32.mrb[35].mxu0  ;;  %1652 = vmatmul.mubr.bf16.gmra.mrb[28].mxu1 %v1339_v22 }
 0x1fa   : > { %v1250_v29 = vpack.c.bf16 %v1160_v26, %v1156_v19 }
 0x1fb   : > { %v1309_v30 = vadd.bf16 %v9075_v57, %v1249_v25  ;;  %v7904_v25 = vld [vmem:[%s10512_s6 + $0xf4] ss:$8 sps:$4 sm:$0xff]  }
 0x1fc   : > { %v1310_v32 = vadd.bf16 %v9078_v59, %v1250_v29  ;;  %v7902_v29 = vld [vmem:[%s10512_s6 + $0xf0] ss:$8 sps:$4 sm:$0xff]   ;;  %2088 = vmatprep.subr.bf16.mxu0 %v7904_v25  ;;  %v7911_v25 = vld [vmem:[#allocation3 + $0x20] ss:$8 sps:$4 sm:$0xff]  }
 0x1fd   : > { %v1341_v37 = vmax.bf16 %v8449_v1, %v1309_v30  ;;  %2089 = vmatpush1.bf16.msra.mxu0 %v7902_v29 }
 0x1fe   : > { %v1164_v33 = vpop.f32.mrb[36].mxu0  ;;  %v1342_v34 = vmax.bf16 %v8449_v1, %v1310_v32 }
 0x1ff   : > { %v1166_v36 = vpop.f32.mrb[37].mxu0 }
 0x200   : > { %v1168_v38 = vpop.f32.mrb[38].mxu0  ;;  %1661 = vmatprep.mubr.bf16.mxu1 %v1342_v34 }
 0x201   : > { %v1251_v40 = vpack.c.bf16 %v1168_v38, %v1164_v33  ;;  %v1170_v43 = vpop.f32.mrb[39].mxu0  ;;  %1662 = vmatmul.mubr.bf16.gmra.mrb[32].mxu1 %v1341_v37 }
 0x202   : > { %v1252_v44 = vpack.c.bf16 %v1170_v43, %v1166_v36 }
 0x203   : > { %v1311_v45 = vadd.bf16 %v9075_v57, %v1251_v40 }
 0x204   : > { %v1312_v46 = vadd.bf16 %v9078_v59, %v1252_v44 }
 0x205   : > { %v1343_v51 = vmax.bf16 %v8449_v1, %v1311_v45 }
 0x206   : > { %v1174_v47 = vpop.f32.mrb[40].mxu0  ;;  %v1344_v48 = vmax.bf16 %v8449_v1, %v1312_v46 }
 0x207   : > { %v1176_v50 = vpop.f32.mrb[41].mxu0 }
 0x208   : > { %v1178_v52 = vpop.f32.mrb[42].mxu0  ;;  %1671 = vmatprep.mubr.bf16.mxu1 %v1344_v48 }
 0x209   : > { %v1253_v53 = vpack.c.bf16 %v1178_v52, %v1174_v47  ;;  %v1180_v54 = vpop.f32.mrb[43].mxu0  ;;  %1672 = vmatmul.mubr.bf16.gmra.mrb[36].mxu1 %v1343_v51 }
 0x20a   : > { %v1254_v55 = vpack.c.bf16 %v1180_v54, %v1176_v50 }
 0x20b   : > { %v1313_v58 = vadd.bf16 %v9075_v57, %v1253_v53 }
 0x20c   : > { %v1314_v60 = vadd.bf16 %v9078_v59, %v1254_v55 }
 0x20d   : > { %v1345_v3 = vmax.bf16 %v8449_v1, %v1313_v58 }
 0x20e   : > { %v1184_v62 = vpop.f32.mrb[44].mxu0  ;;  %v1346_v63 = vmax.bf16 %v8449_v1, %v1314_v60 }
 0x20f   : > { %v1186_v2 = vpop.f32.mrb[45].mxu0 }
 0x210   : > { %v1188_v5 = vpop.f32.mrb[46].mxu0  ;;  %1681 = vmatprep.mubr.bf16.mxu1 %v1346_v63 }
 0x211   : > { %v1255_v7 = vpack.c.bf16 %v1188_v5, %v1184_v62  ;;  %v1190_v9 = vpop.f32.mrb[47].mxu0  ;;  %1682 = vmatmul.mubr.bf16.gmra.mrb[40].mxu1 %v1345_v3 }
 0x212   : > { %v1256_v10 = vpack.c.bf16 %v1190_v9, %v1186_v2 }
 0x213   : > { %v1315_v11 = vadd.bf16 %v9075_v57, %v1255_v7 }
 0x214   : > { %v1316_v14 = vadd.bf16 %v9078_v59, %v1256_v10 }
 0x215   : > { %v1347_v18 = vmax.bf16 %v8449_v1, %v1315_v11 }
 0x216   : > { %v1194_v15 = vpop.f32.mrb[48].mxu0  ;;  %v1348_v16 = vmax.bf16 %v8449_v1, %v1316_v14 }
 0x217   : > { %v1196_v17 = vpop.f32.mrb[49].mxu0 }
 0x218   : > { %v1198_v19 = vpop.f32.mrb[50].mxu0  ;;  %1691 = vmatprep.mubr.bf16.mxu1 %v1348_v16 }
 0x219   : > { %v1257_v22 = vpack.c.bf16 %v1198_v19, %v1194_v15  ;;  %v1200_v23 = vpop.f32.mrb[51].mxu0  ;;  %1692 = vmatmul.mubr.bf16.gmra.mrb[44].mxu1 %v1347_v18  ;;  %v7907_v18 = vld [vmem:[#allocation3 + $0x4] ss:$8 sps:$4 sm:$0xff]   ;;  %v7908_v19 = vld [vmem:[#allocation3 + $0x10] ss:$8 sps:$4 sm:$0xff]  }
 0x21a   : > { %v1258_v26 = vpack.c.bf16 %v1200_v23, %v1196_v17  ;;  %v7905_v17 = vld [vmem:[#allocation3] ss:$8 sps:$4 sm:$0xff]   ;;  %2567 = vmatprep.subr.bf16.mxu1 %v7907_v18 }
 0x21b   : > { %v1317_v30 = vadd.bf16 %v9075_v57, %v1257_v22  ;;  %2568 = vmatpush1.bf16.msra.mxu1 %v7905_v17  ;;  %v7910_v22 = vld [vmem:[#allocation3 + $0x14] ss:$8 sps:$4 sm:$0xff]  }
 0x21c   : > { %v1318_v32 = vadd.bf16 %v9078_v59, %v1258_v26  ;;  %v1774_v23 = vld [vmem:[%s10514_s21] sm:$0x3]  ;;  %2569 = vmatprep.subr.bf16.mxu1 %v7910_v22  ;;  %v7913_v26 = vld [vmem:[#allocation3 + $0x24] ss:$8 sps:$4 sm:$0xff]   ;;  %s10520_s21 = sld [smem:[#allocation32_spill]] }
 0x21d   : > { %v1349_v37 = vmax.bf16 %v8449_v1, %v1317_v30 }
 0x21e   : > { %v1204_v33 = vpop.f32.mrb[52].mxu0  ;;  %v1350_v34 = vmax.bf16 %v8449_v1, %v1318_v32 }
 0x21f   : > { %v1206_v36 = vpop.f32.mrb[53].mxu0  ;;  %2570 = vmatpush1.bf16.msra.mxu1 %v7908_v19 }
 0x220   : > { %v1208_v38 = vpop.f32.mrb[54].mxu0  ;;  %1701 = vmatprep.mubr.bf16.mxu1 %v1350_v34  ;;  %2571 = vmatprep.subr.bf16.mxu1 %v7913_v26  ;;  %v7914_v34 = vld [vmem:[#allocation3 + $0x30] ss:$8 sps:$4 sm:$0xff]   ;;  %v7934_v26 = vld [vmem:[#allocation3 + $0x94] ss:$8 sps:$4 sm:$0xff]  }
 0x221   : > { %v1259_v40 = vpack.c.bf16 %v1208_v38, %v1204_v33  ;;  %v1210_v43 = vpop.f32.mrb[55].mxu0  ;;  %1702 = vmatmul.mubr.bf16.gmra.mrb[48].mxu1 %v1349_v37 }
 0x222   : > { %v1260_v44 = vpack.c.bf16 %v1210_v43, %v1206_v36  ;;  %v7916_v36 = vld [vmem:[#allocation3 + $0x34] ss:$8 sps:$4 sm:$0xff]  }
 0x223   : > { %v1319_v45 = vadd.bf16 %v9075_v57, %v1259_v40  ;;  %2572 = vmatpush1.bf16.msra.mxu1 %v7911_v25 }
 0x224   : > { %v1320_v46 = vadd.bf16 %v9078_v59, %v1260_v44  ;;  %2573 = vmatprep.subr.bf16.mxu1 %v7916_v36 }
 0x225   : > { %v1351_v51 = vmax.bf16 %v8449_v1, %v1319_v45 }
 0x226   : > { %v1214_v47 = vpop.f32.mrb[56].mxu0  ;;  %v1352_v48 = vmax.bf16 %v8449_v1, %v1320_v46 }
 0x227   : > { %v1216_v50 = vpop.f32.mrb[57].mxu0  ;;  %2574 = vmatpush1.bf16.msra.mxu1 %v7914_v34  ;;  %v7937_v34 = vld [vmem:[#allocation3 + $0xa4] ss:$8 sps:$4 sm:$0xff]  }
 0x228   : > { %v1218_v52 = vpop.f32.mrb[58].mxu0  ;;  %1711 = vmatprep.mubr.bf16.mxu1 %v1352_v48  ;;  %v7919_v48 = vld [vmem:[#allocation3 + $0x44] ss:$8 sps:$4 sm:$0xff]  }
 0x229   : > { %v1261_v53 = vpack.c.bf16 %v1218_v52, %v1214_v47  ;;  %v1220_v54 = vpop.f32.mrb[59].mxu0  ;;  %1712 = vmatmul.mubr.bf16.gmra.mrb[52].mxu1 %v1351_v51  ;;  %v7917_v47 = vld [vmem:[#allocation3 + $0x40] ss:$8 sps:$4 sm:$0xff]   ;;  %v7922_v51 = vld [vmem:[#allocation3 + $0x54] ss:$8 sps:$4 sm:$0xff]   ;;  %2575 = vmatprep.subr.bf16.mxu1 %v7919_v48 }
 0x22a   : > { %v1262_v55 = vpack.c.bf16 %v1220_v54, %v1216_v50  ;;  %v7920_v54 = vld [vmem:[#allocation3 + $0x50] ss:$8 sps:$4 sm:$0xff]  }
 0x22b   : > { %v1321_v58 = vadd.bf16 %v9075_v57, %v1261_v53  ;;  %2576 = vmatpush1.bf16.msra.mxu1 %v7917_v47 }
 0x22c   : > { %v1322_v60 = vadd.bf16 %v9078_v59, %v1262_v55  ;;  %2577 = vmatprep.subr.bf16.mxu1 %v7922_v51  ;;  %v7925_v55 = vld [vmem:[#allocation3 + $0x64] ss:$8 sps:$4 sm:$0xff]  }
 0x22d   : > { %v1353_v3 = vmax.bf16 %v8449_v1, %v1321_v58 }
 0x22e   : > { %v1224_v62 = vpop.f32.mrb[60].mxu0  ;;  %v1354_v63 = vmax.bf16 %v8449_v1, %v1322_v60 }
 0x22f   : > { %v1226_v2 = vpop.f32.mrb[61].mxu0  ;;  %2578 = vmatpush1.bf16.msra.mxu1 %v7920_v54  ;;  %v7938_v54 = vld [vmem:[#allocation3 + $0xb0] ss:$8 sps:$4 sm:$0xff]  }
 0x230   : > { %v1228_v5 = vpop.f32.mrb[62].mxu0  ;;  %1721 = vmatprep.mubr.bf16.mxu1 %v1354_v63  ;;  %2579 = vmatprep.subr.bf16.mxu1 %v7925_v55  ;;  %v7943_v55 = vld [vmem:[#allocation3 + $0xc4] ss:$8 sps:$4 sm:$0xff]  }
 0x231   : > { %v1263_v7 = vpack.c.bf16 %v1228_v5, %v1224_v62  ;;  %v1230_v9 = vpop.f32.mrb[63].mxu0  ;;  %1722 = vmatmul.mubr.bf16.gmra.mrb[56].mxu1 %v1353_v3  ;;  %v7923_v3 = vld [vmem:[#allocation3 + $0x60] ss:$8 sps:$4 sm:$0xff]  }
 0x232   : > { %v1264_v10 = vpack.c.bf16 %v1230_v9, %v1226_v2  ;;  %v7928_v9 = vld [vmem:[#allocation3 + $0x74] ss:$8 sps:$4 sm:$0xff]  }
 0x233   : > { %v1323_v11 = vadd.bf16 %v9075_v57, %v1263_v7  ;;  %v1779_v57 = vrot.slane %v1774_v23, %v9053_v39  ;;  %2580 = vmatpush1.bf16.msra.mxu1 %v7923_v3  ;;  %v7941_v3 = vld [vmem:[#allocation3 + $0xc0] ss:$8 sps:$4 sm:$0xff]  }
 0x234   : > { %v1324_v14 = vadd.bf16 %v9078_v59, %v1264_v10  ;;  %v1783_v59 = vrot.slane %v1774_v23, %v9058_v41  ;;  %2581 = vmatprep.subr.bf16.mxu1 %v7928_v9  ;;  %v7946_v9 = vld [vmem:[#allocation3 + $0xd4] ss:$8 sps:$4 sm:$0xff]  }
 0x235   : > { %v1355_v16 = vmax.bf16 %v8449_v1, %v1323_v11  ;;  %v1786_v29 = vpack.c.bf16 %v1779_v57, %v1779_v57  ;;  %v7929_v57 = vld [vmem:[#allocation3 + $0x80] ss:$8 sps:$4 sm:$0xff]  }
 0x236   : > { %v1356_v15 = vmax.bf16 %v8449_v1, %v1324_v14  ;;  %v1787_v30 = vpack.c.bf16 %v1783_v59, %v1783_v59 }
 0x237   : > { %v1789_v32 = vpack.i.b16 %v1786_v29, %v1786_v29 }
 0x238   : > { %1731 = vmatprep.mubr.bf16.mxu1 %v1356_v15  ;;  %v1796_v33 = vpack.i.b16 %v1787_v30, %v1787_v30  ;;  %v7926_v15 = vld [vmem:[#allocation3 + $0x70] ss:$8 sps:$4 sm:$0xff]  }
 0x239   : > { %1732 = vmatmul.mubr.bf16.gmra.mrb[60].mxu1 %v1355_v16  ;;  %v9222_v40 = vrot.slane %v1789_v32, %v9053_v39  ;;  %v7931_v16 = vld [vmem:[#allocation3 + $0x84] ss:$8 sps:$4 sm:$0xff]  }
 0x23a   : > { %v9225_v44 = vrot.slane %v1796_v33, %v9053_v39  ;;  %2582 = vmatpush1.bf16.msra.mxu1 %v7926_v15  ;;  %v7932_v33 = vld [vmem:[#allocation3 + $0x90] ss:$8 sps:$4 sm:$0xff]  }
 0x23b   : > { %2583 = vmatprep.subr.bf16.mxu1 %v7931_v16  ;;  %v7944_v15 = vld [vmem:[#allocation3 + $0xd0] ss:$8 sps:$4 sm:$0xff]   ;;  %v7949_v16 = vld [vmem:[#allocation3 + $0xe4] ss:$8 sps:$4 sm:$0xff]  }
 0x23e   : > { %2584 = vmatpush1.bf16.msra.mxu1 %v7929_v57  ;;  %v7947_v57 = vld [vmem:[#allocation3 + $0xe0] ss:$8 sps:$4 sm:$0xff]  }
 0x23f   : > { %2585 = vmatprep.subr.bf16.mxu1 %v7934_v26 }
 0x242   : > { %2586 = vmatpush1.bf16.msra.mxu1 %v7932_v33 }
 0x243   : > { %2587 = vmatprep.subr.bf16.mxu1 %v7937_v34 }
 0x294   : > { %v1583_v37 = vpop.f32.mrb[0].mxu1 }
 0x295   : > { %v1585_v38 = vpop.f32.mrb[1].mxu1 }
 0x296   : > { %v1587_v43 = vpop.f32.mrb[2].mxu1 }
 0x297   : > { %v1742_v45 = vpack.c.bf16 %v1587_v43, %v1583_v37  ;;  %v1589_v46 = vpop.f32.mrb[3].mxu1 }
 0x298   : > { %v1743_v50 = vpack.c.bf16 %v1589_v46, %v1585_v38  ;;  %v7935_v46 = vld [vmem:[#allocation3 + $0xa0] ss:$8 sps:$4 sm:$0xff]  }
 0x299   : > { %v1802_v52 = vadd.bf16 %v9222_v40, %v1742_v45  ;;  %2588 = vmatpush1.bf16.msra.mxu1 %v7935_v46 }
 0x29a   : > { %v1803_v53 = vadd.bf16 %v9225_v44, %v1743_v50  ;;  %v7940_v50 = vld [vmem:[#allocation3 + $0xb4] ss:$8 sps:$4 sm:$0xff]  }
 0x29b   : > { %v1834_v62 = vmax.bf16 %v8449_v1, %v1802_v52  ;;  %2589 = vmatprep.subr.bf16.mxu1 %v7940_v50 }
 0x29c   : > { %v1593_v58 = vpop.f32.mrb[4].mxu1  ;;  %v1835_v60 = vmax.bf16 %v8449_v1, %v1803_v53 }
 0x29d   : > { %v1595_v63 = vpop.f32.mrb[5].mxu1  ;;  %2590 = vmatpush1.bf16.msra.mxu1 %v7938_v54 }
 0x29e   : > { %v1597_v2 = vpop.f32.mrb[6].mxu1  ;;  %2090 = vmatprep.mubr.bf16.mxu0 %v1835_v60  ;;  %2591 = vmatprep.subr.bf16.mxu1 %v7943_v55 }
 0x29f   : > { %v1744_v5 = vpack.c.bf16 %v1597_v2, %v1593_v58  ;;  %v1599_v7 = vpop.f32.mrb[7].mxu1  ;;  %2091 = vmatmul.mubr.bf16.vlgmr.msra.gmra.mrb[64].mxu0 %v1834_v62 }
 0x2a0   : > { %v1745_v10 = vpack.c.bf16 %v1599_v7, %v1595_v63 }
 0x2a1   : > { %v1804_v11 = vadd.bf16 %v9222_v40, %v1744_v5  ;;  %2592 = vmatpush1.bf16.msra.mxu1 %v7941_v3 }
 0x2a2   : > { %v1805_v14 = vadd.bf16 %v9225_v44, %v1745_v10  ;;  %2593 = vmatprep.subr.bf16.mxu1 %v7946_v9 }
 0x2a3   : > { %v1836_v22 = vmax.bf16 %v8449_v1, %v1804_v11 }
 0x2a4   : > { %v1603_v17 = vpop.f32.mrb[8].mxu1  ;;  %v1837_v18 = vmax.bf16 %v8449_v1, %v1805_v14 }
 0x2a5   : > { %v1605_v19 = vpop.f32.mrb[9].mxu1  ;;  %2594 = vmatpush1.bf16.msra.mxu1 %v7944_v15 }
 0x2a6   : > { %v1607_v23 = vpop.f32.mrb[10].mxu1  ;;  %2100 = vmatprep.mubr.bf16.mxu0 %v1837_v18  ;;  %2595 = vmatprep.subr.bf16.mxu1 %v7949_v16 }
 0x2a7   : > { %v1746_v59 = vpack.c.bf16 %v1607_v23, %v1603_v17  ;;  %v1609_v25 = vpop.f32.mrb[11].mxu1  ;;  %2101 = vmatmul.mubr.bf16.gmra.mrb[68].mxu0 %v1836_v22 }
 0x2a8   : > { %v1747_v29 = vpack.c.bf16 %v1609_v25, %v1605_v19 }
 0x2a9   : > { %v1806_v30 = vadd.bf16 %v9222_v40, %v1746_v59  ;;  %2596 = vmatpush1.bf16.msra.mxu1 %v7947_v57 }
 0x2aa   : > { %v1807_v32 = vadd.bf16 %v9225_v44, %v1747_v29 }
 0x2ab   : > { %v1838_v43 = vmax.bf16 %v8449_v1, %v1806_v30 }
 0x2ac   : > { %v1613_v36 = vpop.f32.mrb[12].mxu1  ;;  %v1839_v37 = vmax.bf16 %v8449_v1, %v1807_v32 }
 0x2ad   : > { %v1615_v38 = vpop.f32.mrb[13].mxu1 }
 0x2ae   : > { %v1617_v45 = vpop.f32.mrb[14].mxu1  ;;  %2110 = vmatprep.mubr.bf16.mxu0 %v1839_v37 }
 0x2af   : > { %v1748_v47 = vpack.c.bf16 %v1617_v45, %v1613_v36  ;;  %v1619_v48 = vpop.f32.mrb[15].mxu1  ;;  %2111 = vmatmul.mubr.bf16.gmra.mrb[72].mxu0 %v1838_v43 }
 0x2b0   : > { %v1749_v51 = vpack.c.bf16 %v1619_v48, %v1615_v38 }
 0x2b1   : > { %v1808_v52 = vadd.bf16 %v9222_v40, %v1748_v47 }
 0x2b2   : > { %v1809_v53 = vadd.bf16 %v9225_v44, %v1749_v51 }
 0x2b3   : > { %v1840_v63 = vmax.bf16 %v8449_v1, %v1808_v52 }
 0x2b4   : > { %v1623_v58 = vpop.f32.mrb[16].mxu1  ;;  %v1841_v60 = vmax.bf16 %v8449_v1, %v1809_v53 }
 0x2b5   : > { %v1625_v62 = vpop.f32.mrb[17].mxu1 }
 0x2b6   : > { %v1627_v2 = vpop.f32.mrb[18].mxu1  ;;  %2120 = vmatprep.mubr.bf16.mxu0 %v1841_v60 }
 0x2b7   : > { %v1750_v5 = vpack.c.bf16 %v1627_v2, %v1623_v58  ;;  %v1629_v7 = vpop.f32.mrb[19].mxu1  ;;  %2121 = vmatmul.mubr.bf16.gmra.mrb[76].mxu0 %v1840_v63 }
 0x2b8   : > { %v1751_v10 = vpack.c.bf16 %v1629_v7, %v1625_v62 }
 0x2b9   : > { %v1810_v11 = vadd.bf16 %v9222_v40, %v1750_v5 }
 0x2ba   : > { %v1811_v14 = vadd.bf16 %v9225_v44, %v1751_v10 }
 0x2bb   : > { %v1842_v22 = vmax.bf16 %v8449_v1, %v1810_v11 }
 0x2bc   : > { %v1633_v17 = vpop.f32.mrb[20].mxu1  ;;  %v1843_v18 = vmax.bf16 %v8449_v1, %v1811_v14 }
 0x2bd   : > { %v1635_v19 = vpop.f32.mrb[21].mxu1 }
 0x2be   : > { %v1637_v23 = vpop.f32.mrb[22].mxu1  ;;  %2130 = vmatprep.mubr.bf16.mxu0 %v1843_v18 }
 0x2bf   : > { %v1752_v59 = vpack.c.bf16 %v1637_v23, %v1633_v17  ;;  %v1639_v25 = vpop.f32.mrb[23].mxu1  ;;  %2131 = vmatmul.mubr.bf16.gmra.mrb[80].mxu0 %v1842_v22 }
 0x2c0   : > { %v1753_v26 = vpack.c.bf16 %v1639_v25, %v1635_v19 }
 0x2c1   : > { %v1812_v29 = vadd.bf16 %v9222_v40, %v1752_v59 }
 0x2c2   : > { %v1813_v30 = vadd.bf16 %v9225_v44, %v1753_v26 }
 0x2c3   : > { %v1844_v36 = vmax.bf16 %v8449_v1, %v1812_v29 }
 0x2c4   : > { %v1643_v32 = vpop.f32.mrb[24].mxu1  ;;  %v1845_v33 = vmax.bf16 %v8449_v1, %v1813_v30 }
 0x2c5   : > { %v1645_v34 = vpop.f32.mrb[25].mxu1 }
 0x2c6   : > { %v1647_v37 = vpop.f32.mrb[26].mxu1  ;;  %2140 = vmatprep.mubr.bf16.mxu0 %v1845_v33 }
 0x2c7   : > { %v1754_v38 = vpack.c.bf16 %v1647_v37, %v1643_v32  ;;  %v1649_v43 = vpop.f32.mrb[27].mxu1  ;;  %2141 = vmatmul.mubr.bf16.gmra.mrb[84].mxu0 %v1844_v36 }
 0x2c8   : > { %v1755_v45 = vpack.c.bf16 %v1649_v43, %v1645_v34 }
 0x2c9   : > { %v1814_v46 = vadd.bf16 %v9222_v40, %v1754_v38 }
 0x2ca   : > { %v1815_v47 = vadd.bf16 %v9225_v44, %v1755_v45 }
 0x2cb   : > { %v1846_v52 = vmax.bf16 %v8449_v1, %v1814_v46 }
 0x2cc   : > { %v1653_v48 = vpop.f32.mrb[28].mxu1  ;;  %v1847_v50 = vmax.bf16 %v8449_v1, %v1815_v47 }
 0x2cd   : > { %v1655_v51 = vpop.f32.mrb[29].mxu1 }
 0x2ce   : > { %v1657_v53 = vpop.f32.mrb[30].mxu1  ;;  %2150 = vmatprep.mubr.bf16.mxu0 %v1847_v50 }
 0x2cf   : > { %v1756_v54 = vpack.c.bf16 %v1657_v53, %v1653_v48  ;;  %v1659_v55 = vpop.f32.mrb[31].mxu1  ;;  %2151 = vmatmul.mubr.bf16.gmra.mrb[88].mxu0 %v1846_v52 }
 0x2d0   : > { %v1757_v58 = vpack.c.bf16 %v1659_v55, %v1655_v51 }
 0x2d1   : > { %v1816_v60 = vadd.bf16 %v9222_v40, %v1756_v54 }
 0x2d2   : > { %v1817_v62 = vadd.bf16 %v9225_v44, %v1757_v58 }
 0x2d3   : > { %v1848_v5 = vmax.bf16 %v8449_v1, %v1816_v60 }
 0x2d4   : > { %v1663_v63 = vpop.f32.mrb[32].mxu1  ;;  %v1849_v2 = vmax.bf16 %v8449_v1, %v1817_v62 }
 0x2d5   : > { %v1665_v3 = vpop.f32.mrb[33].mxu1 }
 0x2d6   : > { %v1667_v7 = vpop.f32.mrb[34].mxu1  ;;  %2160 = vmatprep.mubr.bf16.mxu0 %v1849_v2 }
 0x2d7   : > { %v1758_v9 = vpack.c.bf16 %v1667_v7, %v1663_v63  ;;  %v1669_v10 = vpop.f32.mrb[35].mxu1  ;;  %2161 = vmatmul.mubr.bf16.gmra.mrb[92].mxu0 %v1848_v5 }
 0x2d8   : > { %v1759_v11 = vpack.c.bf16 %v1669_v10, %v1665_v3 }
 0x2d9   : > { %v1818_v14 = vadd.bf16 %v9222_v40, %v1758_v9  ;;  %v7952_v9 = vld [vmem:[#allocation3 + $0xf4] ss:$8 sps:$4 sm:$0xff]  }
 0x2da   : > { %v1819_v15 = vadd.bf16 %v9225_v44, %v1759_v11  ;;  %v7950_v11 = vld [vmem:[#allocation3 + $0xf0] ss:$8 sps:$4 sm:$0xff]   ;;  %2597 = vmatprep.subr.bf16.mxu1 %v7952_v9  ;;  %v7959_v9 = vld [vmem:[#allocation5 + $0x20] ss:$8 sps:$4 sm:$0xff]  }
 0x2db   : > { %v1850_v19 = vmax.bf16 %v8449_v1, %v1818_v14  ;;  %2598 = vmatpush1.bf16.msra.mxu1 %v7950_v11 }
 0x2dc   : > { %v1673_v16 = vpop.f32.mrb[36].mxu1  ;;  %v1851_v17 = vmax.bf16 %v8449_v1, %v1819_v15 }
 0x2dd   : > { %v1675_v18 = vpop.f32.mrb[37].mxu1 }
 0x2de   : > { %v1677_v22 = vpop.f32.mrb[38].mxu1  ;;  %2170 = vmatprep.mubr.bf16.mxu0 %v1851_v17 }
 0x2df   : > { %v1760_v23 = vpack.c.bf16 %v1677_v22, %v1673_v16  ;;  %v1679_v57 = vpop.f32.mrb[39].mxu1  ;;  %2171 = vmatmul.mubr.bf16.gmra.mrb[96].mxu0 %v1850_v19 }
 0x2e0   : > { %v1761_v59 = vpack.c.bf16 %v1679_v57, %v1675_v18 }
 0x2e1   : > { %v1820_v25 = vadd.bf16 %v9222_v40, %v1760_v23 }
 0x2e2   : > { %v1821_v26 = vadd.bf16 %v9225_v44, %v1761_v59 }
 0x2e3   : > { %v1852_v33 = vmax.bf16 %v8449_v1, %v1820_v25 }
 0x2e4   : > { %v1683_v29 = vpop.f32.mrb[40].mxu1  ;;  %v1853_v30 = vmax.bf16 %v8449_v1, %v1821_v26 }
 0x2e5   : > { %v1685_v32 = vpop.f32.mrb[41].mxu1 }
 0x2e6   : > { %v1687_v34 = vpop.f32.mrb[42].mxu1  ;;  %2180 = vmatprep.mubr.bf16.mxu0 %v1853_v30 }
 0x2e7   : > { %v1762_v36 = vpack.c.bf16 %v1687_v34, %v1683_v29  ;;  %v1689_v37 = vpop.f32.mrb[43].mxu1  ;;  %2181 = vmatmul.mubr.bf16.gmra.mrb[100].mxu0 %v1852_v33 }
 0x2e8   : > { %v1763_v38 = vpack.c.bf16 %v1689_v37, %v1685_v32 }
 0x2e9   : > { %v1822_v43 = vadd.bf16 %v9222_v40, %v1762_v36 }
 0x2ea   : > { %v1823_v45 = vadd.bf16 %v9225_v44, %v1763_v38 }
 0x2eb   : > { %v1854_v50 = vmax.bf16 %v8449_v1, %v1822_v43 }
 0x2ec   : > { %v1693_v46 = vpop.f32.mrb[44].mxu1  ;;  %v1855_v47 = vmax.bf16 %v8449_v1, %v1823_v45 }
 0x2ed   : > { %v1695_v48 = vpop.f32.mrb[45].mxu1 }
 0x2ee   : > { %v1697_v51 = vpop.f32.mrb[46].mxu1  ;;  %2190 = vmatprep.mubr.bf16.mxu0 %v1855_v47 }
 0x2ef   : > { %v1764_v52 = vpack.c.bf16 %v1697_v51, %v1693_v46  ;;  %v1699_v53 = vpop.f32.mrb[47].mxu1  ;;  %2191 = vmatmul.mubr.bf16.gmra.mrb[104].mxu0 %v1854_v50 }
 0x2f0   : > { %v1765_v54 = vpack.c.bf16 %v1699_v53, %v1695_v48 }
 0x2f1   : > { %v1824_v55 = vadd.bf16 %v9222_v40, %v1764_v52 }
 0x2f2   : > { %v1825_v58 = vadd.bf16 %v9225_v44, %v1765_v54 }
 0x2f3   : > { %v1856_v2 = vmax.bf16 %v8449_v1, %v1824_v55 }
 0x2f4   : > { %v1703_v60 = vpop.f32.mrb[48].mxu1  ;;  %v1857_v62 = vmax.bf16 %v8449_v1, %v1825_v58 }
 0x2f5   : > { %v1705_v63 = vpop.f32.mrb[49].mxu1 }
 0x2f6   : > { %v1707_v3 = vpop.f32.mrb[50].mxu1  ;;  %2200 = vmatprep.mubr.bf16.mxu0 %v1857_v62 }
 0x2f7   : > { %v1766_v5 = vpack.c.bf16 %v1707_v3, %v1703_v60  ;;  %v1709_v7 = vpop.f32.mrb[51].mxu1  ;;  %2201 = vmatmul.mubr.bf16.gmra.mrb[108].mxu0 %v1856_v2  ;;  %v7955_v2 = vld [vmem:[#allocation5 + $0x4] ss:$8 sps:$4 sm:$0xff]   ;;  %v7956_v3 = vld [vmem:[#allocation5 + $0x10] ss:$8 sps:$4 sm:$0xff]  }
 0x2f8   : > { %v1767_v10 = vpack.c.bf16 %v1709_v7, %v1705_v63  ;;  %v7953_v63 = vld [vmem:[#allocation5] ss:$8 sps:$4 sm:$0xff]   ;;  %3082 = vmatprep.subr.bf16.mxu0 %v7955_v2 }
 0x2f9   : > { %v1826_v14 = vadd.bf16 %v9222_v40, %v1766_v5  ;;  %3083 = vmatpush1.bf16.msra.mxu0 %v7953_v63  ;;  %v7958_v5 = vld [vmem:[#allocation5 + $0x14] ss:$8 sps:$4 sm:$0xff]  }
 0x2fa   : > { %v1827_v15 = vadd.bf16 %v9225_v44, %v1767_v10  ;;  %v2283_v7 = vld [vmem:[%s10515_s11] sm:$0x3]  ;;  %3084 = vmatprep.subr.bf16.mxu0 %v7958_v5  ;;  %v7961_v10 = vld [vmem:[#allocation5 + $0x24] ss:$8 sps:$4 sm:$0xff]  }
 0x2fb   : > { %v1858_v19 = vmax.bf16 %v8449_v1, %v1826_v14 }
 0x2fc   : > { %v1713_v16 = vpop.f32.mrb[52].mxu1  ;;  %v1859_v17 = vmax.bf16 %v8449_v1, %v1827_v15 }
 0x2fd   : > { %v1715_v18 = vpop.f32.mrb[53].mxu1  ;;  %3085 = vmatpush1.bf16.msra.mxu0 %v7956_v3 }
 0x2fe   : > { %v1717_v22 = vpop.f32.mrb[54].mxu1  ;;  %2210 = vmatprep.mubr.bf16.mxu0 %v1859_v17  ;;  %3086 = vmatprep.subr.bf16.mxu0 %v7961_v10  ;;  %v7962_v17 = vld [vmem:[#allocation5 + $0x30] ss:$8 sps:$4 sm:$0xff]   ;;  %v7982_v10 = vld [vmem:[#allocation5 + $0x94] ss:$8 sps:$4 sm:$0xff]  }
 0x2ff   : > { %v1768_v23 = vpack.c.bf16 %v1717_v22, %v1713_v16  ;;  %v1719_v57 = vpop.f32.mrb[55].mxu1  ;;  %2211 = vmatmul.mubr.bf16.gmra.mrb[112].mxu0 %v1858_v19 }
 0x300   : > { %v1769_v59 = vpack.c.bf16 %v1719_v57, %v1715_v18  ;;  %v7964_v18 = vld [vmem:[#allocation5 + $0x34] ss:$8 sps:$4 sm:$0xff]  }
 0x301   : > { %v1828_v25 = vadd.bf16 %v9222_v40, %v1768_v23  ;;  %3087 = vmatpush1.bf16.msra.mxu0 %v7959_v9 }
 0x302   : > { %v1829_v26 = vadd.bf16 %v9225_v44, %v1769_v59  ;;  %3088 = vmatprep.subr.bf16.mxu0 %v7964_v18 }
 0x303   : > { %v1860_v33 = vmax.bf16 %v8449_v1, %v1828_v25 }
 0x304   : > { %v1723_v29 = vpop.f32.mrb[56].mxu1  ;;  %v1861_v30 = vmax.bf16 %v8449_v1, %v1829_v26 }
 0x305   : > { %v1725_v32 = vpop.f32.mrb[57].mxu1  ;;  %3089 = vmatpush1.bf16.msra.mxu0 %v7962_v17  ;;  %v7985_v17 = vld [vmem:[#allocation5 + $0xa4] ss:$8 sps:$4 sm:$0xff]  }
 0x306   : > { %v1727_v34 = vpop.f32.mrb[58].mxu1  ;;  %2220 = vmatprep.mubr.bf16.mxu0 %v1861_v30  ;;  %v7967_v30 = vld [vmem:[#allocation5 + $0x44] ss:$8 sps:$4 sm:$0xff]  }
 0x307   : > { %v1770_v36 = vpack.c.bf16 %v1727_v34, %v1723_v29  ;;  %v1729_v37 = vpop.f32.mrb[59].mxu1  ;;  %2221 = vmatmul.mubr.bf16.gmra.mrb[116].mxu0 %v1860_v33  ;;  %v7965_v29 = vld [vmem:[#allocation5 + $0x40] ss:$8 sps:$4 sm:$0xff]   ;;  %v7970_v33 = vld [vmem:[#allocation5 + $0x54] ss:$8 sps:$4 sm:$0xff]   ;;  %3090 = vmatprep.subr.bf16.mxu0 %v7967_v30 }
 0x308   : > { %v1771_v38 = vpack.c.bf16 %v1729_v37, %v1725_v32  ;;  %v7968_v37 = vld [vmem:[#allocation5 + $0x50] ss:$8 sps:$4 sm:$0xff]  }
 0x309   : > { %v1830_v43 = vadd.bf16 %v9222_v40, %v1770_v36  ;;  %3091 = vmatpush1.bf16.msra.mxu0 %v7965_v29 }
 0x30a   : > { %v1831_v45 = vadd.bf16 %v9225_v44, %v1771_v38  ;;  %3092 = vmatprep.subr.bf16.mxu0 %v7970_v33  ;;  %v7973_v38 = vld [vmem:[#allocation5 + $0x64] ss:$8 sps:$4 sm:$0xff]  }
 0x30b   : > { %v1862_v50 = vmax.bf16 %v8449_v1, %v1830_v43 }
 0x30c   : > { %v1733_v46 = vpop.f32.mrb[60].mxu1  ;;  %v1863_v47 = vmax.bf16 %v8449_v1, %v1831_v45 }
 0x30d   : > { %v1735_v48 = vpop.f32.mrb[61].mxu1  ;;  %3093 = vmatpush1.bf16.msra.mxu0 %v7968_v37  ;;  %v7986_v37 = vld [vmem:[#allocation5 + $0xb0] ss:$8 sps:$4 sm:$0xff]  }
 0x30e   : > { %v1737_v51 = vpop.f32.mrb[62].mxu1  ;;  %2230 = vmatprep.mubr.bf16.mxu0 %v1863_v47  ;;  %3094 = vmatprep.subr.bf16.mxu0 %v7973_v38  ;;  %v7991_v38 = vld [vmem:[#allocation5 + $0xc4] ss:$8 sps:$4 sm:$0xff]  }
 0x30f   : > { %v1772_v52 = vpack.c.bf16 %v1737_v51, %v1733_v46  ;;  %v1739_v53 = vpop.f32.mrb[63].mxu1  ;;  %2231 = vmatmul.mubr.bf16.gmra.mrb[120].mxu0 %v1862_v50  ;;  %v7971_v50 = vld [vmem:[#allocation5 + $0x60] ss:$8 sps:$4 sm:$0xff]  }
 0x310   : > { %v1773_v54 = vpack.c.bf16 %v1739_v53, %v1735_v48  ;;  %v7976_v53 = vld [vmem:[#allocation5 + $0x74] ss:$8 sps:$4 sm:$0xff]  }
 0x311   : > { %v1832_v55 = vadd.bf16 %v9222_v40, %v1772_v52  ;;  %v2288_v40 = vrot.slane %v2283_v7, %v9053_v39  ;;  %3095 = vmatpush1.bf16.msra.mxu0 %v7971_v50  ;;  %v7989_v50 = vld [vmem:[#allocation5 + $0xc0] ss:$8 sps:$4 sm:$0xff]  }
 0x312   : > { %v1833_v58 = vadd.bf16 %v9225_v44, %v1773_v54  ;;  %v2292_v44 = vrot.slane %v2283_v7, %v9058_v41  ;;  %3096 = vmatprep.subr.bf16.mxu0 %v7976_v53  ;;  %v7994_v53 = vld [vmem:[#allocation5 + $0xd4] ss:$8 sps:$4 sm:$0xff]  }
 0x313   : > { %v1864_v62 = vmax.bf16 %v8449_v1, %v1832_v55  ;;  %v2295_v11 = vpack.c.bf16 %v2288_v40, %v2288_v40  ;;  %v7977_v40 = vld [vmem:[#allocation5 + $0x80] ss:$8 sps:$4 sm:$0xff]  }
 0x314   : > { %v1865_v60 = vmax.bf16 %v8449_v1, %v1833_v58  ;;  %v2296_v14 = vpack.c.bf16 %v2292_v44, %v2292_v44 }
 0x315   : > { %v2298_v15 = vpack.i.b16 %v2295_v11, %v2295_v11 }
 0x316   : > { %2240 = vmatprep.mubr.bf16.mxu0 %v1865_v60  ;;  %v2305_v16 = vpack.i.b16 %v2296_v14, %v2296_v14  ;;  %v7974_v60 = vld [vmem:[#allocation5 + $0x70] ss:$8 sps:$4 sm:$0xff]  }
 0x317   : > { %2241 = vmatmul.mubr.bf16.gmra.mrb[124].mxu0 %v1864_v62  ;;  %v9297_v23 = vrot.slane %v2298_v15, %v9053_v39  ;;  %v7979_v62 = vld [vmem:[#allocation5 + $0x84] ss:$8 sps:$4 sm:$0xff]  }
 0x318   : > { %v9300_v59 = vrot.slane %v2305_v16, %v9053_v39  ;;  %3097 = vmatpush1.bf16.msra.mxu0 %v7974_v60  ;;  %v7980_v16 = vld [vmem:[#allocation5 + $0x90] ss:$8 sps:$4 sm:$0xff]  }
 0x319   : > { %3098 = vmatprep.subr.bf16.mxu0 %v7979_v62  ;;  %v7992_v60 = vld [vmem:[#allocation5 + $0xd0] ss:$8 sps:$4 sm:$0xff]   ;;  %v7997_v62 = vld [vmem:[#allocation5 + $0xe4] ss:$8 sps:$4 sm:$0xff]  }
 0x31c   : > { %3099 = vmatpush1.bf16.msra.mxu0 %v7977_v40  ;;  %v7995_v40 = vld [vmem:[#allocation5 + $0xe0] ss:$8 sps:$4 sm:$0xff]  }
 0x31d   : > { %3100 = vmatprep.subr.bf16.mxu0 %v7982_v10 }
 0x320   : > { %3101 = vmatpush1.bf16.msra.mxu0 %v7980_v16 }
 0x321   : > { %3102 = vmatprep.subr.bf16.mxu0 %v7985_v17 }
 0x372   : > { %v2092_v19 = vpop.f32.mrb[64].mxu0 }
 0x373   : > { %v2094_v22 = vpop.f32.mrb[65].mxu0 }
 0x374   : > { %v2096_v57 = vpop.f32.mrb[66].mxu0 }
 0x375   : > { %v2251_v25 = vpack.c.bf16 %v2096_v57, %v2092_v19  ;;  %v2098_v26 = vpop.f32.mrb[67].mxu0 }
 0x376   : > { %v2252_v32 = vpack.c.bf16 %v2098_v26, %v2094_v22  ;;  %v7983_v26 = vld [vmem:[#allocation5 + $0xa0] ss:$8 sps:$4 sm:$0xff]  }
 0x377   : > { %v2311_v34 = vadd.bf16 %v9297_v23, %v2251_v25  ;;  %3103 = vmatpush1.bf16.msra.mxu0 %v7983_v26 }
 0x378   : > { %v2312_v36 = vadd.bf16 %v9300_v59, %v2252_v32  ;;  %v7988_v32 = vld [vmem:[#allocation5 + $0xb4] ss:$8 sps:$4 sm:$0xff]  }
 0x379   : > { %v2343_v46 = vmax.bf16 %v8449_v1, %v2311_v34  ;;  %3104 = vmatprep.subr.bf16.mxu0 %v7988_v32 }
 0x37a   : > { %v2102_v43 = vpop.f32.mrb[68].mxu0  ;;  %v2344_v45 = vmax.bf16 %v8449_v1, %v2312_v36 }
 0x37b   : > { %v2104_v47 = vpop.f32.mrb[69].mxu0  ;;  %3105 = vmatpush1.bf16.msra.mxu0 %v7986_v37 }
 0x37c   : > { %v2106_v48 = vpop.f32.mrb[70].mxu0  ;;  %2599 = vmatprep.mubr.bf16.mxu1 %v2344_v45  ;;  %3106 = vmatprep.subr.bf16.mxu0 %v7991_v38 }
 0x37d   : > { %v2253_v51 = vpack.c.bf16 %v2106_v48, %v2102_v43  ;;  %v2108_v52 = vpop.f32.mrb[71].mxu0  ;;  %2600 = vmatmul.mubr.bf16.vlgmr.msra.gmra.mrb[64].mxu1 %v2343_v46 }
 0x37e   : > { %v2254_v54 = vpack.c.bf16 %v2108_v52, %v2104_v47 }
 0x37f   : > { %v2313_v55 = vadd.bf16 %v9297_v23, %v2253_v51  ;;  %3107 = vmatpush1.bf16.msra.mxu0 %v7989_v50 }
 0x380   : > { %v2314_v58 = vadd.bf16 %v9300_v59, %v2254_v54  ;;  %3108 = vmatprep.subr.bf16.mxu0 %v7994_v53 }
 0x381   : > { %v2345_v5 = vmax.bf16 %v8449_v1, %v2313_v55 }
 0x382   : > { %v2112_v63 = vpop.f32.mrb[72].mxu0  ;;  %v2346_v2 = vmax.bf16 %v8449_v1, %v2314_v58 }
 0x383   : > { %v2114_v3 = vpop.f32.mrb[73].mxu0  ;;  %3109 = vmatpush1.bf16.msra.mxu0 %v7992_v60 }
 0x384   : > { %v2116_v7 = vpop.f32.mrb[74].mxu0  ;;  %2609 = vmatprep.mubr.bf16.mxu1 %v2346_v2  ;;  %3110 = vmatprep.subr.bf16.mxu0 %v7997_v62 }
 0x385   : > { %v2255_v44 = vpack.c.bf16 %v2116_v7, %v2112_v63  ;;  %v2118_v9 = vpop.f32.mrb[75].mxu0  ;;  %2610 = vmatmul.mubr.bf16.gmra.mrb[68].mxu1 %v2345_v5 }
 0x386   : > { %v2256_v11 = vpack.c.bf16 %v2118_v9, %v2114_v3 }
 0x387   : > { %v2315_v14 = vadd.bf16 %v9297_v23, %v2255_v44  ;;  %3111 = vmatpush1.bf16.msra.mxu0 %v7995_v40 }
 0x388   : > { %v2316_v15 = vadd.bf16 %v9300_v59, %v2256_v11 }
 0x389   : > { %v2347_v57 = vmax.bf16 %v8449_v1, %v2315_v14 }
 0x38a   : > { %v2122_v18 = vpop.f32.mrb[76].mxu0  ;;  %v2348_v19 = vmax.bf16 %v8449_v1, %v2316_v15 }
 0x38b   : > { %v2124_v22 = vpop.f32.mrb[77].mxu0 }
 0x38c   : > { %v2126_v25 = vpop.f32.mrb[78].mxu0  ;;  %2619 = vmatprep.mubr.bf16.mxu1 %v2348_v19 }
 0x38d   : > { %v2257_v29 = vpack.c.bf16 %v2126_v25, %v2122_v18  ;;  %v2128_v30 = vpop.f32.mrb[79].mxu0  ;;  %2620 = vmatmul.mubr.bf16.gmra.mrb[72].mxu1 %v2347_v57 }
 0x38e   : > { %v2258_v33 = vpack.c.bf16 %v2128_v30, %v2124_v22 }
 0x38f   : > { %v2317_v34 = vadd.bf16 %v9297_v23, %v2257_v29 }
 0x390   : > { %v2318_v36 = vadd.bf16 %v9300_v59, %v2258_v33 }
 0x391   : > { %v2349_v47 = vmax.bf16 %v8449_v1, %v2317_v34 }
 0x392   : > { %v2132_v43 = vpop.f32.mrb[80].mxu0  ;;  %v2350_v45 = vmax.bf16 %v8449_v1, %v2318_v36 }
 0x393   : > { %v2134_v46 = vpop.f32.mrb[81].mxu0 }
 0x394   : > { %v2136_v48 = vpop.f32.mrb[82].mxu0  ;;  %2629 = vmatprep.mubr.bf16.mxu1 %v2350_v45 }
 0x395   : > { %v2259_v51 = vpack.c.bf16 %v2136_v48, %v2132_v43  ;;  %v2138_v52 = vpop.f32.mrb[83].mxu0  ;;  %2630 = vmatmul.mubr.bf16.gmra.mrb[76].mxu1 %v2349_v47 }
 0x396   : > { %v2260_v54 = vpack.c.bf16 %v2138_v52, %v2134_v46 }
 0x397   : > { %v2319_v55 = vadd.bf16 %v9297_v23, %v2259_v51 }
 0x398   : > { %v2320_v58 = vadd.bf16 %v9300_v59, %v2260_v54 }
 0x399   : > { %v2351_v5 = vmax.bf16 %v8449_v1, %v2319_v55 }
 0x39a   : > { %v2142_v63 = vpop.f32.mrb[84].mxu0  ;;  %v2352_v2 = vmax.bf16 %v8449_v1, %v2320_v58 }
 0x39b   : > { %v2144_v3 = vpop.f32.mrb[85].mxu0 }
 0x39c   : > { %v2146_v7 = vpop.f32.mrb[86].mxu0  ;;  %2639 = vmatprep.mubr.bf16.mxu1 %v2352_v2 }
 0x39d   : > { %v2261_v44 = vpack.c.bf16 %v2146_v7, %v2142_v63  ;;  %v2148_v9 = vpop.f32.mrb[87].mxu0  ;;  %2640 = vmatmul.mubr.bf16.gmra.mrb[80].mxu1 %v2351_v5 }
 0x39e   : > { %v2262_v10 = vpack.c.bf16 %v2148_v9, %v2144_v3 }
 0x39f   : > { %v2321_v11 = vadd.bf16 %v9297_v23, %v2261_v44 }
 0x3a0   : > { %v2322_v14 = vadd.bf16 %v9300_v59, %v2262_v10 }
 0x3a1   : > { %v2353_v18 = vmax.bf16 %v8449_v1, %v2321_v11 }
 0x3a2   : > { %v2152_v15 = vpop.f32.mrb[88].mxu0  ;;  %v2354_v16 = vmax.bf16 %v8449_v1, %v2322_v14 }
 0x3a3   : > { %v2154_v17 = vpop.f32.mrb[89].mxu0 }
 0x3a4   : > { %v2156_v19 = vpop.f32.mrb[90].mxu0  ;;  %2649 = vmatprep.mubr.bf16.mxu1 %v2354_v16 }
 0x3a5   : > { %v2263_v22 = vpack.c.bf16 %v2156_v19, %v2152_v15  ;;  %v2158_v57 = vpop.f32.mrb[91].mxu0  ;;  %2650 = vmatmul.mubr.bf16.gmra.mrb[84].mxu1 %v2353_v18 }
 0x3a6   : > { %v2264_v25 = vpack.c.bf16 %v2158_v57, %v2154_v17 }
 0x3a7   : > { %v2323_v26 = vadd.bf16 %v9297_v23, %v2263_v22 }
 0x3a8   : > { %v2324_v29 = vadd.bf16 %v9300_v59, %v2264_v25 }
 0x3a9   : > { %v2355_v34 = vmax.bf16 %v8449_v1, %v2323_v26 }
 0x3aa   : > { %v2162_v30 = vpop.f32.mrb[92].mxu0  ;;  %v2356_v32 = vmax.bf16 %v8449_v1, %v2324_v29 }
 0x3ab   : > { %v2164_v33 = vpop.f32.mrb[93].mxu0 }
 0x3ac   : > { %v2166_v36 = vpop.f32.mrb[94].mxu0  ;;  %2659 = vmatprep.mubr.bf16.mxu1 %v2356_v32 }
 0x3ad   : > { %v2265_v37 = vpack.c.bf16 %v2166_v36, %v2162_v30  ;;  %v2168_v38 = vpop.f32.mrb[95].mxu0  ;;  %2660 = vmatmul.mubr.bf16.gmra.mrb[88].mxu1 %v2355_v34 }
 0x3ae   : > { %v2266_v43 = vpack.c.bf16 %v2168_v38, %v2164_v33 }
 0x3af   : > { %v2325_v45 = vadd.bf16 %v9297_v23, %v2265_v37 }
 0x3b0   : > { %v2326_v46 = vadd.bf16 %v9300_v59, %v2266_v43 }
 0x3b1   : > { %v2357_v51 = vmax.bf16 %v8449_v1, %v2325_v45 }
 0x3b2   : > { %v2172_v47 = vpop.f32.mrb[96].mxu0  ;;  %v2358_v48 = vmax.bf16 %v8449_v1, %v2326_v46 }
 0x3b3   : > { %v2174_v50 = vpop.f32.mrb[97].mxu0 }
 0x3b4   : > { %v2176_v52 = vpop.f32.mrb[98].mxu0  ;;  %2669 = vmatprep.mubr.bf16.mxu1 %v2358_v48 }
 0x3b5   : > { %v2267_v53 = vpack.c.bf16 %v2176_v52, %v2172_v47  ;;  %v2178_v54 = vpop.f32.mrb[99].mxu0  ;;  %2670 = vmatmul.mubr.bf16.gmra.mrb[92].mxu1 %v2357_v51 }
 0x3b6   : > { %v2268_v55 = vpack.c.bf16 %v2178_v54, %v2174_v50 }
 0x3b7   : > { %v2327_v58 = vadd.bf16 %v9297_v23, %v2267_v53  ;;  %v8000_v53 = vld [vmem:[#allocation5 + $0xf4] ss:$8 sps:$4 sm:$0xff]  }
 0x3b8   : > { %v2328_v60 = vadd.bf16 %v9300_v59, %v2268_v55  ;;  %v7998_v55 = vld [vmem:[#allocation5 + $0xf0] ss:$8 sps:$4 sm:$0xff]   ;;  %3112 = vmatprep.subr.bf16.mxu0 %v8000_v53 }
 0x3b9   : > { %v2359_v3 = vmax.bf16 %v8449_v1, %v2327_v58  ;;  %3113 = vmatpush1.bf16.msra.mxu0 %v7998_v55 }
 0x3ba   : > { %v2182_v62 = vpop.f32.mrb[100].mxu0  ;;  %v2360_v63 = vmax.bf16 %v8449_v1, %v2328_v60 }
 0x3bb   : > { %v2184_v2 = vpop.f32.mrb[101].mxu0 }
 0x3bc   : > { %v2186_v5 = vpop.f32.mrb[102].mxu0  ;;  %2679 = vmatprep.mubr.bf16.mxu1 %v2360_v63 }
 0x3bd   : > { %v2269_v7 = vpack.c.bf16 %v2186_v5, %v2182_v62  ;;  %v2188_v40 = vpop.f32.mrb[103].mxu0  ;;  %2680 = vmatmul.mubr.bf16.gmra.mrb[96].mxu1 %v2359_v3 }
 0x3be   : > { %v2270_v44 = vpack.c.bf16 %v2188_v40, %v2184_v2 }
 0x3bf   : > { %v2329_v9 = vadd.bf16 %v9297_v23, %v2269_v7 }
 0x3c0   : > { %v2330_v10 = vadd.bf16 %v9300_v59, %v2270_v44  ;;  %v2884_v44 = vld [vmem:[%s10516_s7] sm:$0x77] }
 0x3c1   : > { %v2361_v16 = vmax.bf16 %v8449_v1, %v2329_v9 }
 0x3c2   : > { %v2192_v11 = vpop.f32.mrb[104].mxu0  ;;  %v2362_v14 = vmax.bf16 %v8449_v1, %v2330_v10  ;;  %v2886_v10 = vcombine.high %v2884_v44, %v2884_v44 }
 0x3c3   : > { %v2194_v15 = vpop.f32.mrb[105].mxu0 }
 0x3c4   : > { %v2196_v17 = vpop.f32.mrb[106].mxu0  ;;  %2689 = vmatprep.mubr.bf16.mxu1 %v2362_v14 }
 0x3c5   : > { %v2271_v18 = vpack.c.bf16 %v2196_v17, %v2192_v11  ;;  %v2198_v19 = vpop.f32.mrb[107].mxu0  ;;  %2690 = vmatmul.mubr.bf16.gmra.mrb[100].mxu1 %v2361_v16 }
 0x3c6   : > { %v2272_v22 = vpack.c.bf16 %v2198_v19, %v2194_v15  ;;  %v2889_v15 = vpack.c.bf16 %v2886_v10, %v2886_v10 }
 0x3c7   : > { %v2331_v57 = vadd.bf16 %v9297_v23, %v2271_v18 }
 0x3c8   : > { %v2332_v25 = vadd.bf16 %v9300_v59, %v2272_v22  ;;  %v3279_v18 = vand.u32 %v2889_v15, %v8823_v6 }
 0x3c9   : > { %v2363_v32 = vmax.bf16 %v8449_v1, %v2331_v57 }
 0x3ca   : > { %v2202_v26 = vpop.f32.mrb[108].mxu0  ;;  %v2364_v29 = vmax.bf16 %v8449_v1, %v2332_v25  ;;  %3281 = vmatprep.subr.bf16.mxu0 %v3279_v18 }
 0x3cb   : > { %v2204_v30 = vpop.f32.mrb[109].mxu0 }
 0x3cc   : > { %v2206_v33 = vpop.f32.mrb[110].mxu0  ;;  %2699 = vmatprep.mubr.bf16.mxu1 %v2364_v29 }
 0x3cd   : > { %v2273_v34 = vpack.c.bf16 %v2206_v33, %v2202_v26  ;;  %v2208_v36 = vpop.f32.mrb[111].mxu0  ;;  %2700 = vmatmul.mubr.bf16.gmra.mrb[104].mxu1 %v2363_v32 }
 0x3ce   : > { %v2274_v37 = vpack.c.bf16 %v2208_v36, %v2204_v30 }
 0x3cf   : > { %v2333_v38 = vadd.bf16 %v9297_v23, %v2273_v34 }
 0x3d0   : > { %v2334_v43 = vadd.bf16 %v9300_v59, %v2274_v37 }
 0x3d1   : > { %v2365_v48 = vmax.bf16 %v8449_v1, %v2333_v38 }
 0x3d2   : > { %v2212_v45 = vpop.f32.mrb[112].mxu0  ;;  %v2366_v46 = vmax.bf16 %v8449_v1, %v2334_v43 }
 0x3d3   : > { %v2214_v47 = vpop.f32.mrb[113].mxu0 }
 0x3d4   : > { %v2216_v50 = vpop.f32.mrb[114].mxu0  ;;  %2709 = vmatprep.mubr.bf16.mxu1 %v2366_v46 }
 0x3d5   : > { %v2275_v51 = vpack.c.bf16 %v2216_v50, %v2212_v45  ;;  %v2218_v52 = vpop.f32.mrb[115].mxu0  ;;  %2710 = vmatmul.mubr.bf16.gmra.mrb[108].mxu1 %v2365_v48 }
 0x3d6   : > { %v2276_v54 = vpack.c.bf16 %v2218_v52, %v2214_v47  ;;  %v2792_v52 = vld [vmem:[%s10517_s26] sm:$0x3]  ;;  %s8452_s26 = smov 3  }
 0x3d7   : > { %v2335_v58 = vadd.bf16 %v9297_v23, %v2275_v51  ;;  %v2797_v53 = vrot.slane %v2792_v52, %v9053_v39 }
 0x3d8   : > { %v2336_v60 = vadd.bf16 %v9300_v59, %v2276_v54  ;;  %v2801_v54 = vrot.slane %v2792_v52, %v9058_v41 }
 0x3d9   : > { %v2367_v3 = vmax.bf16 %v8449_v1, %v2335_v58  ;;  %v2804_v55 = vpack.c.bf16 %v2797_v53, %v2797_v53 }
 0x3da   : > { %v2222_v62 = vpop.f32.mrb[116].mxu0  ;;  %v2368_v63 = vmax.bf16 %v8449_v1, %v2336_v60  ;;  %v2805_v58 = vpack.c.bf16 %v2801_v54, %v2801_v54 }
 0x3db   : > { %v2224_v2 = vpop.f32.mrb[117].mxu0  ;;  %v2807_v60 = vpack.i.b16 %v2804_v55, %v2804_v55 }
 0x3dc   : > { %v2226_v5 = vpop.f32.mrb[118].mxu0  ;;  %2719 = vmatprep.mubr.bf16.mxu1 %v2368_v63 }
 0x3dd   : > { %v2277_v7 = vpack.c.bf16 %v2226_v5, %v2222_v62  ;;  %v2228_v40 = vpop.f32.mrb[119].mxu0  ;;  %2720 = vmatmul.mubr.bf16.gmra.mrb[112].mxu1 %v2367_v3  ;;  %v9376_v63 = vrot.slane %v2807_v60, %v9053_v39 }
 0x3de   : > { %v2278_v9 = vpack.c.bf16 %v2228_v40, %v2224_v2 }
 0x3df   : > { %v2337_v11 = vadd.bf16 %v9297_v23, %v2277_v7 }
 0x3e0   : > { %v2338_v14 = vadd.bf16 %v9300_v59, %v2278_v9  ;;  %v2888_v9 = vpack.c.bf16 %v2884_v44, %v2884_v44 }
 0x3e1   : > { %v2369_v22 = vmax.bf16 %v8449_v1, %v2337_v11 }
 0x3e2   : > { %v2232_v16 = vpop.f32.mrb[120].mxu0  ;;  %v2370_v17 = vmax.bf16 %v8449_v1, %v2338_v14 }
 0x3e3   : > { %v2234_v19 = vpop.f32.mrb[121].mxu0 }
 0x3e4   : > { %v2236_v57 = vpop.f32.mrb[122].mxu0  ;;  %2729 = vmatprep.mubr.bf16.mxu1 %v2370_v17 }
 0x3e5   : > { %v2279_v25 = vpack.c.bf16 %v2236_v57, %v2232_v16  ;;  %v2238_v26 = vpop.f32.mrb[123].mxu0  ;;  %2730 = vmatmul.mubr.bf16.gmra.mrb[116].mxu1 %v2369_v22  ;;  %v3276_v16 = vand.u32 %v2888_v9, %v8823_v6 }
 0x3e6   : > { %v2280_v29 = vpack.c.bf16 %v2238_v26, %v2234_v19 }
 0x3e7   : > { %v2339_v30 = vadd.bf16 %v9297_v23, %v2279_v25 }
 0x3e8   : > { %v2340_v32 = vadd.bf16 %v9300_v59, %v2280_v29 }
 0x3e9   : > { %v2371_v37 = vmax.bf16 %v8449_v1, %v2339_v30 }
 0x3ea   : > { %v2242_v33 = vpop.f32.mrb[124].mxu0  ;;  %v2372_v34 = vmax.bf16 %v8449_v1, %v2340_v32 }
 0x3eb   : > { %v2244_v36 = vpop.f32.mrb[125].mxu0 }
 0x3ec   : > { %v2246_v38 = vpop.f32.mrb[126].mxu0  ;;  %2739 = vmatprep.mubr.bf16.mxu1 %v2372_v34 }
 0x3ed   : > { %v2281_v43 = vpack.c.bf16 %v2246_v38, %v2242_v33  ;;  %v2248_v45 = vpop.f32.mrb[127].mxu0  ;;  %2740 = vmatmul.mubr.bf16.gmra.mrb[120].mxu1 %v2371_v37 }
 0x3ee   : > { %v2282_v46 = vpack.c.bf16 %v2248_v45, %v2244_v36 }
 0x3ef   : > { %v2341_v47 = vadd.bf16 %v9297_v23, %v2281_v43  ;;  %v2814_v23 = vpack.i.b16 %v2805_v58, %v2805_v58 }
 0x3f0   : > { %v2342_v48 = vadd.bf16 %v9300_v59, %v2282_v46 }
 0x3f1   : > { %v2373_v51 = vmax.bf16 %v8449_v1, %v2341_v47  ;;  %v9379_v3 = vrot.slane %v2814_v23, %v9053_v39 }
 0x3f2   : > { %v2374_v50 = vmax.bf16 %v8449_v1, %v2342_v48 }
 0x3f4   : > { %2749 = vmatprep.mubr.bf16.mxu1 %v2374_v50 }
 0x3f5   : > { %2750 = vmatmul.mubr.bf16.gmra.mrb[124].mxu1 %v2373_v51 }
 0x450   : > { %v2601_v62 = vpop.f32.mrb[64].mxu1 }
 0x451   : > { %v2603_v59 = vpop.f32.mrb[65].mxu1 }
 0x452   : > { %v2605_v2 = vpop.f32.mrb[66].mxu1 }
 0x453   : > { %v2760_v5 = vpack.c.bf16 %v2605_v2, %v2601_v62  ;;  %v2607_v7 = vpop.f32.mrb[67].mxu1 }
 0x454   : > { %v2761_v40 = vpack.c.bf16 %v2607_v7, %v2603_v59 }
 0x455   : > { %v2820_v10 = vadd.bf16 %v9376_v63, %v2760_v5 }
 0x456   : > { %v2821_v11 = vadd.bf16 %v9379_v3, %v2761_v40 }
 0x457   : > { %v2852_v17 = vmax.bf16 %v8449_v1, %v2820_v10 }
 0x458   : > { %v2611_v14 = vpop.f32.mrb[68].mxu1  ;;  %v2853_v15 = vmax.bf16 %v8449_v1, %v2821_v11 }
 0x459   : > { %v2613_v18 = vpop.f32.mrb[69].mxu1 }
 0x45a   : > { %v2615_v19 = vpop.f32.mrb[70].mxu1  ;;  %3114 = vmatprep.mubr.bf16.mxu0 %v2853_v15 }
 0x45b   : > { %v2762_v22 = vpack.c.bf16 %v2615_v19, %v2611_v14  ;;  %v2617_v57 = vpop.f32.mrb[71].mxu1  ;;  %3115 = vmatmul.mubr.bf16.vlgmr.msra.gmra.mrb[128].mxu0 %v2852_v17 }
 0x45c   : > { %v2763_v25 = vpack.c.bf16 %v2617_v57, %v2613_v18  ;;  %3282 = vmatpush1.bf16.msra.mxu0 %v3276_v16 }
 0x45d   : > { %v2822_v44 = vadd.bf16 %v9376_v63, %v2762_v22 }
 0x45e   : > { %v2823_v26 = vadd.bf16 %v9379_v3, %v2763_v25 }
 0x45f   : > { %v2854_v33 = vmax.bf16 %v8449_v1, %v2822_v44 }
 0x460   : > { %v2621_v29 = vpop.f32.mrb[72].mxu1  ;;  %v2855_v30 = vmax.bf16 %v8449_v1, %v2823_v26 }
 0x461   : > { %v2623_v32 = vpop.f32.mrb[73].mxu1 }
 0x462   : > { %v2625_v34 = vpop.f32.mrb[74].mxu1  ;;  %3124 = vmatprep.mubr.bf16.mxu0 %v2855_v30 }
 0x463   : > { %v2764_v36 = vpack.c.bf16 %v2625_v34, %v2621_v29  ;;  %v2627_v37 = vpop.f32.mrb[75].mxu1  ;;  %3125 = vmatmul.mubr.bf16.gmra.mrb[132].mxu0 %v2854_v33 }
 0x464   : > { %v2765_v38 = vpack.c.bf16 %v2627_v37, %v2623_v32 }
 0x465   : > { %v2824_v43 = vadd.bf16 %v9376_v63, %v2764_v36 }
 0x466   : > { %v2825_v45 = vadd.bf16 %v9379_v3, %v2765_v38 }
 0x467   : > { %v2856_v50 = vmax.bf16 %v8449_v1, %v2824_v43 }
 0x468   : > { %v2631_v46 = vpop.f32.mrb[76].mxu1  ;;  %v2857_v47 = vmax.bf16 %v8449_v1, %v2825_v45 }
 0x469   : > { %v2633_v48 = vpop.f32.mrb[77].mxu1 }
 0x46a   : > { %v2635_v51 = vpop.f32.mrb[78].mxu1  ;;  %3134 = vmatprep.mubr.bf16.mxu0 %v2857_v47 }
 0x46b   : > { %v2766_v52 = vpack.c.bf16 %v2635_v51, %v2631_v46  ;;  %v2637_v53 = vpop.f32.mrb[79].mxu1  ;;  %3135 = vmatmul.mubr.bf16.gmra.mrb[136].mxu0 %v2856_v50 }
 0x46c   : > { %v2767_v54 = vpack.c.bf16 %v2637_v53, %v2633_v48 }
 0x46d   : > { %v2826_v55 = vadd.bf16 %v9376_v63, %v2766_v52 }
 0x46e   : > { %v2827_v58 = vadd.bf16 %v9379_v3, %v2767_v54 }
 0x46f   : > { %v2858_v59 = vmax.bf16 %v8449_v1, %v2826_v55 }
 0x470   : > { %v2641_v60 = vpop.f32.mrb[80].mxu1  ;;  %v2859_v23 = vmax.bf16 %v8449_v1, %v2827_v58 }
 0x471   : > { %v2643_v62 = vpop.f32.mrb[81].mxu1 }
 0x472   : > { %v2645_v2 = vpop.f32.mrb[82].mxu1  ;;  %3144 = vmatprep.mubr.bf16.mxu0 %v2859_v23 }
 0x473   : > { %v2768_v5 = vpack.c.bf16 %v2645_v2, %v2641_v60  ;;  %v2647_v7 = vpop.f32.mrb[83].mxu1  ;;  %3145 = vmatmul.mubr.bf16.gmra.mrb[140].mxu0 %v2858_v59 }
 0x474   : > { %v2769_v40 = vpack.c.bf16 %v2647_v7, %v2643_v62 }
 0x475   : > { %v2828_v9 = vadd.bf16 %v9376_v63, %v2768_v5 }
 0x476   : > { %v2829_v10 = vadd.bf16 %v9379_v3, %v2769_v40 }
 0x477   : > { %v2860_v16 = vmax.bf16 %v8449_v1, %v2828_v9 }
 0x478   : > { %v2651_v11 = vpop.f32.mrb[84].mxu1  ;;  %v2861_v14 = vmax.bf16 %v8449_v1, %v2829_v10 }
 0x479   : > { %v2653_v15 = vpop.f32.mrb[85].mxu1 }
 0x47a   : > { %v2655_v17 = vpop.f32.mrb[86].mxu1  ;;  %3154 = vmatprep.mubr.bf16.mxu0 %v2861_v14 }
 0x47b   : > { %v2770_v18 = vpack.c.bf16 %v2655_v17, %v2651_v11  ;;  %v2657_v19 = vpop.f32.mrb[87].mxu1  ;;  %3155 = vmatmul.mubr.bf16.gmra.mrb[144].mxu0 %v2860_v16 }
 0x47c   : > { %v2771_v22 = vpack.c.bf16 %v2657_v19, %v2653_v15 }
 0x47d   : > { %v2830_v57 = vadd.bf16 %v9376_v63, %v2770_v18 }
 0x47e   : > { %v2831_v25 = vadd.bf16 %v9379_v3, %v2771_v22 }
 0x47f   : > { %v2862_v30 = vmax.bf16 %v8449_v1, %v2830_v57 }
 0x480   : > { %v2661_v44 = vpop.f32.mrb[88].mxu1  ;;  %v2863_v26 = vmax.bf16 %v8449_v1, %v2831_v25 }
 0x481   : > { %v2663_v29 = vpop.f32.mrb[89].mxu1 }
 0x482   : > { %v2665_v32 = vpop.f32.mrb[90].mxu1  ;;  %3164 = vmatprep.mubr.bf16.mxu0 %v2863_v26 }
 0x483   : > { %v2772_v33 = vpack.c.bf16 %v2665_v32, %v2661_v44  ;;  %v2667_v34 = vpop.f32.mrb[91].mxu1  ;;  %3165 = vmatmul.mubr.bf16.gmra.mrb[148].mxu0 %v2862_v30 }
 0x484   : > { %v2773_v36 = vpack.c.bf16 %v2667_v34, %v2663_v29 }
 0x485   : > { %v2832_v37 = vadd.bf16 %v9376_v63, %v2772_v33 }
 0x486   : > { %v2833_v38 = vadd.bf16 %v9379_v3, %v2773_v36 }
 0x487   : > { %v2864_v47 = vmax.bf16 %v8449_v1, %v2832_v37 }
 0x488   : > { %v2671_v43 = vpop.f32.mrb[92].mxu1  ;;  %v2865_v45 = vmax.bf16 %v8449_v1, %v2833_v38 }
 0x489   : > { %v2673_v46 = vpop.f32.mrb[93].mxu1 }
 0x48a   : > { %v2675_v48 = vpop.f32.mrb[94].mxu1  ;;  %3174 = vmatprep.mubr.bf16.mxu0 %v2865_v45 }
 0x48b   : > { %v2774_v50 = vpack.c.bf16 %v2675_v48, %v2671_v43  ;;  %v2677_v51 = vpop.f32.mrb[95].mxu1  ;;  %3175 = vmatmul.mubr.bf16.gmra.mrb[152].mxu0 %v2864_v47 }
 0x48c   : > { %v2775_v52 = vpack.c.bf16 %v2677_v51, %v2673_v46 }
 0x48d   : > { %v2834_v53 = vadd.bf16 %v9376_v63, %v2774_v50 }
 0x48e   : > { %v2835_v54 = vadd.bf16 %v9379_v3, %v2775_v52 }
 0x48f   : > { %v2866_v23 = vmax.bf16 %v8449_v1, %v2834_v53 }
 0x490   : > { %v2681_v55 = vpop.f32.mrb[96].mxu1  ;;  %v2867_v58 = vmax.bf16 %v8449_v1, %v2835_v54 }
 0x491   : > { %v2683_v60 = vpop.f32.mrb[97].mxu1 }
 0x492   : > { %v2685_v62 = vpop.f32.mrb[98].mxu1  ;;  %3184 = vmatprep.mubr.bf16.mxu0 %v2867_v58 }
 0x493   : > { %v2776_v59 = vpack.c.bf16 %v2685_v62, %v2681_v55  ;;  %v2687_v2 = vpop.f32.mrb[99].mxu1  ;;  %3185 = vmatmul.mubr.bf16.gmra.mrb[156].mxu0 %v2866_v23 }
 0x494   : > { %v2777_v5 = vpack.c.bf16 %v2687_v2, %v2683_v60  ;;  %v8004_v2 = vld [vmem:[#allocation7 + $0x4] ss:$8 sps:$4 sm:$0xff]  }
 0x495   : > { %v2836_v7 = vadd.bf16 %v9376_v63, %v2776_v59  ;;  %v8002_v59 = vld [vmem:[#allocation7] ss:$8 sps:$4 sm:$0xff]   ;;  %3790 = vmatprep.subr.bf16.mxu1 %v8004_v2 }
 0x496   : > { %v2837_v40 = vadd.bf16 %v9379_v3, %v2777_v5  ;;  %3791 = vmatpush1.bf16.msra.mxu1 %v8002_v59  ;;  %v8014_v2 = vld [vmem:[#allocation7 + $0x40] ss:$8 sps:$4 sm:$0xff]  }
 0x497   : > { %v2868_v14 = vmax.bf16 %v8449_v1, %v2836_v7 }
 0x498   : > { %v2691_v9 = vpop.f32.mrb[100].mxu1  ;;  %v2869_v10 = vmax.bf16 %v8449_v1, %v2837_v40 }
 0x499   : > { %v2693_v11 = vpop.f32.mrb[101].mxu1 }
 0x49a   : > { %v2695_v15 = vpop.f32.mrb[102].mxu1  ;;  %3194 = vmatprep.mubr.bf16.mxu0 %v2869_v10 }
 0x49b   : > { %v2778_v16 = vpack.c.bf16 %v2695_v15, %v2691_v9  ;;  %v2697_v17 = vpop.f32.mrb[103].mxu1  ;;  %3195 = vmatmul.mubr.bf16.gmra.mrb[160].mxu0 %v2868_v14 }
 0x49c   : > { %v2779_v18 = vpack.c.bf16 %v2697_v17, %v2693_v11 }
 0x49d   : > { %v2838_v19 = vadd.bf16 %v9376_v63, %v2778_v16 }
 0x49e   : > { %v2839_v22 = vadd.bf16 %v9379_v3, %v2779_v18  ;;  %v8005_v18 = vld [vmem:[#allocation7 + $0x10] ss:$8 sps:$4 sm:$0xff]  }
 0x49f   : > { %v2870_v26 = vmax.bf16 %v8449_v1, %v2838_v19  ;;  %v8007_v19 = vld [vmem:[#allocation7 + $0x14] ss:$8 sps:$4 sm:$0xff]  }
 0x4a0   : > { %v2701_v57 = vpop.f32.mrb[104].mxu1  ;;  %v2871_v25 = vmax.bf16 %v8449_v1, %v2839_v22  ;;  %3792 = vmatprep.subr.bf16.mxu1 %v8007_v19  ;;  %v8037_v19 = vld [vmem:[#allocation7 + $0xb4] ss:$8 sps:$4 sm:$0xff]  }
 0x4a1   : > { %v2703_v44 = vpop.f32.mrb[105].mxu1  ;;  %3793 = vmatpush1.bf16.msra.mxu1 %v8005_v18  ;;  %v8032_v18 = vld [vmem:[#allocation7 + $0xa0] ss:$8 sps:$4 sm:$0xff]  }
 0x4a2   : > { %v2705_v29 = vpop.f32.mrb[106].mxu1  ;;  %3204 = vmatprep.mubr.bf16.mxu0 %v2871_v25 }
 0x4a3   : > { %v2780_v30 = vpack.c.bf16 %v2705_v29, %v2701_v57  ;;  %v2707_v32 = vpop.f32.mrb[107].mxu1  ;;  %3205 = vmatmul.mubr.bf16.gmra.mrb[164].mxu0 %v2870_v26 }
 0x4a4   : > { %v2781_v33 = vpack.c.bf16 %v2707_v32, %v2703_v44 }
 0x4a5   : > { %v2840_v34 = vadd.bf16 %v9376_v63, %v2780_v30 }
 0x4a6   : > { %v2841_v36 = vadd.bf16 %v9379_v3, %v2781_v33 }
 0x4a7   : > { %v2872_v45 = vmax.bf16 %v8449_v1, %v2840_v34 }
 0x4a8   : > { %v2711_v37 = vpop.f32.mrb[108].mxu1  ;;  %v2873_v38 = vmax.bf16 %v8449_v1, %v2841_v36  ;;  %v8008_v36 = vld [vmem:[#allocation7 + $0x20] ss:$8 sps:$4 sm:$0xff]  }
 0x4a9   : > { %v2713_v43 = vpop.f32.mrb[109].mxu1 }
 0x4aa   : > { %v2715_v46 = vpop.f32.mrb[110].mxu1  ;;  %3214 = vmatprep.mubr.bf16.mxu0 %v2873_v38 }
 0x4ab   : > { %v2782_v47 = vpack.c.bf16 %v2715_v46, %v2711_v37  ;;  %v2717_v48 = vpop.f32.mrb[111].mxu1  ;;  %3215 = vmatmul.mubr.bf16.gmra.mrb[168].mxu0 %v2872_v45  ;;  %v8010_v37 = vld [vmem:[#allocation7 + $0x24] ss:$8 sps:$4 sm:$0xff]  }
 0x4ac   : > { %v2783_v50 = vpack.c.bf16 %v2717_v48, %v2713_v43  ;;  %3794 = vmatprep.subr.bf16.mxu1 %v8010_v37 }
 0x4ad   : > { %v2842_v51 = vadd.bf16 %v9376_v63, %v2782_v47  ;;  %3795 = vmatpush1.bf16.msra.mxu1 %v8008_v36  ;;  %v3506_v36 = vld [vmem:[%s10518_s0] sm:$0x3]  ;;  %s10519_s0 = sld [smem:[#allocation30_spill]] }
 0x4ae   : > { %v2843_v52 = vadd.bf16 %v9379_v3, %v2783_v50  ;;  %v3511_v37 = vrot.slane %v3506_v36, %v9053_v39 }
 0x4af   : > { %v2874_v58 = vmax.bf16 %v8449_v1, %v2842_v51 }
 0x4b0   : > { %v2721_v53 = vpop.f32.mrb[112].mxu1  ;;  %v2875_v54 = vmax.bf16 %v8449_v1, %v2843_v52 }
 0x4b1   : > { %v2723_v55 = vpop.f32.mrb[113].mxu1 }
 0x4b2   : > { %v2725_v60 = vpop.f32.mrb[114].mxu1  ;;  %3224 = vmatprep.mubr.bf16.mxu0 %v2875_v54  ;;  %v8011_v54 = vld [vmem:[#allocation7 + $0x30] ss:$8 sps:$4 sm:$0xff]  }
 0x4b3   : > { %v2784_v23 = vpack.c.bf16 %v2725_v60, %v2721_v53  ;;  %v2727_v62 = vpop.f32.mrb[115].mxu1  ;;  %3225 = vmatmul.mubr.bf16.gmra.mrb[172].mxu0 %v2874_v58 }
 0x4b4   : > { %v2785_v5 = vpack.c.bf16 %v2727_v62, %v2723_v55  ;;  %v8013_v55 = vld [vmem:[#allocation7 + $0x34] ss:$8 sps:$4 sm:$0xff]  }
 0x4b5   : > { %v2844_v7 = vadd.bf16 %v9376_v63, %v2784_v23  ;;  %3796 = vmatprep.subr.bf16.mxu1 %v8013_v55 }
 0x4b6   : > { %v2845_v40 = vadd.bf16 %v9379_v3, %v2785_v5  ;;  %3797 = vmatpush1.bf16.msra.mxu1 %v8011_v54  ;;  %v8016_v5 = vld [vmem:[#allocation7 + $0x44] ss:$8 sps:$4 sm:$0xff]  }
 0x4b7   : > { %v2876_v14 = vmax.bf16 %v8449_v1, %v2844_v7  ;;  %v8019_v7 = vld [vmem:[#allocation7 + $0x54] ss:$8 sps:$4 sm:$0xff]   ;;  %3798 = vmatprep.subr.bf16.mxu1 %v8016_v5 }
 0x4b8   : > { %v2731_v9 = vpop.f32.mrb[116].mxu1  ;;  %v2877_v10 = vmax.bf16 %v8449_v1, %v2845_v40  ;;  %v8017_v40 = vld [vmem:[#allocation7 + $0x50] ss:$8 sps:$4 sm:$0xff]  }
 0x4b9   : > { %v2733_v11 = vpop.f32.mrb[117].mxu1 }
 0x4ba   : > { %v2735_v15 = vpop.f32.mrb[118].mxu1  ;;  %3234 = vmatprep.mubr.bf16.mxu0 %v2877_v10  ;;  %3799 = vmatpush1.bf16.msra.mxu1 %v8014_v2  ;;  %v8023_v10 = vld [vmem:[#allocation7 + $0x70] ss:$8 sps:$4 sm:$0xff]   ;;  %v8050_v2 = vld [vmem:[#allocation8] ss:$8 sps:$4 sm:$0xff]  }
 0x4bb   : > { %v2786_v16 = vpack.c.bf16 %v2735_v15, %v2731_v9  ;;  %v2737_v17 = vpop.f32.mrb[119].mxu1  ;;  %3235 = vmatmul.mubr.bf16.gmra.mrb[176].mxu0 %v2876_v14  ;;  %3800 = vmatprep.subr.bf16.mxu1 %v8019_v7  ;;  %v8020_v9 = vld [vmem:[#allocation7 + $0x60] ss:$8 sps:$4 sm:$0xff]   ;;  %v8031_v15 = vld [vmem:[#allocation7 + $0x94] ss:$8 sps:$4 sm:$0xff]  }
 0x4bc   : > { %v2787_v22 = vpack.c.bf16 %v2737_v17, %v2733_v11  ;;  %v8028_v11 = vld [vmem:[#allocation7 + $0x84] ss:$8 sps:$4 sm:$0xff]   ;;  %v8026_v14 = vld [vmem:[#allocation7 + $0x80] ss:$8 sps:$4 sm:$0xff]  }
 0x4bd   : > { %v2846_v57 = vadd.bf16 %v9376_v63, %v2786_v16  ;;  %v8029_v16 = vld [vmem:[#allocation7 + $0x90] ss:$8 sps:$4 sm:$0xff]   ;;  %v8034_v17 = vld [vmem:[#allocation7 + $0xa4] ss:$8 sps:$4 sm:$0xff]  }
 0x4be   : > { %v2847_v25 = vadd.bf16 %v9379_v3, %v2787_v22  ;;  %3801 = vmatpush1.bf16.msra.mxu1 %v8017_v40  ;;  %v8035_v22 = vld [vmem:[#allocation7 + $0xb0] ss:$8 sps:$4 sm:$0xff]   ;;  %v8055_v40 = vld [vmem:[#allocation8 + $0x14] ss:$8 sps:$4 sm:$0xff]  }
 0x4bf   : > { %v2878_v30 = vmax.bf16 %v8449_v1, %v2846_v57  ;;  %v8040_v57 = vld [vmem:[#allocation7 + $0xc4] ss:$8 sps:$4 sm:$0xff]  }
 0x4c0   : > { %v2741_v44 = vpop.f32.mrb[120].mxu1  ;;  %v2879_v26 = vmax.bf16 %v8449_v1, %v2847_v25  ;;  %v8038_v25 = vld [vmem:[#allocation7 + $0xc0] ss:$8 sps:$4 sm:$0xff]  }
 0x4c1   : > { %v2743_v29 = vpop.f32.mrb[121].mxu1 }
 0x4c2   : > { %v2745_v32 = vpop.f32.mrb[122].mxu1  ;;  %3244 = vmatprep.mubr.bf16.mxu0 %v2879_v26  ;;  %v8041_v26 = vld [vmem:[#allocation7 + $0xd0] ss:$8 sps:$4 sm:$0xff]  }
 0x4c3   : > { %v2788_v33 = vpack.c.bf16 %v2745_v32, %v2741_v44  ;;  %v2747_v34 = vpop.f32.mrb[123].mxu1  ;;  %3245 = vmatmul.mubr.bf16.gmra.mrb[180].mxu0 %v2878_v30  ;;  %v8043_v44 = vld [vmem:[#allocation7 + $0xd4] ss:$8 sps:$4 sm:$0xff]   ;;  %v8044_v30 = vld [vmem:[#allocation7 + $0xe0] ss:$8 sps:$4 sm:$0xff]  }
 0x4c4   : > { %v2789_v38 = vpack.c.bf16 %v2747_v34, %v2743_v29  ;;  %v8046_v29 = vld [vmem:[#allocation7 + $0xe4] ss:$8 sps:$4 sm:$0xff]   ;;  %v8049_v32 = vld [vmem:[#allocation7 + $0xf4] ss:$8 sps:$4 sm:$0xff]  }
 0x4c5   : > { %v2848_v43 = vadd.bf16 %v9376_v63, %v2788_v33  ;;  %v8047_v33 = vld [vmem:[#allocation7 + $0xf0] ss:$8 sps:$4 sm:$0xff]   ;;  %v8052_v34 = vld [vmem:[#allocation8 + $0x4] ss:$8 sps:$4 sm:$0xff]  }
 0x4c6   : > { %v2849_v45 = vadd.bf16 %v9379_v3, %v2789_v38  ;;  %v3515_v38 = vrot.slane %v3506_v36, %v9058_v41 }
 0x4c7   : > { %v2880_v50 = vmax.bf16 %v8449_v1, %v2848_v43  ;;  %v3518_v43 = vpack.c.bf16 %v3511_v37, %v3511_v37 }
 0x4c8   : > { %v2751_v46 = vpop.f32.mrb[124].mxu1  ;;  %v2881_v47 = vmax.bf16 %v8449_v1, %v2849_v45  ;;  %v3519_v45 = vpack.c.bf16 %v3515_v38, %v3515_v38 }
 0x4c9   : > { %v2753_v48 = vpop.f32.mrb[125].mxu1 }
 0x4ca   : > { %v2755_v51 = vpop.f32.mrb[126].mxu1  ;;  %3254 = vmatprep.mubr.bf16.mxu0 %v2881_v47  ;;  %v3528_v47 = vpack.i.b16 %v3519_v45, %v3519_v45 }
 0x4cb   : > { %v2790_v52 = vpack.c.bf16 %v2755_v51, %v2751_v46  ;;  %v2757_v53 = vpop.f32.mrb[127].mxu1  ;;  %3255 = vmatmul.mubr.bf16.gmra.mrb[184].mxu0 %v2880_v50  ;;  %v3521_v46 = vpack.i.b16 %v3518_v43, %v3518_v43  ;;  %v8062_v43 = vld [vmem:[#allocation8 + $0x40] ss:$8 sps:$4 sm:$0xff]  }
 0x4cc   : > { %v2791_v58 = vpack.c.bf16 %v2757_v53, %v2753_v48  ;;  %v9503_v53 = vrot.slane %v3528_v47, %v9053_v39  ;;  %v8067_v47 = vld [vmem:[#allocation8 + $0x54] ss:$8 sps:$4 sm:$0xff]  }
 0x4cd   : > { %v2850_v60 = vadd.bf16 %v9376_v63, %v2790_v52  ;;  %v8022_v63 = vld [vmem:[#allocation7 + $0x64] ss:$8 sps:$4 sm:$0xff]   ;;  %v9500_v51 = vrot.slane %v3521_v46, %v9053_v39 }
 0x4ce   : > { %v2851_v23 = vadd.bf16 %v9379_v3, %v2791_v58  ;;  %3802 = vmatprep.subr.bf16.mxu1 %v8022_v63  ;;  %v8025_v3 = vld [vmem:[#allocation7 + $0x74] ss:$8 sps:$4 sm:$0xff]  }
 0x4cf   : > { %v2882_v59 = vmax.bf16 %v8449_v1, %v2850_v60  ;;  %3803 = vmatpush1.bf16.msra.mxu1 %v8020_v9 }
 0x4d0   : > { %v2883_v62 = vmax.bf16 %v8449_v1, %v2851_v23  ;;  %3804 = vmatprep.subr.bf16.mxu1 %v8025_v3 }
 0x4d2   : > { %3264 = vmatprep.mubr.bf16.mxu0 %v2883_v62 }
 0x4d3   : > { %3265 = vmatmul.mubr.bf16.gmra.mrb[188].mxu0 %v2882_v59  ;;  %3805 = vmatpush1.bf16.msra.mxu1 %v8023_v10 }
 0x4d4   : > { %3313 = vmatprep.mubr.bf16.mxu0 %v8449_v1  ;;  %3806 = vmatprep.subr.bf16.mxu1 %v8028_v11  ;;  %v8053_v11 = vld [vmem:[#allocation8 + $0x10] ss:$8 sps:$4 sm:$0xff]  }
 0x4d7   : > { %3807 = vmatpush1.bf16.msra.mxu1 %v8026_v14 }
 0x4d8   : > { %3808 = vmatprep.subr.bf16.mxu1 %v8031_v15  ;;  %v8058_v15 = vld [vmem:[#allocation8 + $0x24] ss:$8 sps:$4 sm:$0xff]  }
 0x4db   : > { %7202 = vmatmul.mubr.msk.bf16.vlgmr.msra.gmra.mrb[128].mxu0 %vm981_vm2, %v8836_v13  ;;  %3809 = vmatpush1.bf16.msra.mxu1 %v8029_v16 }
 0x4dc   : > { %3323 = vmatprep.mubr.bf16.mxu0 %v8449_v1  ;;  %3810 = vmatprep.subr.bf16.mxu1 %v8034_v17 }
 0x4df   : > { %3811 = vmatpush1.bf16.msra.mxu1 %v8032_v18 }
 0x4e0   : > { %3812 = vmatprep.subr.bf16.mxu1 %v8037_v19  ;;  %v8056_v19 = vld [vmem:[#allocation8 + $0x20] ss:$8 sps:$4 sm:$0xff]  }
 0x4e3   : > { %7203 = vmatmul.mubr.msk.bf16.gmra.mrb[132].mxu0 %vm981_vm2, %v8855_v20  ;;  %3813 = vmatpush1.bf16.msra.mxu1 %v8035_v22 }
 0x4e4   : > { %3333 = vmatprep.mubr.bf16.mxu0 %v8449_v1  ;;  %3814 = vmatprep.subr.bf16.mxu1 %v8040_v57 }
 0x4e7   : > { %3815 = vmatpush1.bf16.msra.mxu1 %v8038_v25  ;;  %v8061_v25 = vld [vmem:[#allocation8 + $0x34] ss:$8 sps:$4 sm:$0xff]  }
 0x4e8   : > { %3816 = vmatprep.subr.bf16.mxu1 %v8043_v44 }
 0x4eb   : > { %7204 = vmatmul.mubr.msk.bf16.gmra.mrb[136].mxu0 %vm981_vm2, %v8874_v27  ;;  %3817 = vmatpush1.bf16.msra.mxu1 %v8041_v26 }
 0x4ec   : > { %3343 = vmatprep.mubr.bf16.mxu0 %v8449_v1  ;;  %3818 = vmatprep.subr.bf16.mxu1 %v8046_v29 }
 0x4ef   : > { %3819 = vmatpush1.bf16.msra.mxu1 %v8044_v30 }
 0x4f0   : > { %3820 = vmatprep.subr.bf16.mxu1 %v8049_v32  ;;  %v8059_v32 = vld [vmem:[#allocation8 + $0x30] ss:$8 sps:$4 sm:$0xff]  }
 0x4f3   : > { %7205 = vmatmul.mubr.msk.bf16.gmra.mrb[140].mxu0 %vm981_vm2, %v8896_v35  ;;  %3821 = vmatpush1.bf16.msra.mxu1 %v8047_v33  ;;  %v9697_v35 = vld [vmem:[#allocation11 + $0x60] ss:$8 sps:$4 sm:$0xff]  }
 0x4f4   : > { %3353 = vmatprep.mubr.bf16.mxu0 %v8449_v1  ;;  %4299 = vmatprep.subr.bf16.mxu1 %v8052_v34  ;;  %v8064_v34 = vld [vmem:[#allocation8 + $0x44] ss:$8 sps:$4 sm:$0xff]  }
 0x4fb   : > { %7206 = vmatmul.mubr.msk.bf16.gmra.mrb[144].mxu0 %vm981_vm2, %v8915_v42  ;;  %v9717_v42 = vld [vmem:[#allocation11 + $0x84] ss:$8 sps:$4 sm:$0xff]  }
 0x4fc   : > { %3363 = vmatprep.mubr.bf16.mxu0 %v8449_v1 }
 0x503   : > { %7207 = vmatmul.mubr.msk.bf16.gmra.mrb[148].mxu0 %vm981_vm2, %v8934_v49  ;;  %v9711_v49 = vld [vmem:[#allocation11 + $0x70] ss:$8 sps:$4 sm:$0xff]  }
 0x504   : > { %3373 = vmatprep.mubr.bf16.mxu0 %v8449_v1 }
 0x50b   : > { %7208 = vmatmul.mubr.msk.bf16.gmra.mrb[152].mxu0 %vm981_vm2, %v8953_v56  ;;  %v9730_v56 = vld [vmem:[#allocation11 + $0x94] ss:$8 sps:$4 sm:$0xff]  }
 0x50c   : > { %3383 = vmatprep.mubr.bf16.mxu0 %v8449_v1 }
 0x513   : > { %7209 = vmatmul.mubr.msk.bf16.gmra.mrb[156].mxu0 %vm981_vm2, %v8966_v61 }
 0x514   : > { %3393 = vmatprep.mubr.bf16.mxu0 %v8449_v1 }
 0x51b   : > { %7210 = vmatmul.mubr.msk.bf16.gmra.mrb[160].mxu0 %vm981_vm2, %v8973_v0  ;;  %v9745_v0 = vld [vmem:[#allocation11 + $0xa4] ss:$8 sps:$4 sm:$0xff]  }
 0x51c   : > { %3403 = vmatprep.mubr.bf16.mxu0 %v8449_v1 }
 0x523   : > { %7211 = vmatmul.mubr.msk.bf16.gmra.mrb[164].mxu0 %vm981_vm2, %v8980_v4  ;;  %v9739_v4 = vld [vmem:[#allocation11 + $0x90] ss:$8 sps:$4 sm:$0xff]  }
 0x524   : > { %3413 = vmatprep.mubr.bf16.mxu0 %v8449_v1 }
 0x52b   : > { %7212 = vmatmul.mubr.msk.bf16.gmra.mrb[168].mxu0 %vm981_vm2, %v8987_v8  ;;  %v9758_v8 = vld [vmem:[#allocation11 + $0xb4] ss:$8 sps:$4 sm:$0xff]  }
 0x52c   : > { %3423 = vmatprep.mubr.bf16.mxu0 %v8449_v1 }
 0x533   : > { %7213 = vmatmul.mubr.msk.bf16.gmra.mrb[172].mxu0 %vm981_vm2, %v8997_v12 }
 0x534   : > { %3433 = vmatprep.mubr.bf16.mxu0 %v8449_v1 }
 0x53b   : > { %7214 = vmatmul.mubr.msk.bf16.gmra.mrb[176].mxu0 %vm981_vm2, %v9016_v21  ;;  %v8184_v21 = vld [vmem:[#allocation11 + $0xc4] ss:$8 sps:$4 sm:$0xff]  }
 0x53c   : > { %3443 = vmatprep.mubr.bf16.mxu0 %v8449_v1 }
 0x543   : > { %7215 = vmatmul.mubr.msk.bf16.gmra.mrb[180].mxu0 %vm981_vm2, %v9023_v24  ;;  %v9767_v24 = vld [vmem:[#allocation11 + $0xb0] ss:$8 sps:$4 sm:$0xff]  }
 0x544   : > { %3453 = vmatprep.mubr.bf16.mxu0 %v8449_v1 }
 0x54b   : > { %7216 = vmatmul.mubr.msk.bf16.gmra.mrb[184].mxu0 %vm981_vm2, %v9030_v28 }
 0x54c   : > { %3463 = vmatprep.mubr.bf16.mxu0 %v8449_v1 }
 0x553   : > { %7217 = vmatmul.mubr.msk.bf16.gmra.mrb[188].mxu0 %vm981_vm2, %v9037_v31  ;;  %v8182_v31 = vld [vmem:[#allocation11 + $0xc0] ss:$8 sps:$4 sm:$0xff]  }
 0x5ae   : > { %v3315_v48 = vpop.f32.mrb[128].mxu0 }
 0x5af   : > { %v3317_v50 = vpop.f32.mrb[129].mxu0 }
 0x5b0   : > { %v3319_v52 = vpop.f32.mrb[130].mxu0 }
 0x5b1   : > { %v3474_v54 = vpack.c.bf16 %v3319_v52, %v3315_v48  ;;  %v3321_v55 = vpop.f32.mrb[131].mxu0 }
 0x5b2   : > { %v3475_v58 = vpack.c.bf16 %v3321_v55, %v3317_v50  ;;  %v8065_v55 = vld [vmem:[#allocation8 + $0x50] ss:$8 sps:$4 sm:$0xff]  }
 0x5b3   : > { %v3534_v60 = vadd.bf16 %v9500_v51, %v3474_v54 }
 0x5b4   : > { %v3535_v23 = vadd.bf16 %v9503_v53, %v3475_v58 }
 0x5b5   : > { %v3566_v5 = vmax.bf16 %v8449_v1, %v3534_v60  ;;  %v8070_v60 = vld [vmem:[#allocation8 + $0x64] ss:$8 sps:$4 sm:$0xff]  }
 0x5b6   : > { %v3325_v62 = vpop.f32.mrb[132].mxu0  ;;  %v3567_v59 = vmax.bf16 %v8449_v1, %v3535_v23 }
 0x5b7   : > { %v3327_v7 = vpop.f32.mrb[133].mxu0 }
 0x5b8   : > { %v3329_v63 = vpop.f32.mrb[134].mxu0  ;;  %3822 = vmatprep.mubr.bf16.mxu1 %v3567_v59 }
 0x5b9   : > { %v3476_v9 = vpack.c.bf16 %v3329_v63, %v3325_v62  ;;  %v3331_v3 = vpop.f32.mrb[135].mxu0  ;;  %3823 = vmatmul.mubr.bf16.vlgmr.msra.gmra.mrb[128].mxu1 %v3566_v5 }
 0x5ba   : > { %v3477_v10 = vpack.c.bf16 %v3331_v3, %v3327_v7  ;;  %4300 = vmatpush1.bf16.msra.mxu1 %v8050_v2  ;;  %v8068_v2 = vld [vmem:[#allocation8 + $0x60] ss:$8 sps:$4 sm:$0xff]  }
 0x5bb   : > { %v3536_v14 = vadd.bf16 %v9500_v51, %v3476_v9  ;;  %4301 = vmatprep.subr.bf16.mxu1 %v8055_v40  ;;  %v8073_v40 = vld [vmem:[#allocation8 + $0x74] ss:$8 sps:$4 sm:$0xff]  }
 0x5bc   : > { %v3537_v16 = vadd.bf16 %v9503_v53, %v3477_v10 }
 0x5bd   : > { %v3568_v57 = vmax.bf16 %v8449_v1, %v3536_v14 }
 0x5be   : > { %v3335_v17 = vpop.f32.mrb[136].mxu0  ;;  %v3569_v18 = vmax.bf16 %v8449_v1, %v3537_v16  ;;  %4302 = vmatpush1.bf16.msra.mxu1 %v8053_v11  ;;  %v8071_v11 = vld [vmem:[#allocation8 + $0x70] ss:$8 sps:$4 sm:$0xff]  }
 0x5bf   : > { %v3337_v22 = vpop.f32.mrb[137].mxu0  ;;  %4303 = vmatprep.subr.bf16.mxu1 %v8058_v15  ;;  %v8076_v15 = vld [vmem:[#allocation8 + $0x84] ss:$8 sps:$4 sm:$0xff]  }
 0x5c0   : > { %v3339_v44 = vpop.f32.mrb[138].mxu0  ;;  %3832 = vmatprep.mubr.bf16.mxu1 %v3569_v18 }
 0x5c1   : > { %v3478_v26 = vpack.c.bf16 %v3339_v44, %v3335_v17  ;;  %v3341_v29 = vpop.f32.mrb[139].mxu0  ;;  %3833 = vmatmul.mubr.bf16.gmra.mrb[132].mxu1 %v3568_v57 }
 0x5c2   : > { %v3479_v30 = vpack.c.bf16 %v3341_v29, %v3337_v22  ;;  %4304 = vmatpush1.bf16.msra.mxu1 %v8056_v19  ;;  %v8074_v19 = vld [vmem:[#allocation8 + $0x80] ss:$8 sps:$4 sm:$0xff]  }
 0x5c3   : > { %v3538_v33 = vadd.bf16 %v9500_v51, %v3478_v26  ;;  %4305 = vmatprep.subr.bf16.mxu1 %v8061_v25  ;;  %v8079_v25 = vld [vmem:[#allocation8 + $0x94] ss:$8 sps:$4 sm:$0xff]  }
 0x5c4   : > { %v3539_v36 = vadd.bf16 %v9503_v53, %v3479_v30 }
 0x5c5   : > { %v3570_v46 = vmax.bf16 %v8449_v1, %v3538_v33 }
 0x5c6   : > { %v3345_v37 = vpop.f32.mrb[140].mxu0  ;;  %v3571_v38 = vmax.bf16 %v8449_v1, %v3539_v36  ;;  %4306 = vmatpush1.bf16.msra.mxu1 %v8059_v32  ;;  %v8077_v32 = vld [vmem:[#allocation8 + $0x90] ss:$8 sps:$4 sm:$0xff]  }
 0x5c7   : > { %v3347_v45 = vpop.f32.mrb[141].mxu0  ;;  %4307 = vmatprep.subr.bf16.mxu1 %v8064_v34  ;;  %v8082_v34 = vld [vmem:[#allocation8 + $0xa4] ss:$8 sps:$4 sm:$0xff]  }
 0x5c8   : > { %v3349_v48 = vpop.f32.mrb[142].mxu0  ;;  %3842 = vmatprep.mubr.bf16.mxu1 %v3571_v38 }
 0x5c9   : > { %v3480_v50 = vpack.c.bf16 %v3349_v48, %v3345_v37  ;;  %v3351_v52 = vpop.f32.mrb[143].mxu0  ;;  %3843 = vmatmul.mubr.bf16.gmra.mrb[136].mxu1 %v3570_v46 }
 0x5ca   : > { %v3481_v54 = vpack.c.bf16 %v3351_v52, %v3347_v45  ;;  %4308 = vmatpush1.bf16.msra.mxu1 %v8062_v43  ;;  %v8080_v43 = vld [vmem:[#allocation8 + $0xa0] ss:$8 sps:$4 sm:$0xff]  }
 0x5cb   : > { %v3540_v58 = vadd.bf16 %v9500_v51, %v3480_v50  ;;  %4309 = vmatprep.subr.bf16.mxu1 %v8067_v47  ;;  %v8085_v47 = vld [vmem:[#allocation8 + $0xb4] ss:$8 sps:$4 sm:$0xff]  }
 0x5cc   : > { %v3541_v23 = vadd.bf16 %v9503_v53, %v3481_v54 }
 0x5cd   : > { %v3572_v7 = vmax.bf16 %v8449_v1, %v3540_v58 }
 0x5ce   : > { %v3355_v62 = vpop.f32.mrb[144].mxu0  ;;  %v3573_v59 = vmax.bf16 %v8449_v1, %v3541_v23  ;;  %4310 = vmatpush1.bf16.msra.mxu1 %v8065_v55  ;;  %v8083_v55 = vld [vmem:[#allocation8 + $0xb0] ss:$8 sps:$4 sm:$0xff]  }
 0x5cf   : > { %v3357_v5 = vpop.f32.mrb[145].mxu0  ;;  %4311 = vmatprep.subr.bf16.mxu1 %v8070_v60  ;;  %v8088_v60 = vld [vmem:[#allocation8 + $0xc4] ss:$8 sps:$4 sm:$0xff]  }
 0x5d0   : > { %v3359_v63 = vpop.f32.mrb[146].mxu0  ;;  %3852 = vmatprep.mubr.bf16.mxu1 %v3573_v59 }
 0x5d1   : > { %v3482_v9 = vpack.c.bf16 %v3359_v63, %v3355_v62  ;;  %v3361_v3 = vpop.f32.mrb[147].mxu0  ;;  %3853 = vmatmul.mubr.bf16.gmra.mrb[140].mxu1 %v3572_v7 }
 0x5d2   : > { %v3483_v10 = vpack.c.bf16 %v3361_v3, %v3357_v5  ;;  %4312 = vmatpush1.bf16.msra.mxu1 %v8068_v2  ;;  %v8086_v2 = vld [vmem:[#allocation8 + $0xc0] ss:$8 sps:$4 sm:$0xff]  }
 0x5d3   : > { %v3542_v14 = vadd.bf16 %v9500_v51, %v3482_v9  ;;  %4313 = vmatprep.subr.bf16.mxu1 %v8073_v40  ;;  %v8091_v40 = vld [vmem:[#allocation8 + $0xd4] ss:$8 sps:$4 sm:$0xff]  }
 0x5d4   : > { %v3543_v16 = vadd.bf16 %v9503_v53, %v3483_v10 }
 0x5d5   : > { %v3574_v57 = vmax.bf16 %v8449_v1, %v3542_v14 }
 0x5d6   : > { %v3365_v17 = vpop.f32.mrb[148].mxu0  ;;  %v3575_v18 = vmax.bf16 %v8449_v1, %v3543_v16  ;;  %4314 = vmatpush1.bf16.msra.mxu1 %v8071_v11  ;;  %v8089_v11 = vld [vmem:[#allocation8 + $0xd0] ss:$8 sps:$4 sm:$0xff]  }
 0x5d7   : > { %v3367_v22 = vpop.f32.mrb[149].mxu0  ;;  %4315 = vmatprep.subr.bf16.mxu1 %v8076_v15  ;;  %v8094_v15 = vld [vmem:[#allocation8 + $0xe4] ss:$8 sps:$4 sm:$0xff]  }
 0x5d8   : > { %v3369_v44 = vpop.f32.mrb[150].mxu0  ;;  %3862 = vmatprep.mubr.bf16.mxu1 %v3575_v18 }
 0x5d9   : > { %v3484_v26 = vpack.c.bf16 %v3369_v44, %v3365_v17  ;;  %v3371_v29 = vpop.f32.mrb[151].mxu0  ;;  %3863 = vmatmul.mubr.bf16.gmra.mrb[144].mxu1 %v3574_v57 }
 0x5da   : > { %v3485_v30 = vpack.c.bf16 %v3371_v29, %v3367_v22  ;;  %4316 = vmatpush1.bf16.msra.mxu1 %v8074_v19  ;;  %v8092_v19 = vld [vmem:[#allocation8 + $0xe0] ss:$8 sps:$4 sm:$0xff]  }
 0x5db   : > { %v3544_v33 = vadd.bf16 %v9500_v51, %v3484_v26  ;;  %4317 = vmatprep.subr.bf16.mxu1 %v8079_v25 }
 0x5dc   : > { %v3545_v36 = vadd.bf16 %v9503_v53, %v3485_v30 }
 0x5dd   : > { %v3576_v46 = vmax.bf16 %v8449_v1, %v3544_v33 }
 0x5de   : > { %v3375_v37 = vpop.f32.mrb[152].mxu0  ;;  %v3577_v38 = vmax.bf16 %v8449_v1, %v3545_v36  ;;  %4318 = vmatpush1.bf16.msra.mxu1 %v8077_v32 }
 0x5df   : > { %v3377_v45 = vpop.f32.mrb[153].mxu0  ;;  %4319 = vmatprep.subr.bf16.mxu1 %v8082_v34 }
 0x5e0   : > { %v3379_v48 = vpop.f32.mrb[154].mxu0  ;;  %3872 = vmatprep.mubr.bf16.mxu1 %v3577_v38 }
 0x5e1   : > { %v3486_v50 = vpack.c.bf16 %v3379_v48, %v3375_v37  ;;  %v3381_v52 = vpop.f32.mrb[155].mxu0  ;;  %3873 = vmatmul.mubr.bf16.gmra.mrb[148].mxu1 %v3576_v46 }
 0x5e2   : > { %v3487_v54 = vpack.c.bf16 %v3381_v52, %v3377_v45  ;;  %4320 = vmatpush1.bf16.msra.mxu1 %v8080_v43 }
 0x5e3   : > { %v3546_v58 = vadd.bf16 %v9500_v51, %v3486_v50  ;;  %4321 = vmatprep.subr.bf16.mxu1 %v8085_v47 }
 0x5e4   : > { %v3547_v23 = vadd.bf16 %v9503_v53, %v3487_v54 }
 0x5e5   : > { %v3578_v7 = vmax.bf16 %v8449_v1, %v3546_v58 }
 0x5e6   : > { %v3385_v62 = vpop.f32.mrb[156].mxu0  ;;  %v3579_v59 = vmax.bf16 %v8449_v1, %v3547_v23  ;;  %4322 = vmatpush1.bf16.msra.mxu1 %v8083_v55 }
 0x5e7   : > { %v3387_v5 = vpop.f32.mrb[157].mxu0  ;;  %4323 = vmatprep.subr.bf16.mxu1 %v8088_v60 }
 0x5e8   : > { %v3389_v63 = vpop.f32.mrb[158].mxu0  ;;  %3882 = vmatprep.mubr.bf16.mxu1 %v3579_v59 }
 0x5e9   : > { %v3488_v9 = vpack.c.bf16 %v3389_v63, %v3385_v62  ;;  %v3391_v3 = vpop.f32.mrb[159].mxu0  ;;  %3883 = vmatmul.mubr.bf16.gmra.mrb[152].mxu1 %v3578_v7 }
 0x5ea   : > { %v3489_v10 = vpack.c.bf16 %v3391_v3, %v3387_v5  ;;  %4324 = vmatpush1.bf16.msra.mxu1 %v8086_v2 }
 0x5eb   : > { %v3548_v14 = vadd.bf16 %v9500_v51, %v3488_v9  ;;  %4325 = vmatprep.subr.bf16.mxu1 %v8091_v40 }
 0x5ec   : > { %v3549_v16 = vadd.bf16 %v9503_v53, %v3489_v10 }
 0x5ed   : > { %v3580_v57 = vmax.bf16 %v8449_v1, %v3548_v14 }
 0x5ee   : > { %v3395_v17 = vpop.f32.mrb[160].mxu0  ;;  %v3581_v18 = vmax.bf16 %v8449_v1, %v3549_v16  ;;  %4326 = vmatpush1.bf16.msra.mxu1 %v8089_v11 }
 0x5ef   : > { %v3397_v22 = vpop.f32.mrb[161].mxu0  ;;  %4327 = vmatprep.subr.bf16.mxu1 %v8094_v15 }
 0x5f0   : > { %v3399_v25 = vpop.f32.mrb[162].mxu0  ;;  %3892 = vmatprep.mubr.bf16.mxu1 %v3581_v18 }
 0x5f1   : > { %v3490_v44 = vpack.c.bf16 %v3399_v25, %v3395_v17  ;;  %v3401_v26 = vpop.f32.mrb[163].mxu0  ;;  %3893 = vmatmul.mubr.bf16.gmra.mrb[156].mxu1 %v3580_v57 }
 0x5f2   : > { %v3491_v29 = vpack.c.bf16 %v3401_v26, %v3397_v22  ;;  %4328 = vmatpush1.bf16.msra.mxu1 %v8092_v19 }
 0x5f3   : > { %v3550_v30 = vadd.bf16 %v9500_v51, %v3490_v44  ;;  %v8097_v44 = vld [vmem:[#allocation8 + $0xf4] ss:$8 sps:$4 sm:$0xff]  }
 0x5f4   : > { %v3551_v32 = vadd.bf16 %v9503_v53, %v3491_v29  ;;  %v8095_v29 = vld [vmem:[#allocation8 + $0xf0] ss:$8 sps:$4 sm:$0xff]   ;;  %4329 = vmatprep.subr.bf16.mxu1 %v8097_v44  ;;  %v8104_v44 = vld [vmem:[#allocation10 + $0x20] ss:$8 sps:$4 sm:$0xff]  }
 0x5f5   : > { %v3582_v37 = vmax.bf16 %v8449_v1, %v3550_v30 }
 0x5f6   : > { %v3405_v33 = vpop.f32.mrb[164].mxu0  ;;  %v3583_v34 = vmax.bf16 %v8449_v1, %v3551_v32  ;;  %4330 = vmatpush1.bf16.msra.mxu1 %v8095_v29 }
 0x5f7   : > { %v3407_v36 = vpop.f32.mrb[165].mxu0 }
 0x5f8   : > { %v3409_v38 = vpop.f32.mrb[166].mxu0  ;;  %3902 = vmatprep.mubr.bf16.mxu1 %v3583_v34 }
 0x5f9   : > { %v3492_v43 = vpack.c.bf16 %v3409_v38, %v3405_v33  ;;  %v3411_v45 = vpop.f32.mrb[167].mxu0  ;;  %3903 = vmatmul.mubr.bf16.gmra.mrb[160].mxu1 %v3582_v37 }
 0x5fa   : > { %v3493_v46 = vpack.c.bf16 %v3411_v45, %v3407_v36 }
 0x5fb   : > { %v3552_v47 = vadd.bf16 %v9500_v51, %v3492_v43 }
 0x5fc   : > { %v3553_v48 = vadd.bf16 %v9503_v53, %v3493_v46 }
 0x5fd   : > { %v3584_v55 = vmax.bf16 %v8449_v1, %v3552_v47 }
 0x5fe   : > { %v3415_v50 = vpop.f32.mrb[168].mxu0  ;;  %v3585_v52 = vmax.bf16 %v8449_v1, %v3553_v48 }
 0x5ff   : > { %v3417_v54 = vpop.f32.mrb[169].mxu0 }
 0x600   : > { %v3419_v58 = vpop.f32.mrb[170].mxu0  ;;  %3912 = vmatprep.mubr.bf16.mxu1 %v3585_v52 }
 0x601   : > { %v3494_v60 = vpack.c.bf16 %v3419_v58, %v3415_v50  ;;  %v3421_v23 = vpop.f32.mrb[171].mxu0  ;;  %3913 = vmatmul.mubr.bf16.gmra.mrb[164].mxu1 %v3584_v55 }
 0x602   : > { %v3495_v62 = vpack.c.bf16 %v3421_v23, %v3417_v54 }
 0x603   : > { %v3554_v59 = vadd.bf16 %v9500_v51, %v3494_v60 }
 0x604   : > { %v3555_v2 = vadd.bf16 %v9503_v53, %v3495_v62 }
 0x605   : > { %v3586_v63 = vmax.bf16 %v8449_v1, %v3554_v59 }
 0x606   : > { %v3425_v5 = vpop.f32.mrb[172].mxu0  ;;  %v3587_v7 = vmax.bf16 %v8449_v1, %v3555_v2 }
 0x607   : > { %v3427_v40 = vpop.f32.mrb[173].mxu0 }
 0x608   : > { %v3429_v9 = vpop.f32.mrb[174].mxu0  ;;  %3922 = vmatprep.mubr.bf16.mxu1 %v3587_v7 }
 0x609   : > { %v3496_v3 = vpack.c.bf16 %v3429_v9, %v3425_v5  ;;  %v3431_v10 = vpop.f32.mrb[175].mxu0  ;;  %3923 = vmatmul.mubr.bf16.gmra.mrb[168].mxu1 %v3586_v63 }
 0x60a   : > { %v3497_v11 = vpack.c.bf16 %v3431_v10, %v3427_v40 }
 0x60b   : > { %v3556_v14 = vadd.bf16 %v9500_v51, %v3496_v3 }
 0x60c   : > { %v3557_v15 = vadd.bf16 %v9503_v53, %v3497_v11 }
 0x60d   : > { %v3588_v19 = vmax.bf16 %v8449_v1, %v3556_v14 }
 0x60e   : > { %v3435_v16 = vpop.f32.mrb[176].mxu0  ;;  %v3589_v17 = vmax.bf16 %v8449_v1, %v3557_v15 }
 0x60f   : > { %v3437_v18 = vpop.f32.mrb[177].mxu0 }
 0x610   : > { %v3439_v22 = vpop.f32.mrb[178].mxu0  ;;  %3932 = vmatprep.mubr.bf16.mxu1 %v3589_v17 }
 0x611   : > { %v3498_v57 = vpack.c.bf16 %v3439_v22, %v3435_v16  ;;  %v3441_v25 = vpop.f32.mrb[179].mxu0  ;;  %3933 = vmatmul.mubr.bf16.gmra.mrb[172].mxu1 %v3588_v19  ;;  %v8100_v19 = vld [vmem:[#allocation10 + $0x4] ss:$8 sps:$4 sm:$0xff]   ;;  %v8101_v22 = vld [vmem:[#allocation10 + $0x10] ss:$8 sps:$4 sm:$0xff]  }
 0x612   : > { %v3499_v26 = vpack.c.bf16 %v3441_v25, %v3437_v18  ;;  %v8098_v18 = vld [vmem:[#allocation10] ss:$8 sps:$4 sm:$0xff]   ;;  %4808 = vmatprep.subr.bf16.mxu0 %v8100_v19 }
 0x613   : > { %v3558_v30 = vadd.bf16 %v9500_v51, %v3498_v57  ;;  %4809 = vmatpush1.bf16.msra.mxu0 %v8098_v18  ;;  %v8103_v57 = vld [vmem:[#allocation10 + $0x14] ss:$8 sps:$4 sm:$0xff]  }
 0x614   : > { %v3559_v32 = vadd.bf16 %v9503_v53, %v3499_v26  ;;  %v4015_v25 = vld [vmem:[%s10458_s13] sm:$0x3]  ;;  %4810 = vmatprep.subr.bf16.mxu0 %v8103_v57  ;;  %v8106_v26 = vld [vmem:[#allocation10 + $0x24] ss:$8 sps:$4 sm:$0xff]  }
 0x615   : > { %v3590_v37 = vmax.bf16 %v8449_v1, %v3558_v30 }
 0x616   : > { %v3445_v33 = vpop.f32.mrb[180].mxu0  ;;  %v3591_v34 = vmax.bf16 %v8449_v1, %v3559_v32 }
 0x617   : > { %v3447_v36 = vpop.f32.mrb[181].mxu0  ;;  %4811 = vmatpush1.bf16.msra.mxu0 %v8101_v22 }
 0x618   : > { %v3449_v38 = vpop.f32.mrb[182].mxu0  ;;  %3942 = vmatprep.mubr.bf16.mxu1 %v3591_v34  ;;  %4812 = vmatprep.subr.bf16.mxu0 %v8106_v26  ;;  %v8107_v34 = vld [vmem:[#allocation10 + $0x30] ss:$8 sps:$4 sm:$0xff]   ;;  %v8127_v26 = vld [vmem:[#allocation10 + $0x94] ss:$8 sps:$4 sm:$0xff]  }
 0x619   : > { %v3500_v43 = vpack.c.bf16 %v3449_v38, %v3445_v33  ;;  %v3451_v45 = vpop.f32.mrb[183].mxu0  ;;  %3943 = vmatmul.mubr.bf16.gmra.mrb[176].mxu1 %v3590_v37 }
 0x61a   : > { %v3501_v46 = vpack.c.bf16 %v3451_v45, %v3447_v36  ;;  %v8109_v36 = vld [vmem:[#allocation10 + $0x34] ss:$8 sps:$4 sm:$0xff]  }
 0x61b   : > { %v3560_v47 = vadd.bf16 %v9500_v51, %v3500_v43  ;;  %4813 = vmatpush1.bf16.msra.mxu0 %v8104_v44 }
 0x61c   : > { %v3561_v48 = vadd.bf16 %v9503_v53, %v3501_v46  ;;  %4814 = vmatprep.subr.bf16.mxu0 %v8109_v36 }
 0x61d   : > { %v3592_v55 = vmax.bf16 %v8449_v1, %v3560_v47 }
 0x61e   : > { %v3455_v50 = vpop.f32.mrb[184].mxu0  ;;  %v3593_v52 = vmax.bf16 %v8449_v1, %v3561_v48 }
 0x61f   : > { %v3457_v54 = vpop.f32.mrb[185].mxu0  ;;  %4815 = vmatpush1.bf16.msra.mxu0 %v8107_v34  ;;  %v8130_v34 = vld [vmem:[#allocation10 + $0xa4] ss:$8 sps:$4 sm:$0xff]  }
 0x620   : > { %v3459_v58 = vpop.f32.mrb[186].mxu0  ;;  %3952 = vmatprep.mubr.bf16.mxu1 %v3593_v52  ;;  %v8112_v52 = vld [vmem:[#allocation10 + $0x44] ss:$8 sps:$4 sm:$0xff]  }
 0x621   : > { %v3502_v60 = vpack.c.bf16 %v3459_v58, %v3455_v50  ;;  %v3461_v23 = vpop.f32.mrb[187].mxu0  ;;  %3953 = vmatmul.mubr.bf16.gmra.mrb[180].mxu1 %v3592_v55  ;;  %v8110_v50 = vld [vmem:[#allocation10 + $0x40] ss:$8 sps:$4 sm:$0xff]   ;;  %v8115_v55 = vld [vmem:[#allocation10 + $0x54] ss:$8 sps:$4 sm:$0xff]   ;;  %4816 = vmatprep.subr.bf16.mxu0 %v8112_v52 }
 0x622   : > { %v3503_v62 = vpack.c.bf16 %v3461_v23, %v3457_v54  ;;  %v8113_v23 = vld [vmem:[#allocation10 + $0x50] ss:$8 sps:$4 sm:$0xff]  }
 0x623   : > { %v3562_v59 = vadd.bf16 %v9500_v51, %v3502_v60  ;;  %4817 = vmatpush1.bf16.msra.mxu0 %v8110_v50 }
 0x624   : > { %v3563_v2 = vadd.bf16 %v9503_v53, %v3503_v62  ;;  %4818 = vmatprep.subr.bf16.mxu0 %v8115_v55  ;;  %v8118_v62 = vld [vmem:[#allocation10 + $0x64] ss:$8 sps:$4 sm:$0xff]  }
 0x625   : > { %v3594_v63 = vmax.bf16 %v8449_v1, %v3562_v59 }
 0x626   : > { %v3465_v5 = vpop.f32.mrb[188].mxu0  ;;  %v3595_v7 = vmax.bf16 %v8449_v1, %v3563_v2 }
 0x627   : > { %v3467_v40 = vpop.f32.mrb[189].mxu0  ;;  %4819 = vmatpush1.bf16.msra.mxu0 %v8113_v23  ;;  %v8131_v23 = vld [vmem:[#allocation10 + $0xb0] ss:$8 sps:$4 sm:$0xff]  }
 0x628   : > { %v3469_v9 = vpop.f32.mrb[190].mxu0  ;;  %3962 = vmatprep.mubr.bf16.mxu1 %v3595_v7  ;;  %4820 = vmatprep.subr.bf16.mxu0 %v8118_v62  ;;  %v8136_v62 = vld [vmem:[#allocation10 + $0xc4] ss:$8 sps:$4 sm:$0xff]  }
 0x629   : > { %v3504_v3 = vpack.c.bf16 %v3469_v9, %v3465_v5  ;;  %v3471_v10 = vpop.f32.mrb[191].mxu0  ;;  %3963 = vmatmul.mubr.bf16.gmra.mrb[184].mxu1 %v3594_v63  ;;  %v8116_v63 = vld [vmem:[#allocation10 + $0x60] ss:$8 sps:$4 sm:$0xff]  }
 0x62a   : > { %v3505_v11 = vpack.c.bf16 %v3471_v10, %v3467_v40  ;;  %v8121_v10 = vld [vmem:[#allocation10 + $0x74] ss:$8 sps:$4 sm:$0xff]  }
 0x62b   : > { %v3564_v14 = vadd.bf16 %v9500_v51, %v3504_v3  ;;  %v4020_v51 = vrot.slane %v4015_v25, %v9053_v39  ;;  %4821 = vmatpush1.bf16.msra.mxu0 %v8116_v63  ;;  %v8134_v63 = vld [vmem:[#allocation10 + $0xc0] ss:$8 sps:$4 sm:$0xff]  }
 0x62c   : > { %v3565_v15 = vadd.bf16 %v9503_v53, %v3505_v11  ;;  %v4024_v53 = vrot.slane %v4015_v25, %v9058_v41  ;;  %4822 = vmatprep.subr.bf16.mxu0 %v8121_v10  ;;  %v8139_v10 = vld [vmem:[#allocation10 + $0xd4] ss:$8 sps:$4 sm:$0xff]  }
 0x62d   : > { %v3596_v17 = vmax.bf16 %v8449_v1, %v3564_v14  ;;  %v4027_v29 = vpack.c.bf16 %v4020_v51, %v4020_v51  ;;  %v8122_v51 = vld [vmem:[#allocation10 + $0x80] ss:$8 sps:$4 sm:$0xff]  }
 0x62e   : > { %v3597_v16 = vmax.bf16 %v8449_v1, %v3565_v15  ;;  %v4028_v30 = vpack.c.bf16 %v4024_v53, %v4024_v53 }
 0x62f   : > { %v4030_v32 = vpack.i.b16 %v4027_v29, %v4027_v29 }
 0x630   : > { %3972 = vmatprep.mubr.bf16.mxu1 %v3597_v16  ;;  %v4037_v33 = vpack.i.b16 %v4028_v30, %v4028_v30  ;;  %v8119_v16 = vld [vmem:[#allocation10 + $0x70] ss:$8 sps:$4 sm:$0xff]  }
 0x631   : > { %3973 = vmatmul.mubr.bf16.gmra.mrb[188].mxu1 %v3596_v17  ;;  %v9575_v43 = vrot.slane %v4030_v32, %v9053_v39  ;;  %v8124_v17 = vld [vmem:[#allocation10 + $0x84] ss:$8 sps:$4 sm:$0xff]   ;;  %4823 = vmatpush1.bf16.msra.mxu0 %v8119_v16  ;;  %v8137_v16 = vld [vmem:[#allocation10 + $0xd0] ss:$8 sps:$4 sm:$0xff]  }
 0x632   : > { %v9578_v46 = vrot.slane %v4037_v33, %v9053_v39  ;;  %4824 = vmatprep.subr.bf16.mxu0 %v8124_v17  ;;  %v8125_v33 = vld [vmem:[#allocation10 + $0x90] ss:$8 sps:$4 sm:$0xff]   ;;  %v8142_v17 = vld [vmem:[#allocation10 + $0xe4] ss:$8 sps:$4 sm:$0xff]  }
 0x635   : > { %4825 = vmatpush1.bf16.msra.mxu0 %v8122_v51  ;;  %v8140_v51 = vld [vmem:[#allocation10 + $0xe0] ss:$8 sps:$4 sm:$0xff]  }
 0x636   : > { %4826 = vmatprep.subr.bf16.mxu0 %v8127_v26 }
 0x639   : > { %4827 = vmatpush1.bf16.msra.mxu0 %v8125_v33 }
 0x63a   : > { %4828 = vmatprep.subr.bf16.mxu0 %v8130_v34 }
 0x68c   : > { %v3824_v37 = vpop.f32.mrb[128].mxu1 }
 0x68d   : > { %v3826_v38 = vpop.f32.mrb[129].mxu1 }
 0x68e   : > { %v3828_v45 = vpop.f32.mrb[130].mxu1 }
 0x68f   : > { %v3983_v47 = vpack.c.bf16 %v3828_v45, %v3824_v37  ;;  %v3830_v48 = vpop.f32.mrb[131].mxu1 }
 0x690   : > { %v3984_v54 = vpack.c.bf16 %v3830_v48, %v3826_v38  ;;  %v8128_v48 = vld [vmem:[#allocation10 + $0xa0] ss:$8 sps:$4 sm:$0xff]  }
 0x691   : > { %v4043_v58 = vadd.bf16 %v9575_v43, %v3983_v47  ;;  %4829 = vmatpush1.bf16.msra.mxu0 %v8128_v48 }
 0x692   : > { %v4044_v60 = vadd.bf16 %v9578_v46, %v3984_v54  ;;  %v8133_v54 = vld [vmem:[#allocation10 + $0xb4] ss:$8 sps:$4 sm:$0xff]  }
 0x693   : > { %v4075_v5 = vmax.bf16 %v8449_v1, %v4043_v58  ;;  %4830 = vmatprep.subr.bf16.mxu0 %v8133_v54 }
 0x694   : > { %v3834_v59 = vpop.f32.mrb[132].mxu1  ;;  %v4076_v2 = vmax.bf16 %v8449_v1, %v4044_v60 }
 0x695   : > { %v3836_v7 = vpop.f32.mrb[133].mxu1  ;;  %4831 = vmatpush1.bf16.msra.mxu0 %v8131_v23 }
 0x696   : > { %v3838_v40 = vpop.f32.mrb[134].mxu1  ;;  %4331 = vmatprep.mubr.bf16.mxu1 %v4076_v2  ;;  %4832 = vmatprep.subr.bf16.mxu0 %v8136_v62 }
 0x697   : > { %v3985_v9 = vpack.c.bf16 %v3838_v40, %v3834_v59  ;;  %v3840_v3 = vpop.f32.mrb[135].mxu1  ;;  %4332 = vmatmul.mubr.bf16.vlgmr.msra.gmra.mrb[192].mxu1 %v4075_v5 }
 0x698   : > { %v3986_v11 = vpack.c.bf16 %v3840_v3, %v3836_v7 }
 0x699   : > { %v4045_v14 = vadd.bf16 %v9575_v43, %v3985_v9  ;;  %4833 = vmatpush1.bf16.msra.mxu0 %v8134_v63 }
 0x69a   : > { %v4046_v15 = vadd.bf16 %v9578_v46, %v3986_v11  ;;  %4834 = vmatprep.subr.bf16.mxu0 %v8139_v10 }
 0x69b   : > { %v4077_v57 = vmax.bf16 %v8449_v1, %v4045_v14 }
 0x69c   : > { %v3844_v18 = vpop.f32.mrb[136].mxu1  ;;  %v4078_v19 = vmax.bf16 %v8449_v1, %v4046_v15 }
 0x69d   : > { %v3846_v22 = vpop.f32.mrb[137].mxu1  ;;  %4835 = vmatpush1.bf16.msra.mxu0 %v8137_v16 }
 0x69e   : > { %v3848_v25 = vpop.f32.mrb[138].mxu1  ;;  %4341 = vmatprep.mubr.bf16.mxu1 %v4078_v19  ;;  %4836 = vmatprep.subr.bf16.mxu0 %v8142_v17 }
 0x69f   : > { %v3987_v53 = vpack.c.bf16 %v3848_v25, %v3844_v18  ;;  %v3850_v44 = vpop.f32.mrb[139].mxu1  ;;  %4342 = vmatmul.mubr.bf16.gmra.mrb[196].mxu1 %v4077_v57 }
 0x6a0   : > { %v3988_v29 = vpack.c.bf16 %v3850_v44, %v3846_v22 }
 0x6a1   : > { %v4047_v30 = vadd.bf16 %v9575_v43, %v3987_v53  ;;  %4837 = vmatpush1.bf16.msra.mxu0 %v8140_v51 }
 0x6a2   : > { %v4048_v32 = vadd.bf16 %v9578_v46, %v3988_v29 }
 0x6a3   : > { %v4079_v45 = vmax.bf16 %v8449_v1, %v4047_v30 }
 0x6a4   : > { %v3854_v36 = vpop.f32.mrb[140].mxu1  ;;  %v4080_v37 = vmax.bf16 %v8449_v1, %v4048_v32 }
 0x6a5   : > { %v3856_v38 = vpop.f32.mrb[141].mxu1 }
 0x6a6   : > { %v3858_v47 = vpop.f32.mrb[142].mxu1  ;;  %4351 = vmatprep.mubr.bf16.mxu1 %v4080_v37 }
 0x6a7   : > { %v3989_v50 = vpack.c.bf16 %v3858_v47, %v3854_v36  ;;  %v3860_v52 = vpop.f32.mrb[143].mxu1  ;;  %4352 = vmatmul.mubr.bf16.gmra.mrb[200].mxu1 %v4079_v45 }
 0x6a8   : > { %v3990_v55 = vpack.c.bf16 %v3860_v52, %v3856_v38 }
 0x6a9   : > { %v4049_v58 = vadd.bf16 %v9575_v43, %v3989_v50 }
 0x6aa   : > { %v4050_v60 = vadd.bf16 %v9578_v46, %v3990_v55 }
 0x6ab   : > { %v4081_v7 = vmax.bf16 %v8449_v1, %v4049_v58 }
 0x6ac   : > { %v3864_v59 = vpop.f32.mrb[144].mxu1  ;;  %v4082_v2 = vmax.bf16 %v8449_v1, %v4050_v60 }
 0x6ad   : > { %v3866_v5 = vpop.f32.mrb[145].mxu1 }
 0x6ae   : > { %v3868_v40 = vpop.f32.mrb[146].mxu1  ;;  %4361 = vmatprep.mubr.bf16.mxu1 %v4082_v2 }
 0x6af   : > { %v3991_v9 = vpack.c.bf16 %v3868_v40, %v3864_v59  ;;  %v3870_v3 = vpop.f32.mrb[147].mxu1  ;;  %4362 = vmatmul.mubr.bf16.gmra.mrb[204].mxu1 %v4081_v7 }
 0x6b0   : > { %v3992_v11 = vpack.c.bf16 %v3870_v3, %v3866_v5 }
 0x6b1   : > { %v4051_v14 = vadd.bf16 %v9575_v43, %v3991_v9 }
 0x6b2   : > { %v4052_v15 = vadd.bf16 %v9578_v46, %v3992_v11 }
 0x6b3   : > { %v4083_v57 = vmax.bf16 %v8449_v1, %v4051_v14 }
 0x6b4   : > { %v3874_v18 = vpop.f32.mrb[148].mxu1  ;;  %v4084_v19 = vmax.bf16 %v8449_v1, %v4052_v15 }
 0x6b5   : > { %v3876_v22 = vpop.f32.mrb[149].mxu1 }
 0x6b6   : > { %v3878_v25 = vpop.f32.mrb[150].mxu1  ;;  %4371 = vmatprep.mubr.bf16.mxu1 %v4084_v19 }
 0x6b7   : > { %v3993_v53 = vpack.c.bf16 %v3878_v25, %v3874_v18  ;;  %v3880_v44 = vpop.f32.mrb[151].mxu1  ;;  %4372 = vmatmul.mubr.bf16.gmra.mrb[208].mxu1 %v4083_v57 }
 0x6b8   : > { %v3994_v26 = vpack.c.bf16 %v3880_v44, %v3876_v22 }
 0x6b9   : > { %v4053_v29 = vadd.bf16 %v9575_v43, %v3993_v53 }
 0x6ba   : > { %v4054_v30 = vadd.bf16 %v9578_v46, %v3994_v26 }
 0x6bb   : > { %v4085_v36 = vmax.bf16 %v8449_v1, %v4053_v29 }
 0x6bc   : > { %v3884_v32 = vpop.f32.mrb[152].mxu1  ;;  %v4086_v33 = vmax.bf16 %v8449_v1, %v4054_v30 }
 0x6bd   : > { %v3886_v34 = vpop.f32.mrb[153].mxu1 }
 0x6be   : > { %v3888_v37 = vpop.f32.mrb[154].mxu1  ;;  %4381 = vmatprep.mubr.bf16.mxu1 %v4086_v33 }
 0x6bf   : > { %v3995_v38 = vpack.c.bf16 %v3888_v37, %v3884_v32  ;;  %v3890_v45 = vpop.f32.mrb[155].mxu1  ;;  %4382 = vmatmul.mubr.bf16.gmra.mrb[212].mxu1 %v4085_v36 }
 0x6c0   : > { %v3996_v47 = vpack.c.bf16 %v3890_v45, %v3886_v34 }
 0x6c1   : > { %v4055_v48 = vadd.bf16 %v9575_v43, %v3995_v38 }
 0x6c2   : > { %v4056_v50 = vadd.bf16 %v9578_v46, %v3996_v47 }
 0x6c3   : > { %v4087_v58 = vmax.bf16 %v8449_v1, %v4055_v48 }
 0x6c4   : > { %v3894_v52 = vpop.f32.mrb[156].mxu1  ;;  %v4088_v54 = vmax.bf16 %v8449_v1, %v4056_v50 }
 0x6c5   : > { %v3896_v55 = vpop.f32.mrb[157].mxu1 }
 0x6c6   : > { %v3898_v60 = vpop.f32.mrb[158].mxu1  ;;  %4391 = vmatprep.mubr.bf16.mxu1 %v4088_v54 }
 0x6c7   : > { %v3997_v23 = vpack.c.bf16 %v3898_v60, %v3894_v52  ;;  %v3900_v62 = vpop.f32.mrb[159].mxu1  ;;  %4392 = vmatmul.mubr.bf16.gmra.mrb[216].mxu1 %v4087_v58 }
 0x6c8   : > { %v3998_v59 = vpack.c.bf16 %v3900_v62, %v3896_v55 }
 0x6c9   : > { %v4057_v2 = vadd.bf16 %v9575_v43, %v3997_v23 }
 0x6ca   : > { %v4058_v5 = vadd.bf16 %v9578_v46, %v3998_v59 }
 0x6cb   : > { %v4089_v9 = vmax.bf16 %v8449_v1, %v4057_v2 }
 0x6cc   : > { %v3904_v7 = vpop.f32.mrb[160].mxu1  ;;  %v4090_v40 = vmax.bf16 %v8449_v1, %v4058_v5 }
 0x6cd   : > { %v3906_v63 = vpop.f32.mrb[161].mxu1 }
 0x6ce   : > { %v3908_v3 = vpop.f32.mrb[162].mxu1  ;;  %4401 = vmatprep.mubr.bf16.mxu1 %v4090_v40 }
 0x6cf   : > { %v3999_v10 = vpack.c.bf16 %v3908_v3, %v3904_v7  ;;  %v3910_v11 = vpop.f32.mrb[163].mxu1  ;;  %4402 = vmatmul.mubr.bf16.gmra.mrb[220].mxu1 %v4089_v9 }
 0x6d0   : > { %v4000_v14 = vpack.c.bf16 %v3910_v11, %v3906_v63 }
 0x6d1   : > { %v4059_v15 = vadd.bf16 %v9575_v43, %v3999_v10  ;;  %v8145_v10 = vld [vmem:[#allocation10 + $0xf4] ss:$8 sps:$4 sm:$0xff]  }
 0x6d2   : > { %v4060_v16 = vadd.bf16 %v9578_v46, %v4000_v14  ;;  %v8143_v14 = vld [vmem:[#allocation10 + $0xf0] ss:$8 sps:$4 sm:$0xff]   ;;  %4838 = vmatprep.subr.bf16.mxu0 %v8145_v10  ;;  %v9652_v10 = vld [vmem:[#allocation11 + $0x24] ss:$8 sps:$4 sm:$0xff]  }
 0x6d3   : > { %v4091_v22 = vmax.bf16 %v8449_v1, %v4059_v15  ;;  %4839 = vmatpush1.bf16.msra.mxu0 %v8143_v14  ;;  %v9654_v14 = vld [vmem:[#allocation11 + $0x20] ss:$8 sps:$4 sm:$0xff]  }
 0x6d4   : > { %v3914_v17 = vpop.f32.mrb[164].mxu1  ;;  %v4092_v18 = vmax.bf16 %v8449_v1, %v4060_v16 }
 0x6d5   : > { %v3916_v19 = vpop.f32.mrb[165].mxu1 }
 0x6d6   : > { %v3918_v57 = vpop.f32.mrb[166].mxu1  ;;  %4411 = vmatprep.mubr.bf16.mxu1 %v4092_v18 }
 0x6d7   : > { %v4001_v25 = vpack.c.bf16 %v3918_v57, %v3914_v17  ;;  %v3920_v51 = vpop.f32.mrb[167].mxu1  ;;  %4412 = vmatmul.mubr.bf16.gmra.mrb[224].mxu1 %v4091_v22 }
 0x6d8   : > { %v4002_v53 = vpack.c.bf16 %v3920_v51, %v3916_v19 }
 0x6d9   : > { %v4061_v44 = vadd.bf16 %v9575_v43, %v4001_v25 }
 0x6da   : > { %v4062_v26 = vadd.bf16 %v9578_v46, %v4002_v53 }
 0x6db   : > { %v4093_v33 = vmax.bf16 %v8449_v1, %v4061_v44 }
 0x6dc   : > { %v3924_v29 = vpop.f32.mrb[168].mxu1  ;;  %v4094_v30 = vmax.bf16 %v8449_v1, %v4062_v26 }
 0x6dd   : > { %v3926_v32 = vpop.f32.mrb[169].mxu1 }
 0x6de   : > { %v3928_v34 = vpop.f32.mrb[170].mxu1  ;;  %4421 = vmatprep.mubr.bf16.mxu1 %v4094_v30 }
 0x6df   : > { %v4003_v36 = vpack.c.bf16 %v3928_v34, %v3924_v29  ;;  %v3930_v37 = vpop.f32.mrb[171].mxu1  ;;  %4422 = vmatmul.mubr.bf16.gmra.mrb[228].mxu1 %v4093_v33 }
 0x6e0   : > { %v4004_v38 = vpack.c.bf16 %v3930_v37, %v3926_v32 }
 0x6e1   : > { %v4063_v45 = vadd.bf16 %v9575_v43, %v4003_v36 }
 0x6e2   : > { %v4064_v47 = vadd.bf16 %v9578_v46, %v4004_v38 }
 0x6e3   : > { %v4095_v54 = vmax.bf16 %v8449_v1, %v4063_v45 }
 0x6e4   : > { %v3934_v48 = vpop.f32.mrb[172].mxu1  ;;  %v4096_v50 = vmax.bf16 %v8449_v1, %v4064_v47 }
 0x6e5   : > { %v3936_v52 = vpop.f32.mrb[173].mxu1 }
 0x6e6   : > { %v3938_v55 = vpop.f32.mrb[174].mxu1  ;;  %4431 = vmatprep.mubr.bf16.mxu1 %v4096_v50 }
 0x6e7   : > { %v4005_v58 = vpack.c.bf16 %v3938_v55, %v3934_v48  ;;  %v3940_v60 = vpop.f32.mrb[175].mxu1  ;;  %4432 = vmatmul.mubr.bf16.gmra.mrb[232].mxu1 %v4095_v54 }
 0x6e8   : > { %v4006_v23 = vpack.c.bf16 %v3940_v60, %v3936_v52 }
 0x6e9   : > { %v4065_v62 = vadd.bf16 %v9575_v43, %v4005_v58 }
 0x6ea   : > { %v4066_v59 = vadd.bf16 %v9578_v46, %v4006_v23 }
 0x6eb   : > { %v4097_v40 = vmax.bf16 %v8449_v1, %v4065_v62 }
 0x6ec   : > { %v3944_v2 = vpop.f32.mrb[176].mxu1  ;;  %v4098_v5 = vmax.bf16 %v8449_v1, %v4066_v59 }
 0x6ed   : > { %v3946_v7 = vpop.f32.mrb[177].mxu1 }
 0x6ee   : > { %v3948_v63 = vpop.f32.mrb[178].mxu1  ;;  %4441 = vmatprep.mubr.bf16.mxu1 %v4098_v5 }
 0x6ef   : > { %v4007_v9 = vpack.c.bf16 %v3948_v63, %v3944_v2  ;;  %v3950_v3 = vpop.f32.mrb[179].mxu1  ;;  %4442 = vmatmul.mubr.bf16.gmra.mrb[236].mxu1 %v4097_v40  ;;  %v8146_v40 = vld [vmem:[#allocation11] ss:$8 sps:$4 sm:$0xff]   ;;  %v8151_v63 = vld [vmem:[#allocation11 + $0x14] ss:$8 sps:$4 sm:$0xff]  }
 0x6f0   : > { %v4008_v11 = vpack.c.bf16 %v3950_v3, %v3946_v7  ;;  %v8148_v7 = vld [vmem:[#allocation11 + $0x4] ss:$8 sps:$4 sm:$0xff]  }
 0x6f1   : > { %v4067_v15 = vadd.bf16 %v9575_v43, %v4007_v9  ;;  %5753 = vmatprep.subr.bf16.mxu0 %v8148_v7  ;;  %7625 = vmatprep.subr.bf16.mxu1 %v8148_v7  ;;  %v9644_v9 = vld [vmem:[#allocation11 + $0x10] ss:$8 sps:$4 sm:$0xff]  }
 0x6f2   : > { %v4068_v16 = vadd.bf16 %v9578_v46, %v4008_v11  ;;  %7641 = vmatpush1.bf16.msra.mxu1 %v8146_v40 }
 0x6f3   : > { %v4099_v22 = vmax.bf16 %v8449_v1, %v4067_v15  ;;  %7626 = vmatprep.subr.bf16.mxu1 %v8151_v63 }
 0x6f4   : > { %v3954_v17 = vpop.f32.mrb[180].mxu1  ;;  %v4100_v18 = vmax.bf16 %v8449_v1, %v4068_v16 }
 0x6f5   : > { %v3956_v19 = vpop.f32.mrb[181].mxu1 }
 0x6f6   : > { %v3958_v57 = vpop.f32.mrb[182].mxu1  ;;  %4451 = vmatprep.mubr.bf16.mxu1 %v4100_v18  ;;  %7642 = vmatpush1.bf16.msra.mxu1 %v9644_v9  ;;  %v9658_v18 = vld [vmem:[#allocation11 + $0x34] ss:$8 sps:$4 sm:$0xff]  }
 0x6f7   : > { %v4009_v25 = vpack.c.bf16 %v3958_v57, %v3954_v17  ;;  %v3960_v51 = vpop.f32.mrb[183].mxu1  ;;  %4452 = vmatmul.mubr.bf16.gmra.mrb[240].mxu1 %v4099_v22  ;;  %7627 = vmatprep.subr.bf16.mxu1 %v9652_v10 }
 0x6f8   : > { %v4010_v53 = vpack.c.bf16 %v3960_v51, %v3956_v19  ;;  %v9660_v19 = vld [vmem:[#allocation11 + $0x30] ss:$8 sps:$4 sm:$0xff]  }
 0x6f9   : > { %v4069_v44 = vadd.bf16 %v9575_v43, %v4009_v25 }
 0x6fa   : > { %v4070_v26 = vadd.bf16 %v9578_v46, %v4010_v53  ;;  %7643 = vmatpush1.bf16.msra.mxu1 %v9654_v14 }
 0x6fb   : > { %v4101_v33 = vmax.bf16 %v8449_v1, %v4069_v44  ;;  %7628 = vmatprep.subr.bf16.mxu1 %v9658_v18 }
 0x6fc   : > { %v3964_v29 = vpop.f32.mrb[184].mxu1  ;;  %v4102_v30 = vmax.bf16 %v8449_v1, %v4070_v26 }
 0x6fd   : > { %v3966_v32 = vpop.f32.mrb[185].mxu1 }
 0x6fe   : > { %v3968_v34 = vpop.f32.mrb[186].mxu1  ;;  %4461 = vmatprep.mubr.bf16.mxu1 %v4102_v30  ;;  %7644 = vmatpush1.bf16.msra.mxu1 %v9660_v19 }
 0x6ff   : > { %v4011_v36 = vpack.c.bf16 %v3968_v34, %v3964_v29  ;;  %v3970_v37 = vpop.f32.mrb[187].mxu1  ;;  %4462 = vmatmul.mubr.bf16.gmra.mrb[244].mxu1 %v4101_v33  ;;  %v9670_v29 = vld [vmem:[#allocation11 + $0x44] ss:$8 sps:$4 sm:$0xff]   ;;  %v9679_v34 = vld [vmem:[#allocation11 + $0x54] ss:$8 sps:$4 sm:$0xff]  }
 0x700   : > { %v4012_v38 = vpack.c.bf16 %v3970_v37, %v3966_v32  ;;  %v9672_v32 = vld [vmem:[#allocation11 + $0x40] ss:$8 sps:$4 sm:$0xff]   ;;  %7629 = vmatprep.subr.bf16.mxu1 %v9670_v29 }
 0x701   : > { %v4071_v45 = vadd.bf16 %v9575_v43, %v4011_v36 }
 0x702   : > { %v4072_v47 = vadd.bf16 %v9578_v46, %v4012_v38  ;;  %7645 = vmatpush1.bf16.msra.mxu1 %v9672_v32 }
 0x703   : > { %v4103_v54 = vmax.bf16 %v8449_v1, %v4071_v45  ;;  %7630 = vmatprep.subr.bf16.mxu1 %v9679_v34  ;;  %v9686_v45 = vld [vmem:[#allocation11 + $0x50] ss:$8 sps:$4 sm:$0xff]  }
 0x704   : > { %v3974_v48 = vpop.f32.mrb[188].mxu1  ;;  %v4104_v50 = vmax.bf16 %v8449_v1, %v4072_v47  ;;  %v9693_v47 = vld [vmem:[#allocation11 + $0x64] ss:$8 sps:$4 sm:$0xff]  }
 0x705   : > { %v3976_v52 = vpop.f32.mrb[189].mxu1 }
 0x706   : > { %v3978_v55 = vpop.f32.mrb[190].mxu1  ;;  %4471 = vmatprep.mubr.bf16.mxu1 %v4104_v50  ;;  %7646 = vmatpush1.bf16.msra.mxu1 %v9686_v45 }
 0x707   : > { %v4013_v58 = vpack.c.bf16 %v3978_v55, %v3974_v48  ;;  %v3980_v60 = vpop.f32.mrb[191].mxu1  ;;  %4472 = vmatmul.mubr.bf16.gmra.mrb[248].mxu1 %v4103_v54  ;;  %7631 = vmatprep.subr.bf16.mxu1 %v9693_v47  ;;  %v9702_v55 = vld [vmem:[#allocation11 + $0x74] ss:$8 sps:$4 sm:$0xff]  }
 0x708   : > { %v4014_v23 = vpack.c.bf16 %v3980_v60, %v3976_v52 }
 0x709   : > { %v4073_v62 = vadd.bf16 %v9575_v43, %v4013_v58  ;;  %v4524_v43 = vld [vmem:[%s10460_s15] sm:$0x3] }
 0x70a   : > { %v4074_v59 = vadd.bf16 %v9578_v46, %v4014_v23  ;;  %v4529_v46 = vrot.slane %v4524_v43, %v9053_v39  ;;  %v4533_v3 = vrot.slane %v4524_v43, %v9058_v41  ;;  %7647 = vmatpush1.bf16.msra.mxu1 %v9697_v35 }
 0x70b   : > { %v4105_v5 = vmax.bf16 %v8449_v1, %v4073_v62  ;;  %7632 = vmatprep.subr.bf16.mxu1 %v9702_v55 }
 0x70c   : > { %v4106_v2 = vmax.bf16 %v8449_v1, %v4074_v59  ;;  %v4536_v11 = vpack.c.bf16 %v4529_v46, %v4529_v46  ;;  %v4537_v15 = vpack.c.bf16 %v4533_v3, %v4533_v3 }
 0x70e   : > { %4481 = vmatprep.mubr.bf16.mxu1 %v4106_v2  ;;  %v4539_v16 = vpack.i.b16 %v4536_v11, %v4536_v11  ;;  %v4546_v17 = vpack.i.b16 %v4537_v15, %v4537_v15  ;;  %7648 = vmatpush1.bf16.msra.mxu1 %v9711_v49 }
 0x70f   : > { %4482 = vmatmul.mubr.bf16.gmra.mrb[252].mxu1 %v4105_v5  ;;  %7633 = vmatprep.subr.bf16.mxu1 %v9717_v42 }
 0x710   : > { %v9664_v25 = vrot.slane %v4539_v16, %v9053_v39  ;;  %v9668_v53 = vrot.slane %v4546_v17, %v9053_v39  ;;  %v9752_v16 = vld [vmem:[#allocation11 + $0xa0] ss:$8 sps:$4 sm:$0xff]  }
 0x76a   : > { %v4333_v22 = vpop.f32.mrb[192].mxu1 }
 0x76b   : > { %v4335_v57 = vpop.f32.mrb[193].mxu1 }
 0x76c   : > { %v4337_v51 = vpop.f32.mrb[194].mxu1 }
 0x76d   : > { %v4492_v44 = vpack.c.bf16 %v4337_v51, %v4333_v22  ;;  %v4339_v26 = vpop.f32.mrb[195].mxu1 }
 0x76e   : > { %v4493_v30 = vpack.c.bf16 %v4339_v26, %v4335_v57 }
 0x76f   : > { %v4552_v33 = vadd.bf16 %v9664_v25, %v4492_v44 }
 0x770   : > { %v4553_v36 = vadd.bf16 %v9668_v53, %v4493_v30 }
 0x771   : > { %v4584_v13 = vmax.bf16 %v8449_v1, %v4552_v33  ;;  %v8187_v33 = vld [vmem:[#allocation11 + $0xd4] ss:$8 sps:$4 sm:$0xff]  }
 0x772   : > { %v4343_v37 = vpop.f32.mrb[196].mxu1  ;;  %v4585_v38 = vmax.bf16 %v8449_v1, %v4553_v36 }
 0x773   : > { %v4345_v27 = vpop.f32.mrb[197].mxu1 }
 0x774   : > { %v4347_v48 = vpop.f32.mrb[198].mxu1  ;;  %4840 = vmatprep.mubr.bf16.mxu0 %v4585_v38 }
 0x775   : > { %v4494_v50 = vpack.c.bf16 %v4347_v48, %v4343_v37  ;;  %v4349_v52 = vpop.f32.mrb[199].mxu1  ;;  %4841 = vmatmul.mubr.bf16.vlgmr.msra.gmra.mrb[192].mxu0 %v4584_v13  ;;  %v8185_v37 = vld [vmem:[#allocation11 + $0xd0] ss:$8 sps:$4 sm:$0xff]   ;;  %v8190_v13 = vld [vmem:[#allocation11 + $0xe4] ss:$8 sps:$4 sm:$0xff]  }
 0x776   : > { %v4495_v54 = vpack.c.bf16 %v4349_v52, %v4345_v27  ;;  %5754 = vmatpush1.bf16.msra.mxu0 %v8146_v40  ;;  %v9724_v40 = vld [vmem:[#allocation11 + $0x80] ss:$8 sps:$4 sm:$0xff]  }
 0x777   : > { %v4554_v20 = vadd.bf16 %v9664_v25, %v4494_v50  ;;  %5755 = vmatprep.subr.bf16.mxu0 %v8151_v63  ;;  %7649 = vmatpush1.bf16.msra.mxu1 %v9724_v40  ;;  %v8188_v52 = vld [vmem:[#allocation11 + $0xe0] ss:$8 sps:$4 sm:$0xff]  }
 0x778   : > { %v4555_v58 = vadd.bf16 %v9668_v53, %v4495_v54  ;;  %7634 = vmatprep.subr.bf16.mxu1 %v9730_v56 }
 0x779   : > { %v4586_v59 = vmax.bf16 %v8449_v1, %v4554_v20 }
 0x77a   : > { %v4353_v60 = vpop.f32.mrb[200].mxu1  ;;  %v4587_v23 = vmax.bf16 %v8449_v1, %v4555_v58  ;;  %5756 = vmatpush1.bf16.msra.mxu0 %v9644_v9 }
 0x77b   : > { %v4355_v62 = vpop.f32.mrb[201].mxu1  ;;  %5757 = vmatprep.subr.bf16.mxu0 %v9652_v10  ;;  %7650 = vmatpush1.bf16.msra.mxu1 %v9739_v4 }
 0x77c   : > { %v4357_v2 = vpop.f32.mrb[202].mxu1  ;;  %4850 = vmatprep.mubr.bf16.mxu0 %v4587_v23  ;;  %7635 = vmatprep.subr.bf16.mxu1 %v9745_v0 }
 0x77d   : > { %v4496_v5 = vpack.c.bf16 %v4357_v2, %v4353_v60  ;;  %v4359_v7 = vpop.f32.mrb[203].mxu1  ;;  %4851 = vmatmul.mubr.bf16.gmra.mrb[196].mxu0 %v4586_v59 }
 0x77e   : > { %v4497_v61 = vpack.c.bf16 %v4359_v7, %v4355_v62  ;;  %5758 = vmatpush1.bf16.msra.mxu0 %v9654_v14 }
 0x77f   : > { %v4556_v63 = vadd.bf16 %v9664_v25, %v4496_v5  ;;  %5759 = vmatprep.subr.bf16.mxu0 %v9658_v18  ;;  %7651 = vmatpush1.bf16.msra.mxu1 %v9752_v16 }
 0x780   : > { %v4557_v9 = vadd.bf16 %v9668_v53, %v4497_v61  ;;  %7636 = vmatprep.subr.bf16.mxu1 %v9758_v8 }
 0x781   : > { %v4588_v10 = vmax.bf16 %v8449_v1, %v4556_v63 }
 0x782   : > { %v4363_v43 = vpop.f32.mrb[204].mxu1  ;;  %v4589_v46 = vmax.bf16 %v8449_v1, %v4557_v9  ;;  %5760 = vmatpush1.bf16.msra.mxu0 %v9660_v19 }
 0x783   : > { %v4365_v3 = vpop.f32.mrb[205].mxu1  ;;  %5761 = vmatprep.subr.bf16.mxu0 %v9670_v29  ;;  %7652 = vmatpush1.bf16.msra.mxu1 %v9767_v24 }
 0x784   : > { %v4367_v11 = vpop.f32.mrb[206].mxu1  ;;  %4860 = vmatprep.mubr.bf16.mxu0 %v4589_v46  ;;  %7637 = vmatprep.subr.bf16.mxu1 %v8184_v21 }
 0x785   : > { %v4498_v14 = vpack.c.bf16 %v4367_v11, %v4363_v43  ;;  %v4369_v15 = vpop.f32.mrb[207].mxu1  ;;  %4861 = vmatmul.mubr.bf16.gmra.mrb[200].mxu0 %v4588_v10 }
 0x786   : > { %v4499_v12 = vpack.c.bf16 %v4369_v15, %v4365_v3  ;;  %5762 = vmatpush1.bf16.msra.mxu0 %v9672_v32 }
 0x787   : > { %v4558_v17 = vadd.bf16 %v9664_v25, %v4498_v14  ;;  %5763 = vmatprep.subr.bf16.mxu0 %v9679_v34  ;;  %7653 = vmatpush1.bf16.msra.mxu1 %v8182_v31 }
 0x788   : > { %v4559_v18 = vadd.bf16 %v9668_v53, %v4499_v12  ;;  %7638 = vmatprep.subr.bf16.mxu1 %v8187_v33 }
 0x789   : > { %v4590_v51 = vmax.bf16 %v8449_v1, %v4558_v17 }
 0x78a   : > { %v4373_v19 = vpop.f32.mrb[208].mxu1  ;;  %v4591_v22 = vmax.bf16 %v8449_v1, %v4559_v18  ;;  %5764 = vmatpush1.bf16.msra.mxu0 %v9686_v45 }
 0x78b   : > { %v4375_v57 = vpop.f32.mrb[209].mxu1  ;;  %5765 = vmatprep.subr.bf16.mxu0 %v9693_v47  ;;  %7654 = vmatpush1.bf16.msra.mxu1 %v8185_v37 }
 0x78c   : > { %v4377_v44 = vpop.f32.mrb[210].mxu1  ;;  %4870 = vmatprep.mubr.bf16.mxu0 %v4591_v22  ;;  %7639 = vmatprep.subr.bf16.mxu1 %v8190_v13 }
 0x78d   : > { %v4500_v26 = vpack.c.bf16 %v4377_v44, %v4373_v19  ;;  %v4379_v29 = vpop.f32.mrb[211].mxu1  ;;  %4871 = vmatmul.mubr.bf16.gmra.mrb[204].mxu0 %v4590_v51 }
 0x78e   : > { %v4501_v30 = vpack.c.bf16 %v4379_v29, %v4375_v57  ;;  %5766 = vmatpush1.bf16.msra.mxu0 %v9697_v35 }
 0x78f   : > { %v4560_v32 = vadd.bf16 %v9664_v25, %v4500_v26  ;;  %5767 = vmatprep.subr.bf16.mxu0 %v9702_v55  ;;  %7655 = vmatpush1.bf16.msra.mxu1 %v8188_v52 }
 0x790   : > { %v4561_v34 = vadd.bf16 %v9668_v53, %v4501_v30 }
 0x791   : > { %v4592_v45 = vmax.bf16 %v8449_v1, %v4560_v32 }
 0x792   : > { %v4383_v28 = vpop.f32.mrb[212].mxu1  ;;  %v4593_v36 = vmax.bf16 %v8449_v1, %v4561_v34  ;;  %5768 = vmatpush1.bf16.msra.mxu0 %v9711_v49 }
 0x793   : > { %v4385_v38 = vpop.f32.mrb[213].mxu1  ;;  %5769 = vmatprep.subr.bf16.mxu0 %v9717_v42 }
 0x794   : > { %v4387_v27 = vpop.f32.mrb[214].mxu1  ;;  %4880 = vmatprep.mubr.bf16.mxu0 %v4593_v36 }
 0x795   : > { %v4502_v47 = vpack.c.bf16 %v4387_v27, %v4383_v28  ;;  %v4389_v48 = vpop.f32.mrb[215].mxu1  ;;  %4881 = vmatmul.mubr.bf16.gmra.mrb[208].mxu0 %v4592_v45 }
 0x796   : > { %v4503_v50 = vpack.c.bf16 %v4389_v48, %v4385_v38  ;;  %5770 = vmatpush1.bf16.msra.mxu0 %v9724_v40 }
 0x797   : > { %v4562_v54 = vadd.bf16 %v9664_v25, %v4502_v47  ;;  %5771 = vmatprep.subr.bf16.mxu0 %v9730_v56 }
 0x798   : > { %v4563_v35 = vadd.bf16 %v9668_v53, %v4503_v50 }
 0x799   : > { %v4594_v60 = vmax.bf16 %v8449_v1, %v4562_v54 }
 0x79a   : > { %v4393_v20 = vpop.f32.mrb[216].mxu1  ;;  %v4595_v55 = vmax.bf16 %v8449_v1, %v4563_v35  ;;  %5772 = vmatpush1.bf16.msra.mxu0 %v9739_v4 }
 0x79b   : > { %v4395_v58 = vpop.f32.mrb[217].mxu1  ;;  %5773 = vmatprep.subr.bf16.mxu0 %v9745_v0 }
 0x79c   : > { %v4397_v23 = vpop.f32.mrb[218].mxu1  ;;  %4890 = vmatprep.mubr.bf16.mxu0 %v4595_v55 }
 0x79d   : > { %v4504_v49 = vpack.c.bf16 %v4397_v23, %v4393_v20  ;;  %v4399_v62 = vpop.f32.mrb[219].mxu1  ;;  %4891 = vmatmul.mubr.bf16.gmra.mrb[212].mxu0 %v4594_v60 }
 0x79e   : > { %v4505_v59 = vpack.c.bf16 %v4399_v62, %v4395_v58  ;;  %5774 = vmatpush1.bf16.msra.mxu0 %v9752_v16 }
 0x79f   : > { %v4564_v42 = vadd.bf16 %v9664_v25, %v4504_v49  ;;  %5775 = vmatprep.subr.bf16.mxu0 %v9758_v8 }
 0x7a0   : > { %v4565_v2 = vadd.bf16 %v9668_v53, %v4505_v59 }
 0x7a1   : > { %v4596_v40 = vmax.bf16 %v8449_v1, %v4564_v42 }
 0x7a2   : > { %v4403_v5 = vpop.f32.mrb[220].mxu1  ;;  %v4597_v7 = vmax.bf16 %v8449_v1, %v4565_v2  ;;  %5776 = vmatpush1.bf16.msra.mxu0 %v9767_v24  ;;  %v8193_v2 = vld [vmem:[#allocation11 + $0xf4] ss:$8 sps:$4 sm:$0xff]  }
 0x7a3   : > { %v4405_v61 = vpop.f32.mrb[221].mxu1  ;;  %5777 = vmatprep.subr.bf16.mxu0 %v8184_v21  ;;  %7640 = vmatprep.subr.bf16.mxu1 %v8193_v2 }
 0x7a4   : > { %v4407_v63 = vpop.f32.mrb[222].mxu1  ;;  %4900 = vmatprep.mubr.bf16.mxu0 %v4597_v7  ;;  %v8191_v7 = vld [vmem:[#allocation11 + $0xf0] ss:$8 sps:$4 sm:$0xff]  }
 0x7a5   : > { %v4506_v56 = vpack.c.bf16 %v4407_v63, %v4403_v5  ;;  %v4409_v9 = vpop.f32.mrb[223].mxu1  ;;  %4901 = vmatmul.mubr.bf16.gmra.mrb[216].mxu0 %v4596_v40  ;;  %7656 = vmatpush1.bf16.msra.mxu1 %v8191_v7 }
 0x7a6   : > { %v4507_v43 = vpack.c.bf16 %v4409_v9, %v4405_v61  ;;  %5778 = vmatpush1.bf16.msra.mxu0 %v8182_v31 }
 0x7a7   : > { %v4566_v46 = vadd.bf16 %v9664_v25, %v4506_v56  ;;  %5779 = vmatprep.subr.bf16.mxu0 %v8187_v33 }
 0x7a8   : > { %v4567_v4 = vadd.bf16 %v9668_v53, %v4507_v43 }
 0x7a9   : > { %v4598_v11 = vmax.bf16 %v8449_v1, %v4566_v46 }
 0x7aa   : > { %v4413_v3 = vpop.f32.mrb[224].mxu1  ;;  %v4599_v10 = vmax.bf16 %v8449_v1, %v4567_v4  ;;  %5780 = vmatpush1.bf16.msra.mxu0 %v8185_v37 }
 0x7ab   : > { %v4415_v0 = vpop.f32.mrb[225].mxu1  ;;  %5781 = vmatprep.subr.bf16.mxu0 %v8190_v13 }
 0x7ac   : > { %v4417_v14 = vpop.f32.mrb[226].mxu1  ;;  %4910 = vmatprep.mubr.bf16.mxu0 %v4599_v10 }
 0x7ad   : > { %v4508_v15 = vpack.c.bf16 %v4417_v14, %v4413_v3  ;;  %v4419_v12 = vpop.f32.mrb[227].mxu1  ;;  %4911 = vmatmul.mubr.bf16.gmra.mrb[220].mxu0 %v4598_v11 }
 0x7ae   : > { %v4509_v16 = vpack.c.bf16 %v4419_v12, %v4415_v0  ;;  %5782 = vmatpush1.bf16.msra.mxu0 %v8188_v52 }
 0x7af   : > { %v4568_v17 = vadd.bf16 %v9664_v25, %v4508_v15  ;;  %5783 = vmatprep.subr.bf16.mxu0 %v8193_v2 }
 0x7b0   : > { %v4569_v8 = vadd.bf16 %v9668_v53, %v4509_v16 }
 0x7b1   : > { %v4600_v24 = vmax.bf16 %v8449_v1, %v4568_v17 }
 0x7b2   : > { %v4423_v18 = vpop.f32.mrb[228].mxu1  ;;  %v4601_v19 = vmax.bf16 %v8449_v1, %v4569_v8  ;;  %5784 = vmatpush1.bf16.msra.mxu0 %v8191_v7 }
 0x7b3   : > { %v4425_v22 = vpop.f32.mrb[229].mxu1 }
 0x7b4   : > { %v4427_v57 = vpop.f32.mrb[230].mxu1  ;;  %4920 = vmatprep.mubr.bf16.mxu0 %v4601_v19 }
 0x7b5   : > { %v4510_v51 = vpack.c.bf16 %v4427_v57, %v4423_v18  ;;  %v4429_v21 = vpop.f32.mrb[231].mxu1  ;;  %4921 = vmatmul.mubr.bf16.gmra.mrb[224].mxu0 %v4600_v24 }
 0x7b6   : > { %v4511_v44 = vpack.c.bf16 %v4429_v21, %v4425_v22 }
 0x7b7   : > { %v4570_v26 = vadd.bf16 %v9664_v25, %v4510_v51 }
 0x7b8   : > { %v4571_v29 = vadd.bf16 %v9668_v53, %v4511_v44 }
 0x7b9   : > { %v4602_v33 = vmax.bf16 %v8449_v1, %v4570_v26 }
 0x7ba   : > { %v4433_v30 = vpop.f32.mrb[232].mxu1  ;;  %v4603_v31 = vmax.bf16 %v8449_v1, %v4571_v29 }
 0x7bb   : > { %v4435_v32 = vpop.f32.mrb[233].mxu1 }
 0x7bc   : > { %v4437_v34 = vpop.f32.mrb[234].mxu1  ;;  %4930 = vmatprep.mubr.bf16.mxu0 %v4603_v31 }
 0x7bd   : > { %v4512_v28 = vpack.c.bf16 %v4437_v34, %v4433_v30  ;;  %v4439_v36 = vpop.f32.mrb[235].mxu1  ;;  %4931 = vmatmul.mubr.bf16.gmra.mrb[228].mxu0 %v4602_v33 }
 0x7be   : > { %v4513_v37 = vpack.c.bf16 %v4439_v36, %v4435_v32  ;;  %v5033_v36 = vld [vmem:[%s10462_s17] sm:$0x3] }
 0x7bf   : > { %v4572_v38 = vadd.bf16 %v9664_v25, %v4512_v28 }
 0x7c0   : > { %v4573_v45 = vadd.bf16 %v9668_v53, %v4513_v37  ;;  %v5038_v37 = vrot.slane %v5033_v36, %v9053_v39 }
 0x7c1   : > { %v4604_v48 = vmax.bf16 %v8449_v1, %v4572_v38  ;;  %v5042_v38 = vrot.slane %v5033_v36, %v9058_v41 }
 0x7c2   : > { %v4443_v13 = vpop.f32.mrb[236].mxu1  ;;  %v4605_v27 = vmax.bf16 %v8449_v1, %v4573_v45  ;;  %v5045_v45 = vpack.c.bf16 %v5038_v37, %v5038_v37 }
 0x7c3   : > { %v4445_v47 = vpop.f32.mrb[237].mxu1 }
 0x7c4   : > { %v4447_v50 = vpop.f32.mrb[238].mxu1  ;;  %4940 = vmatprep.mubr.bf16.mxu0 %v4605_v27  ;;  %v5048_v27 = vpack.i.b16 %v5045_v45, %v5045_v45 }
 0x7c5   : > { %v4514_v52 = vpack.c.bf16 %v4447_v50, %v4443_v13  ;;  %v4449_v54 = vpop.f32.mrb[239].mxu1  ;;  %4941 = vmatmul.mubr.bf16.gmra.mrb[232].mxu0 %v4604_v48  ;;  %v5046_v13 = vpack.c.bf16 %v5042_v38, %v5042_v38 }
 0x7c6   : > { %v4515_v35 = vpack.c.bf16 %v4449_v54, %v4445_v47  ;;  %v8194_v47 = vld [vmem:[#allocation13 + $0x40] sm:$0xff]   ;;  %v9841_v50 = vrot.slane %v5048_v27, %v9053_v39 }
 0x7c7   : > { %v4574_v20 = vadd.bf16 %v9664_v25, %v4514_v52  ;;  %7407 = vmatprep.subr.bf16.mxu1 %v8194_v47 }
 0x7c8   : > { %v4575_v55 = vadd.bf16 %v9668_v53, %v4515_v35 }
 0x7c9   : > { %v4606_v49 = vmax.bf16 %v8449_v1, %v4574_v20 }
 0x7ca   : > { %v4453_v58 = vpop.f32.mrb[240].mxu1  ;;  %v4607_v60 = vmax.bf16 %v8449_v1, %v4575_v55  ;;  %v5189_v55 = vld [vmem:[%s10463_s18] sm:$0x3] }
 0x7cb   : > { %v4455_v23 = vpop.f32.mrb[241].mxu1 }
 0x7cc   : > { %v4457_v62 = vpop.f32.mrb[242].mxu1  ;;  %4950 = vmatprep.mubr.bf16.mxu0 %v4607_v60 }
 0x7cd   : > { %v4516_v59 = vpack.c.bf16 %v4457_v62, %v4453_v58  ;;  %v4459_v42 = vpop.f32.mrb[243].mxu1  ;;  %4951 = vmatmul.mubr.bf16.gmra.mrb[236].mxu0 %v4606_v49  ;;  %v9853_v62 = vrot.slane %v5189_v55, %v9053_v39 }
 0x7ce   : > { %v4517_v5 = vpack.c.bf16 %v4459_v42, %v4455_v23 }
 0x7cf   : > { %v4576_v61 = vadd.bf16 %v9664_v25, %v4516_v59  ;;  %v9856_v59 = vrot.slane %v5189_v55, %v9058_v41 }
 0x7d0   : > { %v4577_v40 = vadd.bf16 %v9668_v53, %v4517_v5 }
 0x7d1   : > { %v4608_v43 = vmax.bf16 %v8449_v1, %v4576_v61 }
 0x7d2   : > { %v4463_v63 = vpop.f32.mrb[244].mxu1  ;;  %v4609_v56 = vmax.bf16 %v8449_v1, %v4577_v40 }
 0x7d3   : > { %v4465_v9 = vpop.f32.mrb[245].mxu1 }
 0x7d4   : > { %v4467_v46 = vpop.f32.mrb[246].mxu1  ;;  %4960 = vmatprep.mubr.bf16.mxu0 %v4609_v56 }
 0x7d5   : > { %v4518_v4 = vpack.c.bf16 %v4467_v46, %v4463_v63  ;;  %v4469_v3 = vpop.f32.mrb[247].mxu1  ;;  %4961 = vmatmul.mubr.bf16.gmra.mrb[240].mxu0 %v4608_v43 }
 0x7d6   : > { %v4519_v10 = vpack.c.bf16 %v4469_v3, %v4465_v9 }
 0x7d7   : > { %v4578_v0 = vadd.bf16 %v9664_v25, %v4518_v4 }
 0x7d8   : > { %v4579_v11 = vadd.bf16 %v9668_v53, %v4519_v10 }
 0x7d9   : > { %v4610_v16 = vmax.bf16 %v8449_v1, %v4578_v0 }
 0x7da   : > { %v4473_v14 = vpop.f32.mrb[248].mxu1  ;;  %v4611_v15 = vmax.bf16 %v8449_v1, %v4579_v11 }
 0x7db   : > { %v4475_v12 = vpop.f32.mrb[249].mxu1 }
 0x7dc   : > { %v4477_v17 = vpop.f32.mrb[250].mxu1  ;;  %4970 = vmatprep.mubr.bf16.mxu0 %v4611_v15 }
 0x7dd   : > { %v4520_v8 = vpack.c.bf16 %v4477_v17, %v4473_v14  ;;  %v4479_v18 = vpop.f32.mrb[251].mxu1  ;;  %4971 = vmatmul.mubr.bf16.gmra.mrb[244].mxu0 %v4610_v16 }
 0x7de   : > { %v4521_v19 = vpack.c.bf16 %v4479_v18, %v4475_v12 }
 0x7df   : > { %v4580_v22 = vadd.bf16 %v9664_v25, %v4520_v8 }
 0x7e0   : > { %v4581_v24 = vadd.bf16 %v9668_v53, %v4521_v19 }
 0x7e1   : > { %v4612_v44 = vmax.bf16 %v8449_v1, %v4580_v22 }
 0x7e2   : > { %v4483_v57 = vpop.f32.mrb[252].mxu1  ;;  %v4613_v51 = vmax.bf16 %v8449_v1, %v4581_v24 }
 0x7e3   : > { %v4485_v21 = vpop.f32.mrb[253].mxu1 }
 0x7e4   : > { %v4487_v26 = vpop.f32.mrb[254].mxu1  ;;  %4980 = vmatprep.mubr.bf16.mxu0 %v4613_v51 }
 0x7e5   : > { %v4522_v29 = vpack.c.bf16 %v4487_v26, %v4483_v57  ;;  %v4489_v30 = vpop.f32.mrb[255].mxu1  ;;  %4981 = vmatmul.mubr.bf16.gmra.mrb[248].mxu0 %v4612_v44 }
 0x7e6   : > { %v4523_v31 = vpack.c.bf16 %v4489_v30, %v4485_v21 }
 0x7e7   : > { %v4582_v32 = vadd.bf16 %v9664_v25, %v4522_v29  ;;  %v5055_v25 = vpack.i.b16 %v5046_v13, %v5046_v13 }
 0x7e8   : > { %v4583_v33 = vadd.bf16 %v9668_v53, %v4523_v31 }
 0x7e9   : > { %v4614_v28 = vmax.bf16 %v8449_v1, %v4582_v32  ;;  %v9844_v54 = vrot.slane %v5055_v25, %v9053_v39 }
 0x7ea   : > { %v4615_v34 = vmax.bf16 %v8449_v1, %v4583_v33 }
 0x7ec   : > { %4990 = vmatprep.mubr.bf16.mxu0 %v4615_v34 }
 0x7ed   : > { %4991 = vmatmul.mubr.bf16.gmra.mrb[252].mxu0 %v4614_v28 }
 0x848   : > { %v4842_v53 = vpop.f32.mrb[192].mxu0 }
 0x849   : > { %v4844_v48 = vpop.f32.mrb[193].mxu0 }
 0x84a   : > { %v4846_v52 = vpop.f32.mrb[194].mxu0 }
 0x84b   : > { %v5001_v35 = vpack.c.bf16 %v4846_v52, %v4842_v53  ;;  %v4848_v20 = vpop.f32.mrb[195].mxu0 }
 0x84c   : > { %v5002_v58 = vpack.c.bf16 %v4848_v20, %v4844_v48 }
 0x84d   : > { %v5061_v60 = vadd.bf16 %v9841_v50, %v5001_v35 }
 0x84e   : > { %v5062_v23 = vadd.bf16 %v9844_v54, %v5002_v58  ;;  %v6089_v58 = vpop.permute.xlu0 %6088 }
 0x84f   : > { %v5093_v49 = vmax.bf16 %v8449_v1, %v5061_v60 }
 0x850   : > { %v4852_v42 = vpop.f32.mrb[196].mxu0  ;;  %v5094_v2 = vmax.bf16 %v8449_v1, %v5062_v23 }
 0x851   : > { %v4854_v5 = vpop.f32.mrb[197].mxu0  ;;  %v5127_v7 = vunpack.c.h.bf16 %v5093_v49  ;;  %v5125_v61 = vunpack.c.l.bf16 %v5093_v49 }
 0x852   : > { %v4856_v40 = vpop.f32.mrb[198].mxu0  ;;  %5785 = vmatprep.mubr.bf16.mxu0 %v5094_v2  ;;  %v5128_v63 = vunpack.c.h.bf16 %v5094_v2  ;;  %v5126_v56 = vunpack.c.l.bf16 %v5094_v2 }
 0x853   : > { %v5003_v9 = vpack.c.bf16 %v4856_v40, %v4852_v42  ;;  %v4858_v43 = vpop.f32.mrb[199].mxu0  ;;  %5786 = vmatmul.mubr.bf16.vlgmr.msra.gmra.mrb[0].mxu0 %v5093_v49  ;;  %v5203_v46 = vmul.f32 %v9853_v62, %v5127_v7  ;;  %v5201_v4 = vmul.f32 %v9853_v62, %v5125_v61 }
 0x854   : > { %v5004_v3 = vpack.c.bf16 %v4858_v43, %v4854_v5  ;;  %v5204_v10 = vmul.f32 %v9856_v59, %v5128_v63  ;;  %v5202_v0 = vmul.f32 %v9856_v59, %v5126_v56  ;;  %v8195_v56 = vld [vmem:[#allocation13] sm:$0xff]  }
 0x855   : > { %v5063_v11 = vadd.bf16 %v9841_v50, %v5003_v9 }
 0x856   : > { %v5064_v14 = vadd.bf16 %v9844_v54, %v5004_v3  ;;  %v5268_v15 = vadd.f32 %v5204_v10, %v5203_v46  ;;  %v5265_v12 = vadd.f32 %v5202_v0, %v5201_v4  ;;  %v8196_v4 = vld [vmem:[#allocation13 + $0x48] sm:$0xff]  }
 0x857   : > { %v5095_v16 = vmax.bf16 %v8449_v1, %v5063_v11 }
 0x858   : > { %5269 = vadd.xlane.f32.xlu1 %v5268_v15  ;;  %5266 = vadd.xlane.f32.xlu0 %v5265_v12  ;;  %v4862_v17 = vpop.f32.mrb[200].mxu0  ;;  %v5096_v8 = vmax.bf16 %v8449_v1, %v5064_v14 }
 0x859   : > { %v4864_v18 = vpop.f32.mrb[201].mxu0  ;;  %v5129_v19 = vunpack.c.l.bf16 %v5095_v16  ;;  %v5131_v22 = vunpack.c.h.bf16 %v5095_v16 }
 0x85a   : > { %v4866_v24 = vpop.f32.mrb[202].mxu0  ;;  %5795 = vmatprep.mubr.bf16.mxu0 %v5096_v8  ;;  %v5130_v57 = vunpack.c.l.bf16 %v5096_v8  ;;  %v5132_v51 = vunpack.c.h.bf16 %v5096_v8 }
 0x85b   : > { %v5005_v21 = vpack.c.bf16 %v4866_v24, %v4862_v17  ;;  %v4868_v44 = vpop.f32.mrb[203].mxu0  ;;  %5796 = vmatmul.mubr.bf16.gmra.mrb[4].mxu0 %v5095_v16  ;;  %v5205_v26 = vmul.f32 %v9853_v62, %v5129_v19  ;;  %v5207_v29 = vmul.f32 %v9853_v62, %v5131_v22  ;;  %v8197_v19 = vld [vmem:[#allocation13 + $0x8] sm:$0xff]  }
 0x85c   : > { %v5006_v30 = vpack.c.bf16 %v4868_v44, %v4864_v18  ;;  %v5206_v31 = vmul.f32 %v9856_v59, %v5130_v57  ;;  %v5208_v32 = vmul.f32 %v9856_v59, %v5132_v51  ;;  %v8198_v51 = vld [vmem:[#allocation13 + $0x50] sm:$0xff]  }
 0x85d   : > { %v5065_v33 = vadd.bf16 %v9841_v50, %v5005_v21 }
 0x85e   : > { %v5066_v34 = vadd.bf16 %v9844_v54, %v5006_v30  ;;  %v5271_v28 = vadd.f32 %v5206_v31, %v5205_v26  ;;  %v5274_v36 = vadd.f32 %v5208_v32, %v5207_v29  ;;  %v8199_v32 = vld [vmem:[#allocation13 + $0x10] sm:$0xff]  }
 0x85f   : > { %v5097_v37 = vmax.bf16 %v8449_v1, %v5065_v33 }
 0x860   : > { %5272 = vadd.xlane.f32.xlu0 %v5271_v28  ;;  %v4872_v38 = vpop.f32.mrb[204].mxu0  ;;  %v5098_v45 = vmax.bf16 %v8449_v1, %v5066_v34 }
 0x861   : > { %v4874_v13 = vpop.f32.mrb[205].mxu0  ;;  %v5135_v27 = vunpack.c.h.bf16 %v5097_v37  ;;  %v5133_v25 = vunpack.c.l.bf16 %v5097_v37 }
 0x862   : > { %v4876_v47 = vpop.f32.mrb[206].mxu0  ;;  %5805 = vmatprep.mubr.bf16.mxu0 %v5098_v45  ;;  %v5136_v53 = vunpack.c.h.bf16 %v5098_v45  ;;  %v5134_v48 = vunpack.c.l.bf16 %v5098_v45 }
 0x863   : > { %v5007_v52 = vpack.c.bf16 %v4876_v47, %v4872_v38  ;;  %v4878_v35 = vpop.f32.mrb[207].mxu0  ;;  %5806 = vmatmul.mubr.bf16.gmra.mrb[8].mxu0 %v5097_v37  ;;  %v5211_v20 = vmul.f32 %v9853_v62, %v5135_v27  ;;  %v5209_v55 = vmul.f32 %v9853_v62, %v5133_v25 }
 0x864   : > { %v5008_v60 = vpack.c.bf16 %v4878_v35, %v4874_v13  ;;  %5275 = vadd.xlane.f32.xlu0 %v5274_v36  ;;  %v5212_v23 = vmul.f32 %v9856_v59, %v5136_v53  ;;  %v5210_v49 = vmul.f32 %v9856_v59, %v5134_v48  ;;  %7545 = vmatprep.mubr.msk.bf16.mxu0 %vm981_vm2, %v6089_v58  ;;  %v8200_v36 = vld [vmem:[#allocation13 + $0x58] sm:$0xff]  }
 0x865   : > { %v5067_v42 = vadd.bf16 %v9841_v50, %v5007_v52  ;;  %v8201_v48 = vld [vmem:[#allocation13 + $0x18] sm:$0xff]  }
 0x866   : > { %v5068_v2 = vadd.bf16 %v9844_v54, %v5008_v60  ;;  %v5280_v5 = vadd.f32 %v5212_v23, %v5211_v20  ;;  %v5277_v7 = vadd.f32 %v5210_v49, %v5209_v55  ;;  %v8202_v23 = vld [vmem:[#allocation13 + $0x60] sm:$0xff]  }
 0x867   : > { %v5099_v61 = vmax.bf16 %v8449_v1, %v5067_v42 }
 0x868   : > { %5281 = vadd.xlane.f32.xlu0 %v5280_v5  ;;  %5278 = vadd.xlane.f32.xlu1 %v5277_v7  ;;  %v4882_v40 = vpop.f32.mrb[208].mxu0  ;;  %v5100_v63 = vmax.bf16 %v8449_v1, %v5068_v2  ;;  %v8203_v5 = vld [vmem:[#allocation13 + $0x20] sm:$0xff]  }
 0x869   : > { %v4884_v9 = vpop.f32.mrb[209].mxu0  ;;  %v5139_v43 = vunpack.c.h.bf16 %v5099_v61  ;;  %v5137_v46 = vunpack.c.l.bf16 %v5099_v61 }
 0x86a   : > { %v4886_v3 = vpop.f32.mrb[210].mxu0  ;;  %5815 = vmatprep.mubr.bf16.mxu1 %v5100_v63  ;;  %v5140_v10 = vunpack.c.h.bf16 %v5100_v63  ;;  %v5138_v0 = vunpack.c.l.bf16 %v5100_v63 }
 0x86b   : > { %v5009_v11 = vpack.c.bf16 %v4886_v3, %v4882_v40  ;;  %v4888_v14 = vpop.f32.mrb[211].mxu0  ;;  %5816 = vmatmul.mubr.bf16.vlgmr.msra.gmra.mrb[0].mxu1 %v5099_v61  ;;  %v5215_v15 = vmul.f32 %v9853_v62, %v5139_v43  ;;  %v5213_v12 = vmul.f32 %v9853_v62, %v5137_v46 }
 0x86c   : > { %v5010_v16 = vpack.c.bf16 %v4888_v14, %v4884_v9  ;;  %v5216_v17 = vmul.f32 %v9856_v59, %v5140_v10  ;;  %v5214_v8 = vmul.f32 %v9856_v59, %v5138_v0  ;;  %7408 = vmatpush3.bf16.msra.mxu1 %v8195_v56 }
 0x86d   : > { %v5069_v18 = vadd.bf16 %v9841_v50, %v5009_v11  ;;  %7409 = vmatprep.subr.bf16.mxu1 %v8196_v4 }
 0x86e   : > { %v5070_v22 = vadd.bf16 %v9844_v54, %v5010_v16  ;;  %v5286_v24 = vadd.f32 %v5216_v17, %v5215_v15  ;;  %v5283_v57 = vadd.f32 %v5214_v8, %v5213_v12 }
 0x86f   : > { %v5101_v21 = vmax.bf16 %v8449_v1, %v5069_v18 }
 0x870   : > { %5287 = vadd.xlane.f32.xlu0 %v5286_v24  ;;  %5284 = vadd.xlane.f32.xlu1 %v5283_v57  ;;  %v4892_v44 = vpop.f32.mrb[212].mxu0  ;;  %v5102_v26 = vmax.bf16 %v8449_v1, %v5070_v22 }
 0x871   : > { %v4894_v29 = vpop.f32.mrb[213].mxu0  ;;  %v5143_v30 = vunpack.c.h.bf16 %v5101_v21  ;;  %v5141_v31 = vunpack.c.l.bf16 %v5101_v21  ;;  %7410 = vmatpush3.bf16.msra.mxu1 %v8197_v19 }
 0x872   : > { %v4896_v33 = vpop.f32.mrb[214].mxu0  ;;  %5825 = vmatprep.mubr.bf16.mxu1 %v5102_v26  ;;  %v5144_v34 = vunpack.c.h.bf16 %v5102_v26  ;;  %v5142_v28 = vunpack.c.l.bf16 %v5102_v26  ;;  %7411 = vmatprep.subr.bf16.mxu1 %v8198_v51 }
 0x873   : > { %v5011_v37 = vpack.c.bf16 %v4896_v33, %v4892_v44  ;;  %v4898_v38 = vpop.f32.mrb[215].mxu0  ;;  %5826 = vmatmul.mubr.bf16.gmra.mrb[4].mxu1 %v5101_v21  ;;  %v5219_v45 = vmul.f32 %v9853_v62, %v5143_v30  ;;  %v5217_v13 = vmul.f32 %v9853_v62, %v5141_v31 }
 0x874   : > { %v5012_v27 = vpack.c.bf16 %v4898_v38, %v4894_v29  ;;  %v5220_v25 = vmul.f32 %v9856_v59, %v5144_v34  ;;  %v5218_v47 = vmul.f32 %v9856_v59, %v5142_v28  ;;  %v8204_v28 = vld [vmem:[#allocation13 + $0x68] sm:$0xff]  }
 0x875   : > { %v5071_v53 = vadd.bf16 %v9841_v50, %v5011_v37  ;;  %7412 = vmatpush3.bf16.msra.mxu1 %v8199_v32 }
 0x876   : > { %v5072_v52 = vadd.bf16 %v9844_v54, %v5012_v27  ;;  %v5292_v35 = vadd.f32 %v5220_v25, %v5219_v45  ;;  %v5289_v20 = vadd.f32 %v5218_v47, %v5217_v13  ;;  %7413 = vmatprep.subr.bf16.mxu1 %v8200_v36  ;;  %v8205_v36 = vld [vmem:[#allocation13 + $0x28] sm:$0xff]  }
 0x877   : > { %v5103_v55 = vmax.bf16 %v8449_v1, %v5071_v53 }
 0x878   : > { %5293 = vadd.xlane.f32.xlu0 %v5292_v35  ;;  %5290 = vadd.xlane.f32.xlu1 %v5289_v20  ;;  %v4902_v58 = vpop.f32.mrb[216].mxu0  ;;  %v5104_v60 = vmax.bf16 %v8449_v1, %v5072_v52 }
 0x879   : > { %v4904_v49 = vpop.f32.mrb[217].mxu0  ;;  %v5147_v42 = vunpack.c.h.bf16 %v5103_v55  ;;  %v5145_v2 = vunpack.c.l.bf16 %v5103_v55  ;;  %7414 = vmatpush3.bf16.msra.mxu1 %v8201_v48 }
 0x87a   : > { %v4906_v7 = vpop.f32.mrb[218].mxu0  ;;  %5835 = vmatprep.mubr.bf16.mxu1 %v5104_v60  ;;  %v5148_v61 = vunpack.c.h.bf16 %v5104_v60  ;;  %v5146_v40 = vunpack.c.l.bf16 %v5104_v60  ;;  %7415 = vmatprep.subr.bf16.mxu1 %v8202_v23 }
 0x87b   : > { %v5013_v63 = vpack.c.bf16 %v4906_v7, %v4902_v58  ;;  %v4908_v56 = vpop.f32.mrb[219].mxu0  ;;  %5836 = vmatmul.mubr.bf16.gmra.mrb[8].mxu1 %v5103_v55  ;;  %v5223_v9 = vmul.f32 %v9853_v62, %v5147_v42  ;;  %v5221_v43 = vmul.f32 %v9853_v62, %v5145_v2 }
 0x87c   : > { %v5014_v46 = vpack.c.bf16 %v4908_v56, %v4904_v49  ;;  %v5224_v4 = vmul.f32 %v9856_v59, %v5148_v61  ;;  %v5222_v3 = vmul.f32 %v9856_v59, %v5146_v40 }
 0x87d   : > { %v5073_v10 = vadd.bf16 %v9841_v50, %v5013_v63  ;;  %7416 = vmatpush3.bf16.msra.mxu1 %v8203_v5  ;;  %v8206_v63 = vld [vmem:[#allocation13 + $0x70] sm:$0xff]  }
 0x87e   : > { %v5074_v0 = vadd.bf16 %v9844_v54, %v5014_v46  ;;  %v5298_v11 = vadd.f32 %v5224_v4, %v5223_v9  ;;  %v5295_v14 = vadd.f32 %v5222_v3, %v5221_v43  ;;  %7417 = vmatprep.subr.bf16.mxu1 %v8204_v28 }
 0x87f   : > { %v5105_v15 = vmax.bf16 %v8449_v1, %v5073_v10 }
 0x880   : > { %5299 = vadd.xlane.f32.xlu0 %v5298_v11  ;;  %5296 = vadd.xlane.f32.xlu1 %v5295_v14  ;;  %v4912_v12 = vpop.f32.mrb[220].mxu0  ;;  %v5106_v16 = vmax.bf16 %v8449_v1, %v5074_v0 }
 0x881   : > { %v4914_v17 = vpop.f32.mrb[221].mxu0  ;;  %v5151_v8 = vunpack.c.h.bf16 %v5105_v15  ;;  %v5149_v18 = vunpack.c.l.bf16 %v5105_v15  ;;  %7418 = vmatpush3.bf16.msra.mxu1 %v8205_v36 }
 0x882   : > { %v4916_v19 = vpop.f32.mrb[222].mxu0  ;;  %5845 = vmatprep.mubr.bf16.mxu1 %v5106_v16  ;;  %v5152_v22 = vunpack.c.h.bf16 %v5106_v16  ;;  %v5150_v24 = vunpack.c.l.bf16 %v5106_v16  ;;  %7419 = vmatprep.subr.bf16.mxu1 %v8206_v63 }
 0x883   : > { %v5015_v57 = vpack.c.bf16 %v4916_v19, %v4912_v12  ;;  %v4918_v51 = vpop.f32.mrb[223].mxu0  ;;  %5846 = vmatmul.mubr.bf16.gmra.mrb[12].mxu1 %v5105_v15  ;;  %v5227_v21 = vmul.f32 %v9853_v62, %v5151_v8  ;;  %v5225_v44 = vmul.f32 %v9853_v62, %v5149_v18 }
 0x884   : > { %v5016_v26 = vpack.c.bf16 %v4918_v51, %v4914_v17  ;;  %v5228_v29 = vmul.f32 %v9856_v59, %v5152_v22  ;;  %v5226_v30 = vmul.f32 %v9856_v59, %v5150_v24  ;;  %v8207_v22 = vld [vmem:[#allocation13 + $0x30] sm:$0xff]  }
 0x885   : > { %v5075_v31 = vadd.bf16 %v9841_v50, %v5015_v57  ;;  %7420 = vmatpush3.bf16.msra.mxu1 %v8207_v22 }
 0x886   : > { %v5076_v32 = vadd.bf16 %v9844_v54, %v5016_v26  ;;  %v5304_v33 = vadd.f32 %v5228_v29, %v5227_v21  ;;  %v5301_v34 = vadd.f32 %v5226_v30, %v5225_v44 }
 0x887   : > { %v5107_v37 = vmax.bf16 %v8449_v1, %v5075_v31 }
 0x888   : > { %5305 = vadd.xlane.f32.xlu0 %v5304_v33  ;;  %5302 = vadd.xlane.f32.xlu1 %v5301_v34  ;;  %v4922_v38 = vpop.f32.mrb[224].mxu0  ;;  %v5108_v45 = vmax.bf16 %v8449_v1, %v5076_v32 }
 0x889   : > { %v4924_v13 = vpop.f32.mrb[225].mxu0  ;;  %v5155_v27 = vunpack.c.h.bf16 %v5107_v37  ;;  %v5153_v25 = vunpack.c.l.bf16 %v5107_v37 }
 0x88a   : > { %v4926_v47 = vpop.f32.mrb[226].mxu0  ;;  %5855 = vmatprep.mubr.bf16.mxu1 %v5108_v45  ;;  %v5156_v53 = vunpack.c.h.bf16 %v5108_v45  ;;  %v5154_v48 = vunpack.c.l.bf16 %v5108_v45 }
 0x88b   : > { %v5017_v52 = vpack.c.bf16 %v4926_v47, %v4922_v38  ;;  %v4928_v35 = vpop.f32.mrb[227].mxu0  ;;  %5856 = vmatmul.mubr.bf16.gmra.mrb[16].mxu1 %v5107_v37  ;;  %v5231_v20 = vmul.f32 %v9853_v62, %v5155_v27  ;;  %v5229_v55 = vmul.f32 %v9853_v62, %v5153_v25 }
 0x88c   : > { %v5018_v58 = vpack.c.bf16 %v4928_v35, %v4924_v13  ;;  %v5232_v60 = vmul.f32 %v9856_v59, %v5156_v53  ;;  %v5230_v23 = vmul.f32 %v9856_v59, %v5154_v48  ;;  %v8209_v35 = vld [vmem:[#allocation13 + $0x38] sm:$0xff]  }
 0x88d   : > { %v5077_v49 = vadd.bf16 %v9841_v50, %v5017_v52  ;;  %v8208_v52 = vld [vmem:[#allocation13 + $0x78] sm:$0xff]  }
 0x88e   : > { %v5078_v42 = vadd.bf16 %v9844_v54, %v5018_v58  ;;  %v5310_v2 = vadd.f32 %v5232_v60, %v5231_v20  ;;  %v5307_v5 = vadd.f32 %v5230_v23, %v5229_v55  ;;  %7421 = vmatprep.subr.bf16.mxu1 %v8208_v52 }
 0x88f   : > { %v5109_v7 = vmax.bf16 %v8449_v1, %v5077_v49  ;;  %7422 = vmatpush3.bf16.msra.mxu1 %v8209_v35 }
 0x890   : > { %5311 = vadd.xlane.f32.xlu0 %v5310_v2  ;;  %5308 = vadd.xlane.f32.xlu1 %v5307_v5  ;;  %v4932_v61 = vpop.f32.mrb[228].mxu0  ;;  %v5110_v40 = vmax.bf16 %v8449_v1, %v5078_v42 }
 0x891   : > { %v4934_v56 = vpop.f32.mrb[229].mxu0  ;;  %v5159_v9 = vunpack.c.h.bf16 %v5109_v7  ;;  %v5157_v43 = vunpack.c.l.bf16 %v5109_v7 }
 0x892   : > { %v4936_v46 = vpop.f32.mrb[230].mxu0  ;;  %5865 = vmatprep.mubr.bf16.mxu1 %v5110_v40  ;;  %v5160_v4 = vunpack.c.h.bf16 %v5110_v40  ;;  %v5158_v3 = vunpack.c.l.bf16 %v5110_v40 }
 0x893   : > { %v5019_v10 = vpack.c.bf16 %v4936_v46, %v4932_v61  ;;  %v4938_v0 = vpop.f32.mrb[231].mxu0  ;;  %5866 = vmatmul.mubr.bf16.gmra.mrb[20].mxu1 %v5109_v7  ;;  %v5235_v11 = vmul.f32 %v9853_v62, %v5159_v9  ;;  %v5233_v14 = vmul.f32 %v9853_v62, %v5157_v43 }
 0x894   : > { %v5020_v15 = vpack.c.bf16 %v4938_v0, %v4934_v56  ;;  %v5236_v12 = vmul.f32 %v9856_v59, %v5160_v4  ;;  %v5234_v16 = vmul.f32 %v9856_v59, %v5158_v3  ;;  %v6070_v0 = vld [vmem:[%s10468_s23] sm:$0x7] }
 0x895   : > { %v5079_v17 = vadd.bf16 %v9841_v50, %v5019_v10 }
 0x896   : > { %v5080_v8 = vadd.bf16 %v9844_v54, %v5020_v15  ;;  %v5316_v18 = vadd.f32 %v5236_v12, %v5235_v11  ;;  %v5313_v19 = vadd.f32 %v5234_v16, %v5233_v14  ;;  %v6071_v12 = vpack.c.bf16 %v6070_v0, %v6070_v0 }
 0x897   : > { %v5111_v24 = vmax.bf16 %v8449_v1, %v5079_v17 }
 0x898   : > { %5317 = vadd.xlane.f32.xlu0 %v5316_v18  ;;  %5314 = vadd.xlane.f32.xlu1 %v5313_v19  ;;  %v4942_v57 = vpop.f32.mrb[232].mxu0  ;;  %v5112_v51 = vmax.bf16 %v8449_v1, %v5080_v8 }
 0x899   : > { %v4944_v21 = vpop.f32.mrb[233].mxu0  ;;  %v5163_v44 = vunpack.c.h.bf16 %v5111_v24  ;;  %v5161_v26 = vunpack.c.l.bf16 %v5111_v24 }
 0x89a   : > { %v4946_v29 = vpop.f32.mrb[234].mxu0  ;;  %5875 = vmatprep.mubr.bf16.mxu1 %v5112_v51  ;;  %v5164_v30 = vunpack.c.h.bf16 %v5112_v51  ;;  %v5162_v31 = vunpack.c.l.bf16 %v5112_v51 }
 0x89b   : > { %v5021_v32 = vpack.c.bf16 %v4946_v29, %v4942_v57  ;;  %v4948_v33 = vpop.f32.mrb[235].mxu0  ;;  %5876 = vmatmul.mubr.bf16.gmra.mrb[24].mxu1 %v5111_v24  ;;  %v5239_v34 = vmul.f32 %v9853_v62, %v5163_v44  ;;  %v5237_v28 = vmul.f32 %v9853_v62, %v5161_v26  ;;  %v6169_v57 = vand.u32 %v6071_v12, %v8823_v6 }
 0x89c   : > { %v5022_v36 = vpack.c.bf16 %v4948_v33, %v4944_v21  ;;  %v5240_v37 = vmul.f32 %v9856_v59, %v5164_v30  ;;  %v5238_v38 = vmul.f32 %v9856_v59, %v5162_v31 }
 0x89d   : > { %v5081_v45 = vadd.bf16 %v9841_v50, %v5021_v32  ;;  %7543 = vmatprep.subr.bf16.mxu0 %v6169_v57 }
 0x89e   : > { %v5082_v13 = vadd.bf16 %v9844_v54, %v5022_v36  ;;  %v5322_v27 = vadd.f32 %v5240_v37, %v5239_v34  ;;  %v5319_v25 = vadd.f32 %v5238_v38, %v5237_v28  ;;  %7544 = vmatpush3.bf16.msra.mxu0 %v6169_v57  ;;  %v6091_v34 = vpop.permute.xlu0 %6090  ;;  %v6093_v38 = vpop.permute.xlu1 %6092 }
 0x89f   : > { %v5113_v47 = vmax.bf16 %v8449_v1, %v5081_v45 }
 0x8a0   : > { %5323 = vadd.xlane.f32.xlu0 %v5322_v27  ;;  %5320 = vadd.xlane.f32.xlu1 %v5319_v25  ;;  %v4952_v53 = vpop.f32.mrb[236].mxu0  ;;  %v5114_v48 = vmax.bf16 %v8449_v1, %v5082_v13 }
 0x8a1   : > { %v4954_v20 = vpop.f32.mrb[237].mxu0  ;;  %v5167_v55 = vunpack.c.h.bf16 %v5113_v47  ;;  %v5165_v58 = vunpack.c.l.bf16 %v5113_v47  ;;  %7546 = vmatmul.mubr.msk.bf16.vlgmr.msra.gmra.mrb[12].mxu0 %vm981_vm2, %v6091_v34 }
 0x8a2   : > { %v4956_v60 = vpop.f32.mrb[238].mxu0  ;;  %5885 = vmatprep.mubr.bf16.mxu1 %v5114_v48  ;;  %v5168_v23 = vunpack.c.h.bf16 %v5114_v48  ;;  %v5166_v49 = vunpack.c.l.bf16 %v5114_v48  ;;  %7549 = vmatprep.mubr.msk.bf16.mxu0 %vm981_vm2, %v6093_v38 }
 0x8a3   : > { %v5023_v42 = vpack.c.bf16 %v4956_v60, %v4952_v53  ;;  %v4958_v2 = vpop.f32.mrb[239].mxu0  ;;  %5886 = vmatmul.mubr.bf16.gmra.mrb[28].mxu1 %v5113_v47  ;;  %v5243_v5 = vmul.f32 %v9853_v62, %v5167_v55  ;;  %v5241_v7 = vmul.f32 %v9853_v62, %v5165_v58 }
 0x8a4   : > { %v5024_v61 = vpack.c.bf16 %v4958_v2, %v4954_v20  ;;  %v5244_v40 = vmul.f32 %v9856_v59, %v5168_v23  ;;  %v5242_v63 = vmul.f32 %v9856_v59, %v5166_v49 }
 0x8a5   : > { %v5083_v56 = vadd.bf16 %v9841_v50, %v5023_v42 }
 0x8a6   : > { %v5084_v9 = vadd.bf16 %v9844_v54, %v5024_v61  ;;  %v5328_v43 = vadd.f32 %v5244_v40, %v5243_v5  ;;  %v5325_v46 = vadd.f32 %v5242_v63, %v5241_v7  ;;  %v6095_v5 = vpop.permute.xlu1 %6094  ;;  %v6097_v63 = vpop.permute.xlu0 %6096 }
 0x8a7   : > { %v5115_v4 = vmax.bf16 %v8449_v1, %v5083_v56 }
 0x8a8   : > { %5329 = vadd.xlane.f32.xlu0 %v5328_v43  ;;  %5326 = vadd.xlane.f32.xlu1 %v5325_v46  ;;  %v4962_v3 = vpop.f32.mrb[240].mxu0  ;;  %v5116_v10 = vmax.bf16 %v8449_v1, %v5084_v9 }
 0x8a9   : > { %v4964_v11 = vpop.f32.mrb[241].mxu0  ;;  %v5171_v14 = vunpack.c.h.bf16 %v5115_v4  ;;  %v5169_v15 = vunpack.c.l.bf16 %v5115_v4  ;;  %7550 = vmatmul.mubr.msk.bf16.gmra.mrb[16].mxu0 %vm981_vm2, %v6095_v5 }
 0x8aa   : > { %v4966_v16 = vpop.f32.mrb[242].mxu0  ;;  %5895 = vmatprep.mubr.bf16.mxu1 %v5116_v10  ;;  %v5172_v17 = vunpack.c.h.bf16 %v5116_v10  ;;  %v5170_v8 = vunpack.c.l.bf16 %v5116_v10  ;;  %7553 = vmatprep.mubr.msk.bf16.mxu0 %vm981_vm2, %v6097_v63 }
 0x8ab   : > { %v5025_v18 = vpack.c.bf16 %v4966_v16, %v4962_v3  ;;  %v4968_v19 = vpop.f32.mrb[243].mxu0  ;;  %5896 = vmatmul.mubr.bf16.gmra.mrb[32].mxu1 %v5115_v4  ;;  %v5247_v22 = vmul.f32 %v9853_v62, %v5171_v14  ;;  %v5245_v24 = vmul.f32 %v9853_v62, %v5169_v15 }
 0x8ac   : > { %v5026_v51 = vpack.c.bf16 %v4968_v19, %v4964_v11  ;;  %v5248_v21 = vmul.f32 %v9856_v59, %v5172_v17  ;;  %v5246_v44 = vmul.f32 %v9856_v59, %v5170_v8 }
 0x8ad   : > { %v5085_v26 = vadd.bf16 %v9841_v50, %v5025_v18 }
 0x8ae   : > { %v5086_v29 = vadd.bf16 %v9844_v54, %v5026_v51  ;;  %v5334_v30 = vadd.f32 %v5248_v21, %v5247_v22  ;;  %v5331_v31 = vadd.f32 %v5246_v44, %v5245_v24  ;;  %v6099_v22 = vpop.permute.xlu1 %6098  ;;  %v6101_v21 = vpop.permute.xlu0 %6100 }
 0x8af   : > { %v5117_v32 = vmax.bf16 %v8449_v1, %v5085_v26 }
 0x8b0   : > { %5335 = vadd.xlane.f32.xlu0 %v5334_v30  ;;  %5332 = vadd.xlane.f32.xlu1 %v5331_v31  ;;  %v4972_v33 = vpop.f32.mrb[244].mxu0  ;;  %v5118_v6 = vmax.bf16 %v8449_v1, %v5086_v29 }
 0x8b1   : > { %v4974_v28 = vpop.f32.mrb[245].mxu0  ;;  %v5175_v36 = vunpack.c.h.bf16 %v5117_v32  ;;  %v5173_v37 = vunpack.c.l.bf16 %v5117_v32  ;;  %7554 = vmatmul.mubr.msk.bf16.gmra.mrb[20].mxu0 %vm981_vm2, %v6099_v22 }
 0x8b2   : > { %v4976_v45 = vpop.f32.mrb[246].mxu0  ;;  %5905 = vmatprep.mubr.bf16.mxu1 %v5118_v6  ;;  %v5176_v13 = vunpack.c.h.bf16 %v5118_v6  ;;  %v5174_v27 = vunpack.c.l.bf16 %v5118_v6  ;;  %7557 = vmatprep.mubr.msk.bf16.mxu0 %vm981_vm2, %v6101_v21 }
 0x8b3   : > { %v5027_v25 = vpack.c.bf16 %v4976_v45, %v4972_v33  ;;  %v4978_v47 = vpop.f32.mrb[247].mxu0  ;;  %5906 = vmatmul.mubr.bf16.gmra.mrb[36].mxu1 %v5117_v32  ;;  %v5251_v53 = vmul.f32 %v9853_v62, %v5175_v36  ;;  %v5249_v48 = vmul.f32 %v9853_v62, %v5173_v37 }
 0x8b4   : > { %v5028_v52 = vpack.c.bf16 %v4978_v47, %v4974_v28  ;;  %v5252_v35 = vmul.f32 %v9856_v59, %v5176_v13  ;;  %v5250_v20 = vmul.f32 %v9856_v59, %v5174_v27  ;;  %v6103_v27 = vpop.permute.xlu1 %6102 }
 0x8b5   : > { %v5087_v55 = vadd.bf16 %v9841_v50, %v5027_v25 }
 0x8b6   : > { %v5088_v58 = vadd.bf16 %v9844_v54, %v5028_v52  ;;  %v5340_v60 = vadd.f32 %v5252_v35, %v5251_v53  ;;  %v5337_v23 = vadd.f32 %v5250_v20, %v5249_v48  ;;  %v6105_v48 = vpop.permute.xlu0 %6104 }
 0x8b7   : > { %v5119_v49 = vmax.bf16 %v8449_v1, %v5087_v55 }
 0x8b8   : > { %5341 = vadd.xlane.f32.xlu0 %v5340_v60  ;;  %5338 = vadd.xlane.f32.xlu1 %v5337_v23  ;;  %v4982_v42 = vpop.f32.mrb[248].mxu0  ;;  %v5120_v2 = vmax.bf16 %v8449_v1, %v5088_v58  ;;  %v6107_v58 = vpop.permute.xlu1 %6106 }
 0x8b9   : > { %v4984_v7 = vpop.f32.mrb[249].mxu0  ;;  %v5179_v61 = vunpack.c.h.bf16 %v5119_v49  ;;  %v5177_v40 = vunpack.c.l.bf16 %v5119_v49  ;;  %7558 = vmatmul.mubr.msk.bf16.gmra.mrb[24].mxu0 %vm981_vm2, %v6103_v27 }
 0x8ba   : > { %v4986_v56 = vpop.f32.mrb[250].mxu0  ;;  %5915 = vmatprep.mubr.bf16.mxu1 %v5120_v2  ;;  %v5180_v9 = vunpack.c.h.bf16 %v5120_v2  ;;  %v5178_v43 = vunpack.c.l.bf16 %v5120_v2  ;;  %7561 = vmatprep.mubr.msk.bf16.mxu0 %vm981_vm2, %v6105_v48 }
 0x8bb   : > { %v5029_v46 = vpack.c.bf16 %v4986_v56, %v4982_v42  ;;  %v4988_v4 = vpop.f32.mrb[251].mxu0  ;;  %5916 = vmatmul.mubr.bf16.gmra.mrb[40].mxu1 %v5119_v49  ;;  %v5255_v3 = vmul.f32 %v9853_v62, %v5179_v61  ;;  %v5253_v10 = vmul.f32 %v9853_v62, %v5177_v40  ;;  %v6109_v49 = vpop.permute.xlu0 %6108 }
 0x8bc   : > { %v5030_v0 = vpack.c.bf16 %v4988_v4, %v4984_v7  ;;  %v5256_v11 = vmul.f32 %v9856_v59, %v5180_v9  ;;  %v5254_v14 = vmul.f32 %v9856_v59, %v5178_v43  ;;  %v6111_v42 = vpop.permute.xlu1 %6110 }
 0x8bd   : > { %v5089_v15 = vadd.bf16 %v9841_v50, %v5029_v46 }
 0x8be   : > { %v5090_v12 = vadd.bf16 %v9844_v54, %v5030_v0  ;;  %v5346_v16 = vadd.f32 %v5256_v11, %v5255_v3  ;;  %v5343_v17 = vadd.f32 %v5254_v14, %v5253_v10 }
 0x8bf   : > { %v5121_v8 = vmax.bf16 %v8449_v1, %v5089_v15  ;;  %v6113_v5 = vpop.permute.xlu0 %6112 }
 0x8c0   : > { %5347 = vadd.xlane.f32.xlu0 %v5346_v16  ;;  %5344 = vadd.xlane.f32.xlu1 %v5343_v17  ;;  %v4992_v18 = vpop.f32.mrb[252].mxu0  ;;  %v5122_v19 = vmax.bf16 %v8449_v1, %v5090_v12  ;;  %v6115_v2 = vpop.permute.xlu1 %6114 }
 0x8c1   : > { %v4994_v24 = vpop.f32.mrb[253].mxu0  ;;  %v5183_v57 = vunpack.c.h.bf16 %v5121_v8  ;;  %v5181_v51 = vunpack.c.l.bf16 %v5121_v8  ;;  %7562 = vmatmul.mubr.msk.bf16.gmra.mrb[28].mxu0 %vm981_vm2, %v6107_v58 }
 0x8c2   : > { %v4996_v44 = vpop.f32.mrb[254].mxu0  ;;  %5925 = vmatprep.mubr.bf16.mxu1 %v5122_v19  ;;  %v5184_v26 = vunpack.c.h.bf16 %v5122_v19  ;;  %v5182_v29 = vunpack.c.l.bf16 %v5122_v19  ;;  %7565 = vmatprep.mubr.msk.bf16.mxu0 %vm981_vm2, %v6109_v49 }
 0x8c3   : > { %v5031_v30 = vpack.c.bf16 %v4996_v44, %v4992_v18  ;;  %v4998_v31 = vpop.f32.mrb[255].mxu0  ;;  %5926 = vmatmul.mubr.bf16.gmra.mrb[44].mxu1 %v5121_v8  ;;  %v5259_v32 = vmul.f32 %v9853_v62, %v5183_v57  ;;  %v5257_v33 = vmul.f32 %v9853_v62, %v5181_v51  ;;  %v6117_v7 = vpop.permute.xlu0 %6116 }
 0x8c4   : > { %v5032_v6 = vpack.c.bf16 %v4998_v31, %v4994_v24  ;;  %v5260_v34 = vmul.f32 %v9856_v59, %v5184_v26  ;;  %v5258_v28 = vmul.f32 %v9856_v59, %v5182_v29 }
 0x8c5   : > { %v5091_v36 = vadd.bf16 %v9841_v50, %v5031_v30  ;;  %v5978_v30 = vld [vmem:[%s10519_s0] sm:$0x3] }
 0x8c6   : > { %v5092_v37 = vadd.bf16 %v9844_v54, %v5032_v6  ;;  %v5352_v38 = vadd.f32 %v5260_v34, %v5259_v32  ;;  %v5349_v45 = vadd.f32 %v5258_v28, %v5257_v33  ;;  %v5987_v31 = vrot.slane %v5978_v30, %v9058_v41 }
 0x8c7   : > { %v5123_v13 = vmax.bf16 %v8449_v1, %v5091_v36  ;;  %v5983_v6 = vrot.slane %v5978_v30, %v9053_v39 }
 0x8c8   : > { %5353 = vadd.xlane.f32.xlu0 %v5352_v38  ;;  %5350 = vadd.xlane.f32.xlu1 %v5349_v45  ;;  %v5124_v25 = vmax.bf16 %v8449_v1, %v5092_v37  ;;  %v5991_v36 = vpack.c.bf16 %v5987_v31, %v5987_v31 }
 0x8c9   : > { %v5187_v47 = vunpack.c.h.bf16 %v5123_v13  ;;  %v5185_v53 = vunpack.c.l.bf16 %v5123_v13  ;;  %7566 = vmatmul.mubr.msk.bf16.gmra.mrb[32].mxu0 %vm981_vm2, %v6111_v42  ;;  %v5990_v37 = vpack.c.bf16 %v5983_v6, %v5983_v6 }
 0x8ca   : > { %5935 = vmatprep.mubr.bf16.mxu1 %v5124_v25  ;;  %v5188_v52 = vunpack.c.h.bf16 %v5124_v25  ;;  %v5186_v35 = vunpack.c.l.bf16 %v5124_v25  ;;  %7569 = vmatprep.mubr.msk.bf16.mxu0 %vm981_vm2, %v6113_v5  ;;  %v6000_v38 = vpack.i.b16 %v5991_v36, %v5991_v36 }
 0x8cb   : > { %5936 = vmatmul.mubr.bf16.gmra.mrb[48].mxu1 %v5123_v13  ;;  %v5263_v50 = vmul.f32 %v9853_v62, %v5187_v47  ;;  %v5261_v54 = vmul.f32 %v9853_v62, %v5185_v53  ;;  %v6119_v62 = vpop.permute.xlu1 %6118  ;;  %v5993_v27 = vpack.i.b16 %v5990_v37, %v5990_v37 }
 0x8cc   : > { %v5264_v20 = vmul.f32 %v9856_v59, %v5188_v52  ;;  %v5262_v55 = vmul.f32 %v9856_v59, %v5186_v35  ;;  %v10002_v59 = vld [vmem:[#allocation2] ss:$0 sm:$0xff]  ;;  %v10047_v52 = vrot.slane %v6000_v38, %v9053_v39 }
 0x8ce   : > { %v5358_v60 = vadd.f32 %v5264_v20, %v5263_v50  ;;  %v5355_v23 = vadd.f32 %v5262_v55, %v5261_v54  ;;  %v10050_v50 = vrot.slane %v5993_v27, %v9053_v39 }
 0x8d0   : > { %5359 = vadd.xlane.f32.xlu0 %v5358_v60  ;;  %5356 = vadd.xlane.f32.xlu1 %v5355_v23 }
 0x8d1   : > { %7570 = vmatmul.mubr.msk.bf16.gmra.mrb[36].mxu0 %vm981_vm2, %v6115_v2 }
 0x8d2   : > { %7573 = vmatprep.mubr.msk.bf16.mxu0 %vm981_vm2, %v6117_v7 }
 0x8d9   : > { %7574 = vmatmul.mubr.msk.bf16.gmra.mrb[40].mxu0 %vm981_vm2, %v6119_v62 }
 0x8e5   : > { %v5270_v61 = vpop.xlane.xlu1 %5269  ;;  %v5267_v40 = vpop.xlane.xlu0 %5266 }
 0x8e6   : > { %v5369_v63 = vadd.f32 %v10002_v59, %v5270_v61  ;;  %v5368_v56 = vadd.f32 %v10002_v59, %v5267_v40 }
 0x8e8   : > { %5434 = vrot.lane.b32.xlu0 %v5369_v63, %s8452_s26  ;;  %5432 = vrot.lane.b32.xlu1 %v5368_v56, %s8452_s26 }
 0x8ed   : > { %v5273_v9 = vpop.xlane.xlu0 %5272 }
 0x8ee   : > { %v5370_v43 = vadd.f32 %v10002_v59, %v5273_v9 }
 0x8f0   : > { %5436 = vrot.lane.b32.xlu1 %v5370_v43, %s8452_s26 }
 0x8f1   : > { %v5276_v46 = vpop.xlane.xlu0 %5275 }
 0x8f2   : > { %v5371_v4 = vadd.f32 %v10002_v59, %v5276_v46 }
 0x8f4   : > { %5438 = vrot.lane.b32.xlu1 %v5371_v4, %s8452_s26 }
 0x8f5   : > { %v5282_v3 = vpop.xlane.xlu0 %5281  ;;  %v5279_v10 = vpop.xlane.xlu1 %5278 }
 0x8f6   : > { %v5373_v0 = vadd.f32 %v10002_v59, %v5282_v3  ;;  %v5372_v11 = vadd.f32 %v10002_v59, %v5279_v10 }
 0x8f8   : > { %5440 = vrot.lane.b32.xlu0 %v5372_v11, %s8452_s26  ;;  %5442 = vrot.lane.b32.xlu1 %v5373_v0, %s8452_s26 }
 0x8fd   : > { %v5288_v14 = vpop.xlane.xlu0 %5287  ;;  %v5285_v15 = vpop.xlane.xlu1 %5284 }
 0x8fe   : > { %v5375_v12 = vadd.f32 %v10002_v59, %v5288_v14  ;;  %v5374_v16 = vadd.f32 %v10002_v59, %v5285_v15 }
 0x900   : > { %5444 = vrot.lane.b32.xlu0 %v5374_v16, %s8452_s26  ;;  %5446 = vrot.lane.b32.xlu1 %v5375_v12, %s8452_s26 }
 0x905   : > { %v5294_v17 = vpop.xlane.xlu0 %5293  ;;  %v5291_v8 = vpop.xlane.xlu1 %5290 }
 0x906   : > { %v5377_v18 = vadd.f32 %v10002_v59, %v5294_v17  ;;  %v5376_v19 = vadd.f32 %v10002_v59, %v5291_v8 }
 0x908   : > { %5448 = vrot.lane.b32.xlu0 %v5376_v19, %s8452_s26  ;;  %5450 = vrot.lane.b32.xlu1 %v5377_v18, %s8452_s26 }
 0x90d   : > { %v5300_v22 = vpop.xlane.xlu0 %5299  ;;  %v5297_v24 = vpop.xlane.xlu1 %5296 }
 0x90e   : > { %v5379_v57 = vadd.f32 %v10002_v59, %v5300_v22  ;;  %v5378_v51 = vadd.f32 %v10002_v59, %v5297_v24 }
 0x910   : > { %5452 = vrot.lane.b32.xlu0 %v5378_v51, %s8452_s26  ;;  %5454 = vrot.lane.b32.xlu1 %v5379_v57, %s8452_s26 }
 0x915   : > { %v5306_v21 = vpop.xlane.xlu0 %5305  ;;  %v5303_v44 = vpop.xlane.xlu1 %5302 }
 0x916   : > { %v5381_v26 = vadd.f32 %v10002_v59, %v5306_v21  ;;  %v5380_v29 = vadd.f32 %v10002_v59, %v5303_v44 }
 0x918   : > { %5456 = vrot.lane.b32.xlu0 %v5380_v29, %s8452_s26  ;;  %5458 = vrot.lane.b32.xlu1 %v5381_v26, %s8452_s26 }
 0x91d   : > { %v5312_v32 = vpop.xlane.xlu0 %5311  ;;  %v5309_v33 = vpop.xlane.xlu1 %5308 }
 0x91e   : > { %v5383_v34 = vadd.f32 %v10002_v59, %v5312_v32  ;;  %v5382_v28 = vadd.f32 %v10002_v59, %v5309_v33 }
 0x920   : > { %5460 = vrot.lane.b32.xlu0 %v5382_v28, %s8452_s26  ;;  %5462 = vrot.lane.b32.xlu1 %v5383_v34, %s8452_s26 }
 0x925   : > { %v5318_v45 = vpop.xlane.xlu0 %5317  ;;  %v5315_v13 = vpop.xlane.xlu1 %5314 }
 0x926   : > { %v5385_v41 = vadd.f32 %v10002_v59, %v5318_v45  ;;  %v5384_v25 = vadd.f32 %v10002_v59, %v5315_v13  ;;  %v5787_v47 = vpop.f32.mrb[0].mxu0 }
 0x927   : > { %v5789_v53 = vpop.f32.mrb[1].mxu0 }
 0x928   : > { %v5791_v48 = vpop.f32.mrb[2].mxu0  ;;  %5464 = vrot.lane.b32.xlu0 %v5384_v25, %s8452_s26  ;;  %5466 = vrot.lane.b32.xlu1 %v5385_v41, %s8452_s26 }
 0x929   : > { %v5946_v35 = vpack.c.bf16 %v5791_v48, %v5787_v47  ;;  %v5793_v54 = vpop.f32.mrb[3].mxu0 }
 0x92a   : > { %v5947_v20 = vpack.c.bf16 %v5793_v54, %v5789_v53 }
 0x92b   : > { %v6006_v58 = vadd.bf16 %v10050_v50, %v5946_v35 }
 0x92c   : > { %v6007_v55 = vadd.bf16 %v10047_v52, %v5947_v20 }
 0x92d   : > { %v5324_v60 = vpop.xlane.xlu0 %5323  ;;  %v5321_v23 = vpop.xlane.xlu1 %5320 }
 0x92e   : > { %v5387_v49 = vadd.f32 %v10002_v59, %v5324_v60  ;;  %v5386_v42 = vadd.f32 %v10002_v59, %v5321_v23  ;;  %v5797_v2 = vpop.f32.mrb[4].mxu0  ;;  %6460 = vmatprep.mubr.bf16.mxu1 %v6007_v55  ;;  %v8211_v60 = vld [vmem:[%s10520_s21 + $0x8] sm:$0xff]  }
 0x92f   : > { %v5799_v5 = vpop.f32.mrb[5].mxu0  ;;  %6461 = vmatmul.mubr.bf16.vlgmr.msra.gmra.mrb[52].mxu1 %v6006_v58  ;;  %v8210_v58 = vld [vmem:[%s10520_s21] sm:$0xff]  }
 0x930   : > { %v5801_v62 = vpop.f32.mrb[6].mxu0  ;;  %5468 = vrot.lane.b32.xlu0 %v5386_v42, %s8452_s26  ;;  %5470 = vrot.lane.b32.xlu1 %v5387_v49, %s8452_s26 }
 0x931   : > { %v5948_v7 = vpack.c.bf16 %v5801_v62, %v5797_v2  ;;  %v5803_v61 = vpop.f32.mrb[7].mxu0  ;;  %7577 = vmatprep.subr.bf16.mxu0 %v8210_v58 }
 0x932   : > { %v5949_v40 = vpack.c.bf16 %v5803_v61, %v5799_v5  ;;  %7578 = vmatpush3.bf16.msra.mxu0 %v8210_v58 }
 0x933   : > { %v6008_v56 = vadd.bf16 %v10050_v50, %v5948_v7  ;;  %7579 = vmatprep.subr.bf16.mxu0 %v8211_v60 }
 0x934   : > { %v6009_v63 = vadd.bf16 %v10047_v52, %v5949_v40  ;;  %v8212_v40 = vld [vmem:[%s10520_s21 + $0x10] sm:$0xff]  }
 0x935   : > { %v5330_v9 = vpop.xlane.xlu0 %5329  ;;  %v5327_v43 = vpop.xlane.xlu1 %5326 }
 0x936   : > { %v5389_v46 = vadd.f32 %v10002_v59, %v5330_v9  ;;  %v5388_v4 = vadd.f32 %v10002_v59, %v5327_v43  ;;  %v5807_v3 = vpop.f32.mrb[8].mxu0  ;;  %6468 = vmatprep.mubr.bf16.mxu1 %v6009_v63  ;;  %7580 = vmatpush3.bf16.msra.mxu0 %v8211_v60 }
 0x937   : > { %v5809_v10 = vpop.f32.mrb[9].mxu0  ;;  %6469 = vmatmul.mubr.bf16.gmra.mrb[56].mxu1 %v6008_v56  ;;  %7581 = vmatprep.subr.bf16.mxu0 %v8212_v40 }
 0x938   : > { %v5811_v0 = vpop.f32.mrb[10].mxu0  ;;  %5472 = vrot.lane.b32.xlu0 %v5388_v4, %s8452_s26  ;;  %5474 = vrot.lane.b32.xlu1 %v5389_v46, %s8452_s26 }
 0x939   : > { %v5950_v11 = vpack.c.bf16 %v5811_v0, %v5807_v3  ;;  %v5813_v14 = vpop.f32.mrb[11].mxu0 }
 0x93a   : > { %v5951_v15 = vpack.c.bf16 %v5813_v14, %v5809_v10  ;;  %7582 = vmatpush3.bf16.msra.mxu0 %v8212_v40 }
 0x93b   : > { %v6010_v16 = vadd.bf16 %v10050_v50, %v5950_v11 }
 0x93c   : > { %v6011_v12 = vadd.bf16 %v10047_v52, %v5951_v15 }
 0x93d   : > { %v5336_v17 = vpop.xlane.xlu0 %5335  ;;  %v5333_v8 = vpop.xlane.xlu1 %5332 }
 0x93e   : > { %v5391_v18 = vadd.f32 %v10002_v59, %v5336_v17  ;;  %v5390_v19 = vadd.f32 %v10002_v59, %v5333_v8  ;;  %v5817_v22 = vpop.f32.mrb[0].mxu1  ;;  %6476 = vmatprep.mubr.bf16.mxu1 %v6011_v12 }
 0x93f   : > { %v5819_v24 = vpop.f32.mrb[1].mxu1  ;;  %6477 = vmatmul.mubr.bf16.gmra.mrb[60].mxu1 %v6010_v16 }
 0x940   : > { %v5821_v57 = vpop.f32.mrb[2].mxu1  ;;  %5476 = vrot.lane.b32.xlu0 %v5390_v19, %s8452_s26  ;;  %5478 = vrot.lane.b32.xlu1 %v5391_v18, %s8452_s26 }
 0x941   : > { %v5952_v51 = vpack.c.bf16 %v5821_v57, %v5817_v22  ;;  %v5823_v21 = vpop.f32.mrb[3].mxu1 }
 0x942   : > { %v5953_v44 = vpack.c.bf16 %v5823_v21, %v5819_v24 }
 0x943   : > { %v6012_v29 = vadd.bf16 %v10050_v50, %v5952_v51 }
 0x944   : > { %v6013_v26 = vadd.bf16 %v10047_v52, %v5953_v44 }
 0x945   : > { %v5342_v30 = vpop.xlane.xlu0 %5341  ;;  %v5339_v31 = vpop.xlane.xlu1 %5338 }
 0x946   : > { %v5393_v32 = vadd.f32 %v10002_v59, %v5342_v30  ;;  %v5392_v33 = vadd.f32 %v10002_v59, %v5339_v31  ;;  %v5827_v6 = vpop.f32.mrb[4].mxu1  ;;  %6484 = vmatprep.mubr.bf16.mxu1 %v6013_v26 }
 0x947   : > { %v5829_v34 = vpop.f32.mrb[5].mxu1  ;;  %6485 = vmatmul.mubr.bf16.gmra.mrb[64].mxu1 %v6012_v29 }
 0x948   : > { %v5831_v28 = vpop.f32.mrb[6].mxu1  ;;  %5480 = vrot.lane.b32.xlu0 %v5392_v33, %s8452_s26  ;;  %5482 = vrot.lane.b32.xlu1 %v5393_v32, %s8452_s26 }
 0x949   : > { %v5954_v36 = vpack.c.bf16 %v5831_v28, %v5827_v6  ;;  %v5833_v37 = vpop.f32.mrb[7].mxu1 }
 0x94a   : > { %v5955_v38 = vpack.c.bf16 %v5833_v37, %v5829_v34 }
 0x94b   : > { %v6014_v13 = vadd.bf16 %v10050_v50, %v5954_v36 }
 0x94c   : > { %v6015_v45 = vadd.bf16 %v10047_v52, %v5955_v38 }
 0x94d   : > { %v5348_v27 = vpop.xlane.xlu0 %5347  ;;  %v5345_v41 = vpop.xlane.xlu1 %5344 }
 0x94e   : > { %v5395_v25 = vadd.f32 %v10002_v59, %v5348_v27  ;;  %v5394_v47 = vadd.f32 %v10002_v59, %v5345_v41  ;;  %v5837_v53 = vpop.f32.mrb[8].mxu1  ;;  %6492 = vmatprep.mubr.bf16.mxu1 %v6015_v45 }
 0x94f   : > { %v5839_v48 = vpop.f32.mrb[9].mxu1  ;;  %6493 = vmatmul.mubr.bf16.gmra.mrb[68].mxu1 %v6014_v13 }
 0x950   : > { %v5841_v35 = vpop.f32.mrb[10].mxu1  ;;  %5484 = vrot.lane.b32.xlu0 %v5394_v47, %s8452_s26  ;;  %5486 = vrot.lane.b32.xlu1 %v5395_v25, %s8452_s26 }
 0x951   : > { %v5956_v54 = vpack.c.bf16 %v5841_v35, %v5837_v53  ;;  %v5843_v20 = vpop.f32.mrb[11].mxu1 }
 0x952   : > { %v5957_v55 = vpack.c.bf16 %v5843_v20, %v5839_v48 }
 0x953   : > { %v6016_v49 = vadd.bf16 %v10050_v50, %v5956_v54 }
 0x954   : > { %v6017_v23 = vadd.bf16 %v10047_v52, %v5957_v55 }
 0x955   : > { %v5354_v42 = vpop.xlane.xlu0 %5353  ;;  %v5351_v2 = vpop.xlane.xlu1 %5350 }
 0x956   : > { %v5397_v5 = vadd.f32 %v10002_v59, %v5354_v42  ;;  %v5396_v62 = vadd.f32 %v10002_v59, %v5351_v2  ;;  %v5847_v7 = vpop.f32.mrb[12].mxu1  ;;  %6500 = vmatprep.mubr.bf16.mxu1 %v6017_v23 }
 0x957   : > { %v5849_v61 = vpop.f32.mrb[13].mxu1  ;;  %6501 = vmatmul.mubr.bf16.gmra.mrb[72].mxu1 %v6016_v49 }
 0x958   : > { %v5851_v63 = vpop.f32.mrb[14].mxu1  ;;  %5488 = vrot.lane.b32.xlu0 %v5396_v62, %s8452_s26  ;;  %5490 = vrot.lane.b32.xlu1 %v5397_v5, %s8452_s26 }
 0x959   : > { %v5958_v56 = vpack.c.bf16 %v5851_v63, %v5847_v7  ;;  %v5853_v9 = vpop.f32.mrb[15].mxu1  ;;  %v8213_v63 = vld [vmem:[%s10520_s21 + $0x18] sm:$0xff]  }
 0x95a   : > { %v5959_v43 = vpack.c.bf16 %v5853_v9, %v5849_v61  ;;  %7583 = vmatprep.subr.bf16.mxu0 %v8213_v63 }
 0x95b   : > { %v6018_v4 = vadd.bf16 %v10050_v50, %v5958_v56  ;;  %7584 = vmatpush3.bf16.msra.mxu0 %v8213_v63 }
 0x95c   : > { %v6019_v46 = vadd.bf16 %v10047_v52, %v5959_v43 }
 0x95d   : > { %v5360_v3 = vpop.xlane.xlu0 %5359  ;;  %v5357_v10 = vpop.xlane.xlu1 %5356 }
 0x95e   : > { %v5399_v0 = vadd.f32 %v10002_v59, %v5360_v3  ;;  %v5398_v11 = vadd.f32 %v10002_v59, %v5357_v10  ;;  %v5857_v14 = vpop.f32.mrb[16].mxu1  ;;  %6508 = vmatprep.mubr.bf16.mxu1 %v6019_v46 }
 0x95f   : > { %v5859_v15 = vpop.f32.mrb[17].mxu1  ;;  %6509 = vmatmul.mubr.bf16.gmra.mrb[76].mxu1 %v6018_v4 }
 0x960   : > { %v5861_v12 = vpop.f32.mrb[18].mxu1  ;;  %5494 = vrot.lane.b32.xlu1 %v5399_v0, %s8452_s26  ;;  %5492 = vrot.lane.b32.xlu0 %v5398_v11, %s8452_s26  ;;  %v8214_v11 = vld [vmem:[%s10520_s21 + $0x20] sm:$0xff]  }
 0x961   : > { %v5960_v59 = vpack.c.bf16 %v5861_v12, %v5857_v14  ;;  %v5863_v16 = vpop.f32.mrb[19].mxu1  ;;  %v5435_v17 = vpop.permute.xlu0 %5434  ;;  %7585 = vmatprep.subr.bf16.mxu0 %v8214_v11 }
 0x962   : > { %v5961_v8 = vpack.c.bf16 %v5863_v16, %v5859_v15  ;;  %5530 = vst.msk [vmem:[%s10106_s24 + $0x8] sm:$0xff] %vm5528_vm3, %v5435_v17  ;;  %v5433_v18 = vpop.permute.xlu1 %5432  ;;  %7586 = vmatpush3.bf16.msra.mxu0 %v8214_v11 }
 0x963   : > { %5529 = vst.msk [vmem:[%s10106_s24] sm:$0xff] %vm5528_vm3, %v5433_v18  ;;  %v6020_v22 = vadd.bf16 %v10050_v50, %v5960_v59 }
 0x964   : > { %v6021_v19 = vadd.bf16 %v10047_v52, %v5961_v8  ;;  %v8215_v8 = vld [vmem:[%s10520_s21 + $0x28] sm:$0xff]  }
 0x965   : > { %7587 = vmatprep.subr.bf16.mxu0 %v8215_v8 }
 0x966   : > { %v5437_v24 = vpop.permute.xlu1 %5436  ;;  %v5867_v57 = vpop.f32.mrb[20].mxu1  ;;  %6516 = vmatprep.mubr.bf16.mxu1 %v6021_v19  ;;  %7588 = vmatpush3.bf16.msra.mxu0 %v8215_v8 }
 0x967   : > { %5531 = vst.msk [vmem:[%s10106_s24 + $0x10] sm:$0xff] %vm5528_vm3, %v5437_v24  ;;  %v5869_v51 = vpop.f32.mrb[21].mxu1  ;;  %6517 = vmatmul.mubr.bf16.gmra.mrb[80].mxu1 %v6020_v22 }
 0x968   : > { %v5871_v21 = vpop.f32.mrb[22].mxu1 }
 0x969   : > { %v5962_v44 = vpack.c.bf16 %v5871_v21, %v5867_v57  ;;  %v5873_v26 = vpop.f32.mrb[23].mxu1  ;;  %v8216_v57 = vld [vmem:[%s10520_s21 + $0x30] sm:$0xff]  }
 0x96a   : > { %v5963_v29 = vpack.c.bf16 %v5873_v26, %v5869_v51  ;;  %v5439_v30 = vpop.permute.xlu1 %5438  ;;  %v5441_v31 = vpop.permute.xlu0 %5440  ;;  %7589 = vmatprep.subr.bf16.mxu0 %v8216_v57 }
 0x96b   : > { %5532 = vst.msk [vmem:[%s10106_s24 + $0x18] sm:$0xff] %vm5528_vm3, %v5439_v30  ;;  %5533 = vst.msk [vmem:[%s10106_s24 + $0x20] sm:$0xff] %vm5528_vm3, %v5441_v31  ;;  %v6022_v33 = vadd.bf16 %v10050_v50, %v5962_v44  ;;  %7590 = vmatpush3.bf16.msra.mxu0 %v8216_v57  ;;  %v8217_v31 = vld [vmem:[%s10520_s21 + $0x38] sm:$0xff]  }
 0x96c   : > { %v6023_v32 = vadd.bf16 %v10047_v52, %v5963_v29  ;;  %7591 = vmatprep.subr.bf16.mxu0 %v8217_v31 }
 0x96e   : > { %v5443_v6 = vpop.permute.xlu1 %5442  ;;  %v5877_v34 = vpop.f32.mrb[24].mxu1  ;;  %6524 = vmatprep.mubr.bf16.mxu1 %v6023_v32 }
 0x96f   : > { %5534 = vst.msk [vmem:[%s10106_s24 + $0x28] sm:$0xff] %vm5528_vm3, %v5443_v6  ;;  %v5879_v28 = vpop.f32.mrb[25].mxu1  ;;  %6525 = vmatmul.mubr.bf16.gmra.mrb[84].mxu1 %v6022_v33  ;;  %7592 = vmatpush3.bf16.msra.mxu0 %v8217_v31 }
 0x970   : > { %v5881_v36 = vpop.f32.mrb[26].mxu1 }
 0x971   : > { %v5964_v37 = vpack.c.bf16 %v5881_v36, %v5877_v34  ;;  %v5883_v38 = vpop.f32.mrb[27].mxu1 }
 0x972   : > { %v5965_v45 = vpack.c.bf16 %v5883_v38, %v5879_v28  ;;  %v5445_v13 = vpop.permute.xlu0 %5444  ;;  %v5447_v27 = vpop.permute.xlu1 %5446 }
 0x973   : > { %5535 = vst.msk [vmem:[%s10106_s24 + $0x30] sm:$0xff] %vm5528_vm3, %v5445_v13  ;;  %5536 = vst.msk [vmem:[%s10106_s24 + $0x38] sm:$0xff] %vm5528_vm3, %v5447_v27  ;;  %v6024_v25 = vadd.bf16 %v10050_v50, %v5964_v37 }
 0x974   : > { %v6025_v41 = vadd.bf16 %v10047_v52, %v5965_v45  ;;  %v10146_v9 = vpop.f32.mrb[12].mxu0 }
 0x975   : > { %v10149_v46 = vpop.f32.mrb[13].mxu0 }
 0x976   : > { %v5887_v47 = vpop.f32.mrb[28].mxu1  ;;  %6532 = vmatprep.mubr.bf16.mxu1 %v6025_v41  ;;  %v10151_v3 = vpop.f32.mrb[14].mxu0 }
 0x977   : > { %v5889_v53 = vpop.f32.mrb[29].mxu1  ;;  %6533 = vmatmul.mubr.bf16.gmra.mrb[88].mxu1 %v6024_v25  ;;  %v10153_v0 = vpop.f32.mrb[15].mxu0 }
 0x978   : > { %v5891_v48 = vpop.f32.mrb[30].mxu1 }
 0x979   : > { %v5966_v35 = vpack.c.bf16 %v5891_v48, %v5887_v47  ;;  %v5893_v54 = vpop.f32.mrb[31].mxu1 }
 0x97a   : > { %v5967_v20 = vpack.c.bf16 %v5893_v54, %v5889_v53  ;;  %v5449_v55 = vpop.permute.xlu0 %5448  ;;  %v5451_v58 = vpop.permute.xlu1 %5450 }
 0x97b   : > { %5537 = vst.msk [vmem:[%s10106_s24 + $0x40] sm:$0xff] %vm5528_vm3, %v5449_v55  ;;  %5538 = vst.msk [vmem:[%s10106_s24 + $0x48] sm:$0xff] %vm5528_vm3, %v5451_v58  ;;  %v6026_v23 = vadd.bf16 %v10050_v50, %v5966_v35 }
 0x97c   : > { %v6027_v60 = vadd.bf16 %v10047_v52, %v5967_v20  ;;  %v10179_v6 = vpop.f32.mrb[16].mxu0 }
 0x97d   : > { %v10181_v28 = vpop.f32.mrb[17].mxu0 }
 0x97e   : > { %v5897_v49 = vpop.f32.mrb[32].mxu1  ;;  %6540 = vmatprep.mubr.bf16.mxu1 %v6027_v60  ;;  %v10183_v37 = vpop.f32.mrb[18].mxu0 }
 0x97f   : > { %v5899_v42 = vpop.f32.mrb[33].mxu1  ;;  %6541 = vmatmul.mubr.bf16.gmra.mrb[92].mxu1 %v6026_v23  ;;  %v10185_v45 = vpop.f32.mrb[19].mxu0 }
 0x980   : > { %v5901_v2 = vpop.f32.mrb[34].mxu1 }
 0x981   : > { %v5968_v5 = vpack.c.bf16 %v5901_v2, %v5897_v49  ;;  %v5903_v62 = vpop.f32.mrb[35].mxu1 }
 0x982   : > { %v5969_v7 = vpack.c.bf16 %v5903_v62, %v5899_v42  ;;  %v5453_v61 = vpop.permute.xlu0 %5452  ;;  %v5455_v40 = vpop.permute.xlu1 %5454 }
 0x983   : > { %5539 = vst.msk [vmem:[%s10106_s24 + $0x50] sm:$0xff] %vm5528_vm3, %v5453_v61  ;;  %5540 = vst.msk [vmem:[%s10106_s24 + $0x58] sm:$0xff] %vm5528_vm3, %v5455_v40  ;;  %v6028_v43 = vadd.bf16 %v10050_v50, %v5968_v5 }
 0x984   : > { %v6029_v56 = vadd.bf16 %v10047_v52, %v5969_v7  ;;  %v10199_v5 = vpop.f32.mrb[20].mxu0 }
 0x985   : > { %v10201_v62 = vpop.f32.mrb[21].mxu0 }
 0x986   : > { %v5907_v4 = vpop.f32.mrb[36].mxu1  ;;  %6548 = vmatprep.mubr.bf16.mxu1 %v6029_v56  ;;  %v10203_v7 = vpop.f32.mrb[22].mxu0 }
 0x987   : > { %v5909_v10 = vpop.f32.mrb[37].mxu1  ;;  %6549 = vmatmul.mubr.bf16.gmra.mrb[96].mxu1 %v6028_v43  ;;  %v10205_v61 = vpop.f32.mrb[23].mxu0 }
 0x988   : > { %v5911_v14 = vpop.f32.mrb[38].mxu1 }
 0x989   : > { %v5970_v15 = vpack.c.bf16 %v5911_v14, %v5907_v4  ;;  %v5913_v12 = vpop.f32.mrb[39].mxu1 }
 0x98a   : > { %v5971_v59 = vpack.c.bf16 %v5913_v12, %v5909_v10  ;;  %v5457_v16 = vpop.permute.xlu0 %5456  ;;  %v5459_v17 = vpop.permute.xlu1 %5458 }
 0x98b   : > { %5541 = vst.msk [vmem:[%s10106_s24 + $0x60] sm:$0xff] %vm5528_vm3, %v5457_v16  ;;  %5542 = vst.msk [vmem:[%s10106_s24 + $0x68] sm:$0xff] %vm5528_vm3, %v5459_v17  ;;  %v6030_v19 = vadd.bf16 %v10050_v50, %v5970_v15 }
 0x98c   : > { %v6031_v18 = vadd.bf16 %v10047_v52, %v5971_v59  ;;  %v10215_v56 = vpop.f32.mrb[24].mxu0 }
 0x98d   : > { %v10217_v43 = vpop.f32.mrb[25].mxu0 }
 0x98e   : > { %v5917_v22 = vpop.f32.mrb[40].mxu1  ;;  %6556 = vmatprep.mubr.bf16.mxu1 %v6031_v18  ;;  %v10219_v4 = vpop.f32.mrb[26].mxu0 }
 0x98f   : > { %v5919_v24 = vpop.f32.mrb[41].mxu1  ;;  %6557 = vmatmul.mubr.bf16.gmra.mrb[100].mxu1 %v6030_v19  ;;  %v10221_v10 = vpop.f32.mrb[27].mxu0 }
 0x990   : > { %v5921_v51 = vpop.f32.mrb[42].mxu1 }
 0x991   : > { %v5972_v21 = vpack.c.bf16 %v5921_v51, %v5917_v22  ;;  %v5923_v44 = vpop.f32.mrb[43].mxu1 }
 0x992   : > { %v5973_v26 = vpack.c.bf16 %v5923_v44, %v5919_v24  ;;  %v5461_v29 = vpop.permute.xlu0 %5460  ;;  %v5463_v30 = vpop.permute.xlu1 %5462 }
 0x993   : > { %5543 = vst.msk [vmem:[%s10106_s24 + $0x70] sm:$0xff] %vm5528_vm3, %v5461_v29  ;;  %5544 = vst.msk [vmem:[%s10106_s24 + $0x78] sm:$0xff] %vm5528_vm3, %v5463_v30  ;;  %v6032_v33 = vadd.bf16 %v10050_v50, %v5972_v21 }
 0x994   : > { %v6033_v32 = vadd.bf16 %v10047_v52, %v5973_v26  ;;  %v10231_v59 = vpop.f32.mrb[28].mxu0 }
 0x995   : > { %v10233_v16 = vpop.f32.mrb[29].mxu0 }
 0x996   : > { %v5927_v34 = vpop.f32.mrb[44].mxu1  ;;  %6564 = vmatprep.mubr.bf16.mxu1 %v6033_v32  ;;  %v10235_v17 = vpop.f32.mrb[30].mxu0 }
 0x997   : > { %v5929_v36 = vpop.f32.mrb[45].mxu1  ;;  %6565 = vmatmul.mubr.bf16.gmra.mrb[104].mxu1 %v6032_v33  ;;  %v10237_v8 = vpop.f32.mrb[31].mxu0 }
 0x998   : > { %v5931_v38 = vpop.f32.mrb[46].mxu1 }
 0x999   : > { %v5974_v13 = vpack.c.bf16 %v5931_v38, %v5927_v34  ;;  %v5933_v27 = vpop.f32.mrb[47].mxu1  ;;  %v6605_v38 = vld [vmem:[%s10522_s3] sm:$0x1] }
 0x99a   : > { %v5975_v41 = vpack.c.bf16 %v5933_v27, %v5929_v36  ;;  %v5465_v25 = vpop.permute.xlu0 %5464  ;;  %v5467_v47 = vpop.permute.xlu1 %5466 }
 0x99b   : > { %5545 = vst.msk [vmem:[%s10106_s24 + $0x80] sm:$0xff] %vm5528_vm3, %v5465_v25  ;;  %5546 = vst.msk [vmem:[%s10106_s24 + $0x88] sm:$0xff] %vm5528_vm3, %v5467_v47  ;;  %v6034_v48 = vadd.bf16 %v10050_v50, %v5974_v13  ;;  %v6606_v13 = vpack.c.bf16 %v6605_v38, %v6605_v38 }
 0x99c   : > { %v6035_v53 = vadd.bf16 %v10047_v52, %v5975_v41  ;;  %v10247_v57 = vpop.f32.mrb[32].mxu0 }
 0x99d   : > { %v10249_v51 = vpop.f32.mrb[33].mxu0 }
 0x99e   : > { %v5937_v35 = vpop.f32.mrb[48].mxu1  ;;  %6572 = vmatprep.mubr.bf16.mxu1 %v6035_v53  ;;  %v10251_v21 = vpop.f32.mrb[34].mxu0  ;;  %v6608_v53 = vpack.i.b16 %v6606_v13, %v6606_v13 }
 0x99f   : > { %v5939_v54 = vpop.f32.mrb[49].mxu1  ;;  %6573 = vmatmul.mubr.bf16.gmra.mrb[108].mxu1 %v6034_v48  ;;  %v10253_v44 = vpop.f32.mrb[35].mxu0 }
 0x9a0   : > { %v5941_v20 = vpop.f32.mrb[50].mxu1 }
 0x9a1   : > { %v5976_v55 = vpack.c.bf16 %v5941_v20, %v5937_v35  ;;  %v5943_v58 = vpop.f32.mrb[51].mxu1 }
 0x9a2   : > { %v5977_v60 = vpack.c.bf16 %v5943_v58, %v5939_v54  ;;  %v5469_v23 = vpop.permute.xlu0 %5468  ;;  %v5471_v49 = vpop.permute.xlu1 %5470 }
 0x9a3   : > { %5547 = vst.msk [vmem:[%s10106_s24 + $0x90] sm:$0xff] %vm5528_vm3, %v5469_v23  ;;  %5548 = vst.msk [vmem:[%s10106_s24 + $0x98] sm:$0xff] %vm5528_vm3, %v5471_v49  ;;  %v6036_v2 = vadd.bf16 %v10050_v50, %v5976_v55  ;;  %v10277_v55 = vrot.slane %v6608_v53, %v9053_v39 }
 0x9a4   : > { %v6037_v42 = vadd.bf16 %v10047_v52, %v5977_v60  ;;  %v10255_v26 = vpop.f32.mrb[36].mxu0 }
 0x9a5   : > { %v10257_v29 = vpop.f32.mrb[37].mxu0 }
 0x9a6   : > { %6580 = vmatprep.mubr.bf16.mxu1 %v6037_v42  ;;  %v10259_v30 = vpop.f32.mrb[38].mxu0 }
 0x9a7   : > { %6581 = vmatmul.mubr.bf16.gmra.mrb[112].mxu1 %v6036_v2  ;;  %v10261_v31 = vpop.f32.mrb[39].mxu0 }
 0x9aa   : > { %v5473_v40 = vpop.permute.xlu0 %5472  ;;  %v5475_v63 = vpop.permute.xlu1 %5474 }
 0x9ab   : > { %5549 = vst.msk [vmem:[%s10106_s24 + $0xa0] sm:$0xff] %vm5528_vm3, %v5473_v40  ;;  %5550 = vst.msk [vmem:[%s10106_s24 + $0xa8] sm:$0xff] %vm5528_vm3, %v5475_v63 }
 0x9ac   : > { %v10263_v32 = vpop.f32.mrb[40].mxu0 }
 0x9ad   : > { %v10265_v33 = vpop.f32.mrb[41].mxu0 }
 0x9ae   : > { %v10267_v34 = vpop.f32.mrb[42].mxu0 }
 0x9af   : > { %v10269_v36 = vpop.f32.mrb[43].mxu0 }
 0x9b2   : > { %v5477_v52 = vpop.permute.xlu0 %5476  ;;  %v5479_v50 = vpop.permute.xlu1 %5478 }
 0x9b3   : > { %5551 = vst.msk [vmem:[%s10106_s24 + $0xb0] sm:$0xff] %vm5528_vm3, %v5477_v52  ;;  %5552 = vst.msk [vmem:[%s10106_s24 + $0xb8] sm:$0xff] %vm5528_vm3, %v5479_v50 }
 0x9ba   : > { %v5481_v11 = vpop.permute.xlu0 %5480  ;;  %v5483_v14 = vpop.permute.xlu1 %5482 }
 0x9bb   : > { %5553 = vst.msk [vmem:[%s10106_s24 + $0xc0] sm:$0xff] %vm5528_vm3, %v5481_v11  ;;  %5554 = vst.msk [vmem:[%s10106_s24 + $0xc8] sm:$0xff] %vm5528_vm3, %v5483_v14 }
 0x9c2   : > { %v5485_v15 = vpop.permute.xlu0 %5484  ;;  %v5487_v12 = vpop.permute.xlu1 %5486 }
 0x9c3   : > { %5555 = vst.msk [vmem:[%s10106_s24 + $0xd0] sm:$0xff] %vm5528_vm3, %v5485_v15  ;;  %5556 = vst.msk [vmem:[%s10106_s24 + $0xd8] sm:$0xff] %vm5528_vm3, %v5487_v12 }
 0x9ca   : > { %v5489_v18 = vpop.permute.xlu0 %5488  ;;  %v5491_v19 = vpop.permute.xlu1 %5490 }
 0x9cb   : > { %5557 = vst.msk [vmem:[%s10106_s24 + $0xe0] sm:$0xff] %vm5528_vm3, %v5489_v18  ;;  %5558 = vst.msk [vmem:[%s10106_s24 + $0xe8] sm:$0xff] %vm5528_vm3, %v5491_v19 }
 0x9d2   : > { %v5493_v22 = vpop.permute.xlu0 %5492  ;;  %v5495_v24 = vpop.permute.xlu1 %5494 }
 0x9d3   : > { %5559 = vst.msk [vmem:[%s10106_s24 + $0xf0] sm:$0xff] %vm5528_vm3, %v5493_v22  ;;  %5560 = vst.msk [vmem:[%s10106_s24 + $0xf8] sm:$0xff] %vm5528_vm3, %v5495_v24 }
 0xa02   : > { %v7423_v27 = vpop.f32.mrb[52].mxu1 }
 0xa03   : > { %v7424_v41 = vpop.f32.mrb[53].mxu1 }
 0xa04   : > { %v7425_v25 = vadd.f32 %v7424_v41, %v7423_v27  ;;  %v7426_v47 = vpop.f32.mrb[54].mxu1 }
 0xa05   : > { %v7427_v48 = vpop.f32.mrb[55].mxu1 }
 0xa06   : > { %v6463_v35 = vadd.f32 %v7425_v25, %v10149_v46  ;;  %v7428_v54 = vadd.f32 %v7427_v48, %v7426_v47 }
 0xa08   : > { %v6466_v20 = vadd.f32 %v7428_v54, %v10153_v0 }
 0xa0a   : > { %v6589_v58 = vpack.c.bf16 %v6466_v20, %v6463_v35  ;;  %v7429_v60 = vpop.f32.mrb[56].mxu1 }
 0xa0b   : > { %v7430_v23 = vpop.f32.mrb[57].mxu1 }
 0xa0c   : > { %v6614_v49 = vadd.bf16 %v10277_v55, %v6589_v58  ;;  %v7431_v42 = vadd.f32 %v7430_v23, %v7429_v60  ;;  %v7432_v2 = vpop.f32.mrb[58].mxu1 }
 0xa0d   : > { %v7433_v40 = vpop.f32.mrb[59].mxu1 }
 0xa0e   : > { %v6471_v63 = vadd.f32 %v10146_v9, %v7431_v42  ;;  %v7434_v52 = vadd.f32 %v7433_v40, %v7432_v2  ;;  %v6630_v50 = vmax.bf16 %v8449_v1, %v6614_v49 }
 0xa10   : > { %v6474_v46 = vadd.f32 %v10151_v3, %v7434_v52  ;;  %7593 = vmatprep.mubr.bf16.mxu0 %v6630_v50 }
 0xa12   : > { %v6590_v0 = vpack.c.bf16 %v6474_v46, %v6471_v63  ;;  %v7435_v11 = vpop.f32.mrb[60].mxu1 }
 0xa13   : > { %v7436_v39 = vpop.f32.mrb[61].mxu1 }
 0xa14   : > { %v6615_v14 = vadd.bf16 %v10277_v55, %v6590_v0  ;;  %v7437_v15 = vadd.f32 %v7436_v39, %v7435_v11  ;;  %v7438_v12 = vpop.f32.mrb[62].mxu1 }
 0xa15   : > { %v7439_v18 = vpop.f32.mrb[63].mxu1 }
 0xa16   : > { %v6631_v19 = vmax.bf16 %v8449_v1, %v6615_v14  ;;  %v6479_v22 = vadd.f32 %v7437_v15, %v10181_v28  ;;  %v7440_v24 = vadd.f32 %v7439_v18, %v7438_v12 }
 0xa18   : > { %v6482_v9 = vadd.f32 %v7440_v24, %v10185_v45  ;;  %7594 = vmatmul.mubr.bf16.vlgmr.msra.gmra.mrb[44].mxu0 %v6631_v19 }
 0xa1a   : > { %v6591_v38 = vpack.c.bf16 %v6482_v9, %v6479_v22  ;;  %v7441_v13 = vpop.f32.mrb[64].mxu1 }
 0xa1b   : > { %v7442_v3 = vpop.f32.mrb[65].mxu1 }
 0xa1c   : > { %v6616_v27 = vadd.bf16 %v10277_v55, %v6591_v38  ;;  %v7443_v41 = vadd.f32 %v7442_v3, %v7441_v13  ;;  %v7444_v25 = vpop.f32.mrb[66].mxu1 }
 0xa1d   : > { %v7445_v47 = vpop.f32.mrb[67].mxu1 }
 0xa1e   : > { %v6487_v53 = vadd.f32 %v10179_v6, %v7443_v41  ;;  %v7446_v48 = vadd.f32 %v7445_v47, %v7444_v25  ;;  %v6632_v35 = vmax.bf16 %v8449_v1, %v6616_v27 }
 0xa20   : > { %v6490_v54 = vadd.f32 %v10183_v37, %v7446_v48  ;;  %7597 = vmatprep.mubr.bf16.mxu0 %v6632_v35 }
 0xa22   : > { %v6592_v28 = vpack.c.bf16 %v6490_v54, %v6487_v53  ;;  %v7447_v20 = vpop.f32.mrb[68].mxu1 }
 0xa23   : > { %v7448_v45 = vpop.f32.mrb[69].mxu1 }
 0xa24   : > { %v6617_v58 = vadd.bf16 %v10277_v55, %v6592_v28  ;;  %v7449_v60 = vadd.f32 %v7448_v45, %v7447_v20  ;;  %v7450_v23 = vpop.f32.mrb[70].mxu1 }
 0xa25   : > { %v7451_v49 = vpop.f32.mrb[71].mxu1 }
 0xa26   : > { %v6633_v42 = vmax.bf16 %v8449_v1, %v6617_v58  ;;  %v6495_v2 = vadd.f32 %v7449_v60, %v10201_v62  ;;  %v7452_v40 = vadd.f32 %v7451_v49, %v7450_v23 }
 0xa28   : > { %v6498_v6 = vadd.f32 %v7452_v40, %v10205_v61  ;;  %7598 = vmatmul.mubr.bf16.gmra.mrb[48].mxu0 %v6633_v42 }
 0xa2a   : > { %v6593_v63 = vpack.c.bf16 %v6498_v6, %v6495_v2  ;;  %v7453_v52 = vpop.f32.mrb[72].mxu1 }
 0xa2b   : > { %v7454_v37 = vpop.f32.mrb[73].mxu1 }
 0xa2c   : > { %v6618_v50 = vadd.bf16 %v10277_v55, %v6593_v63  ;;  %v7455_v46 = vadd.f32 %v7454_v37, %v7453_v52  ;;  %v7456_v0 = vpop.f32.mrb[74].mxu1 }
 0xa2d   : > { %v7457_v11 = vpop.f32.mrb[75].mxu1 }
 0xa2e   : > { %v6503_v39 = vadd.f32 %v10199_v5, %v7455_v46  ;;  %v7458_v14 = vadd.f32 %v7457_v11, %v7456_v0  ;;  %v6634_v15 = vmax.bf16 %v8449_v1, %v6618_v50 }
 0xa30   : > { %v6506_v12 = vadd.f32 %v10203_v7, %v7458_v14  ;;  %7601 = vmatprep.mubr.bf16.mxu0 %v6634_v15 }
 0xa32   : > { %v6594_v62 = vpack.c.bf16 %v6506_v12, %v6503_v39  ;;  %v7459_v18 = vpop.f32.mrb[76].mxu1 }
 0xa33   : > { %v7460_v61 = vpop.f32.mrb[77].mxu1 }
 0xa34   : > { %v6619_v19 = vadd.bf16 %v10277_v55, %v6594_v62  ;;  %v7461_v22 = vadd.f32 %v7460_v61, %v7459_v18  ;;  %v7462_v24 = vpop.f32.mrb[78].mxu1 }
 0xa35   : > { %v7463_v9 = vpop.f32.mrb[79].mxu1 }
 0xa36   : > { %v6635_v38 = vmax.bf16 %v8449_v1, %v6619_v19  ;;  %v6511_v13 = vadd.f32 %v7461_v22, %v10217_v43  ;;  %v7464_v3 = vadd.f32 %v7463_v9, %v7462_v24 }
 0xa38   : > { %v6514_v5 = vadd.f32 %v7464_v3, %v10221_v10  ;;  %7602 = vmatmul.mubr.bf16.gmra.mrb[52].mxu0 %v6635_v38 }
 0xa3a   : > { %v6595_v27 = vpack.c.bf16 %v6514_v5, %v6511_v13  ;;  %v7465_v41 = vpop.f32.mrb[80].mxu1 }
 0xa3b   : > { %v7466_v7 = vpop.f32.mrb[81].mxu1 }
 0xa3c   : > { %v6620_v25 = vadd.bf16 %v10277_v55, %v6595_v27  ;;  %v7467_v47 = vadd.f32 %v7466_v7, %v7465_v41  ;;  %v7468_v53 = vpop.f32.mrb[82].mxu1 }
 0xa3d   : > { %v7469_v48 = vpop.f32.mrb[83].mxu1 }
 0xa3e   : > { %v6519_v35 = vadd.f32 %v10215_v56, %v7467_v47  ;;  %v7470_v54 = vadd.f32 %v7469_v48, %v7468_v53  ;;  %v6636_v28 = vmax.bf16 %v8449_v1, %v6620_v25 }
 0xa40   : > { %v6522_v20 = vadd.f32 %v10219_v4, %v7470_v54  ;;  %7605 = vmatprep.mubr.bf16.mxu0 %v6636_v28 }
 0xa42   : > { %v6596_v43 = vpack.c.bf16 %v6522_v20, %v6519_v35  ;;  %v7471_v45 = vpop.f32.mrb[84].mxu1 }
 0xa43   : > { %v7472_v10 = vpop.f32.mrb[85].mxu1 }
 0xa44   : > { %v6621_v58 = vadd.bf16 %v10277_v55, %v6596_v43  ;;  %v7473_v60 = vadd.f32 %v7472_v10, %v7471_v45  ;;  %v7474_v23 = vpop.f32.mrb[86].mxu1 }
 0xa45   : > { %v7475_v49 = vpop.f32.mrb[87].mxu1 }
 0xa46   : > { %v6637_v42 = vmax.bf16 %v8449_v1, %v6621_v58  ;;  %v6527_v2 = vadd.f32 %v7473_v60, %v10233_v16  ;;  %v7476_v40 = vadd.f32 %v7475_v49, %v7474_v23 }
 0xa48   : > { %v6530_v56 = vadd.f32 %v7476_v40, %v10237_v8  ;;  %7606 = vmatmul.mubr.bf16.gmra.mrb[56].mxu0 %v6637_v42 }
 0xa4a   : > { %v6597_v6 = vpack.c.bf16 %v6530_v56, %v6527_v2  ;;  %v7477_v63 = vpop.f32.mrb[88].mxu1 }
 0xa4b   : > { %v7478_v4 = vpop.f32.mrb[89].mxu1 }
 0xa4c   : > { %v6622_v52 = vadd.bf16 %v10277_v55, %v6597_v6  ;;  %v7479_v37 = vadd.f32 %v7478_v4, %v7477_v63  ;;  %v7480_v50 = vpop.f32.mrb[90].mxu1 }
 0xa4d   : > { %v7481_v46 = vpop.f32.mrb[91].mxu1 }
 0xa4e   : > { %v6535_v0 = vadd.f32 %v10231_v59, %v7479_v37  ;;  %v7482_v11 = vadd.f32 %v7481_v46, %v7480_v50  ;;  %v6638_v39 = vmax.bf16 %v8449_v1, %v6622_v52 }
 0xa50   : > { %v6538_v14 = vadd.f32 %v10235_v17, %v7482_v11  ;;  %7609 = vmatprep.mubr.bf16.mxu0 %v6638_v39 }
 0xa52   : > { %v6598_v16 = vpack.c.bf16 %v6538_v14, %v6535_v0  ;;  %v7483_v15 = vpop.f32.mrb[92].mxu1 }
 0xa53   : > { %v7484_v8 = vpop.f32.mrb[93].mxu1 }
 0xa54   : > { %v6623_v12 = vadd.bf16 %v10277_v55, %v6598_v16  ;;  %v7485_v62 = vadd.f32 %v7484_v8, %v7483_v15  ;;  %v7486_v18 = vpop.f32.mrb[94].mxu1 }
 0xa55   : > { %v7487_v61 = vpop.f32.mrb[95].mxu1 }
 0xa56   : > { %v6639_v19 = vmax.bf16 %v8449_v1, %v6623_v12  ;;  %v6543_v22 = vadd.f32 %v7485_v62, %v10249_v51  ;;  %v7488_v24 = vadd.f32 %v7487_v61, %v7486_v18 }
 0xa58   : > { %v6546_v59 = vadd.f32 %v7488_v24, %v10253_v44  ;;  %7610 = vmatmul.mubr.bf16.gmra.mrb[60].mxu0 %v6639_v19  ;;  %v10344_v24 = vld [vmem:[%s10523_s9] ss:$0 sm:$0xff] }
 0xa5a   : > { %v6599_v9 = vpack.c.bf16 %v6546_v59, %v6543_v22  ;;  %v7489_v38 = vpop.f32.mrb[96].mxu1 }
 0xa5b   : > { %v7490_v17 = vpop.f32.mrb[97].mxu1 }
 0xa5c   : > { %v6624_v13 = vadd.bf16 %v10277_v55, %v6599_v9  ;;  %v7491_v3 = vadd.f32 %v7490_v17, %v7489_v38  ;;  %v7492_v5 = vpop.f32.mrb[98].mxu1 }
 0xa5d   : > { %v7493_v27 = vpop.f32.mrb[99].mxu1 }
 0xa5e   : > { %v6551_v41 = vadd.f32 %v10247_v57, %v7491_v3  ;;  %v7494_v7 = vadd.f32 %v7493_v27, %v7492_v5  ;;  %v6640_v25 = vmax.bf16 %v8449_v1, %v6624_v13 }
 0xa60   : > { %v6554_v47 = vadd.f32 %v10251_v21, %v7494_v7  ;;  %7613 = vmatprep.mubr.bf16.mxu0 %v6640_v25 }
 0xa62   : > { %v6600_v51 = vpack.c.bf16 %v6554_v47, %v6551_v41  ;;  %v7495_v53 = vpop.f32.mrb[100].mxu1 }
 0xa63   : > { %v7496_v44 = vpop.f32.mrb[101].mxu1 }
 0xa64   : > { %v6625_v48 = vadd.bf16 %v10277_v55, %v6600_v51  ;;  %v7497_v35 = vadd.f32 %v7496_v44, %v7495_v53  ;;  %v7498_v54 = vpop.f32.mrb[102].mxu1 }
 0xa65   : > { %v7499_v28 = vpop.f32.mrb[103].mxu1 }
 0xa66   : > { %v6641_v20 = vmax.bf16 %v8449_v1, %v6625_v48  ;;  %v6559_v43 = vadd.f32 %v7497_v35, %v10257_v29  ;;  %v7500_v45 = vadd.f32 %v7499_v28, %v7498_v54 }
 0xa68   : > { %v6562_v57 = vadd.f32 %v7500_v45, %v10261_v31  ;;  %7614 = vmatmul.mubr.bf16.gmra.mrb[64].mxu0 %v6641_v20 }
 0xa6a   : > { %v6601_v10 = vpack.c.bf16 %v6562_v57, %v6559_v43  ;;  %v7501_v58 = vpop.f32.mrb[104].mxu1 }
 0xa6b   : > { %v7502_v21 = vpop.f32.mrb[105].mxu1 }
 0xa6c   : > { %v6626_v60 = vadd.bf16 %v10277_v55, %v6601_v10  ;;  %v7503_v23 = vadd.f32 %v7502_v21, %v7501_v58  ;;  %v7504_v49 = vpop.f32.mrb[106].mxu1 }
 0xa6d   : > { %v7505_v42 = vpop.f32.mrb[107].mxu1 }
 0xa6e   : > { %v6567_v2 = vadd.f32 %v10255_v26, %v7503_v23  ;;  %v7506_v40 = vadd.f32 %v7505_v42, %v7504_v49  ;;  %v6642_v56 = vmax.bf16 %v8449_v1, %v6626_v60 }
 0xa70   : > { %v6570_v6 = vadd.f32 %v10259_v30, %v7506_v40  ;;  %7617 = vmatprep.mubr.bf16.mxu0 %v6642_v56 }
 0xa72   : > { %v6602_v29 = vpack.c.bf16 %v6570_v6, %v6567_v2  ;;  %v7507_v63 = vpop.f32.mrb[108].mxu1 }
 0xa73   : > { %v7508_v31 = vpop.f32.mrb[109].mxu1 }
 0xa74   : > { %v6627_v4 = vadd.bf16 %v10277_v55, %v6602_v29  ;;  %v7509_v52 = vadd.f32 %v7508_v31, %v7507_v63  ;;  %v7510_v37 = vpop.f32.mrb[110].mxu1 }
 0xa75   : > { %v7511_v50 = vpop.f32.mrb[111].mxu1 }
 0xa76   : > { %v6643_v46 = vmax.bf16 %v8449_v1, %v6627_v4  ;;  %v6575_v0 = vadd.f32 %v7509_v52, %v10265_v33  ;;  %v7512_v11 = vadd.f32 %v7511_v50, %v7510_v37 }
 0xa78   : > { %v6578_v26 = vadd.f32 %v7512_v11, %v10269_v36  ;;  %7618 = vmatmul.mubr.bf16.gmra.mrb[68].mxu0 %v6643_v46 }
 0xa7a   : > { %v6603_v39 = vpack.c.bf16 %v6578_v26, %v6575_v0  ;;  %v7513_v14 = vpop.f32.mrb[112].mxu1 }
 0xa7b   : > { %v7514_v30 = vpop.f32.mrb[113].mxu1 }
 0xa7c   : > { %v6628_v16 = vadd.bf16 %v10277_v55, %v6603_v39  ;;  %v7515_v15 = vadd.f32 %v7514_v30, %v7513_v14  ;;  %v7516_v8 = vpop.f32.mrb[114].mxu1 }
 0xa7d   : > { %v7517_v12 = vpop.f32.mrb[115].mxu1 }
 0xa7e   : > { %v6583_v62 = vadd.f32 %v10263_v32, %v7515_v15  ;;  %v7518_v18 = vadd.f32 %v7517_v12, %v7516_v8  ;;  %v6644_v61 = vmax.bf16 %v8449_v1, %v6628_v16 }
 0xa80   : > { %v6586_v33 = vadd.f32 %v10267_v34, %v7518_v18  ;;  %7621 = vmatprep.mubr.bf16.mxu0 %v6644_v61 }
 0xa82   : > { %v6604_v36 = vpack.c.bf16 %v6586_v33, %v6583_v62 }
 0xa84   : > { %v6629_v19 = vadd.bf16 %v10277_v55, %v6604_v36 }
 0xa86   : > { %v6645_v22 = vmax.bf16 %v8449_v1, %v6629_v19 }
 0xa88   : > { %7622 = vmatmul.mubr.bf16.gmra.mrb[72].mxu0 %v6645_v22 }
 0xaeb   : > { %v7595_v32 = vpop.f32.mrb[44].mxu0 }
 0xaec   : > { %v6760_v59 = vadd.f32 %v7595_v32, %v10344_v24  ;;  %v6751_v9 = vpop.f32.mrb[45].mxu0 }
 0xaed   : > { %v6752_v34 = vadd.f32 %v10344_v24, %v6751_v9  ;;  %v7596_v38 = vpop.f32.mrb[46].mxu0 }
 0xaee   : > { %6880 = vst.msk [vmem:[%s10106_s24 + $0x10] sm:$0xff] %vm981_vm2, %v6760_v59  ;;  %v6763_v55 = vadd.f32 %v7596_v38, %v10344_v24  ;;  %v6754_v1 = vpop.f32.mrb[47].mxu0 }
 0xaef   : > { %6878 = vst.msk [vmem:[%s10106_s24] sm:$0xff] %vm981_vm2, %v6752_v34  ;;  %v6755_v17 = vadd.f32 %v10344_v24, %v6754_v1 }
 0xaf0   : > { %6881 = vst.msk [vmem:[%s10106_s24 + $0x18] sm:$0xff] %vm981_vm2, %v6763_v55 }
 0xaf1   : > { %6879 = vst.msk [vmem:[%s10106_s24 + $0x8] sm:$0xff] %vm981_vm2, %v6755_v17 }
 0xafb   : > { %v7599_v13 = vpop.f32.mrb[48].mxu0 }
 0xafc   : > { %v6776_v3 = vadd.f32 %v7599_v13, %v10344_v24  ;;  %v6767_v5 = vpop.f32.mrb[49].mxu0 }
 0xafd   : > { %v6768_v27 = vadd.f32 %v10344_v24, %v6767_v5  ;;  %v7600_v41 = vpop.f32.mrb[50].mxu0 }
 0xafe   : > { %6884 = vst.msk [vmem:[%s10106_s24 + $0x30] sm:$0xff] %vm981_vm2, %v6776_v3  ;;  %v6779_v7 = vadd.f32 %v7600_v41, %v10344_v24  ;;  %v6770_v25 = vpop.f32.mrb[51].mxu0 }
 0xaff   : > { %6882 = vst.msk [vmem:[%s10106_s24 + $0x20] sm:$0xff] %vm981_vm2, %v6768_v27  ;;  %v6771_v47 = vadd.f32 %v10344_v24, %v6770_v25 }
 0xb00   : > { %6885 = vst.msk [vmem:[%s10106_s24 + $0x38] sm:$0xff] %vm981_vm2, %v6779_v7 }
 0xb01   : > { %6883 = vst.msk [vmem:[%s10106_s24 + $0x28] sm:$0xff] %vm981_vm2, %v6771_v47 }
 0xb0b   : > { %v7603_v51 = vpop.f32.mrb[52].mxu0 }
 0xb0c   : > { %v6792_v53 = vadd.f32 %v7603_v51, %v10344_v24  ;;  %v6783_v44 = vpop.f32.mrb[53].mxu0 }
 0xb0d   : > { %v6784_v48 = vadd.f32 %v10344_v24, %v6783_v44  ;;  %v7604_v35 = vpop.f32.mrb[54].mxu0 }
 0xb0e   : > { %6888 = vst.msk [vmem:[%s10106_s24 + $0x50] sm:$0xff] %vm981_vm2, %v6792_v53  ;;  %v6795_v54 = vadd.f32 %v7604_v35, %v10344_v24  ;;  %v6786_v28 = vpop.f32.mrb[55].mxu0 }
 0xb0f   : > { %6886 = vst.msk [vmem:[%s10106_s24 + $0x40] sm:$0xff] %vm981_vm2, %v6784_v48  ;;  %v6787_v20 = vadd.f32 %v10344_v24, %v6786_v28 }
 0xb10   : > { %6889 = vst.msk [vmem:[%s10106_s24 + $0x58] sm:$0xff] %vm981_vm2, %v6795_v54 }
 0xb11   : > { %6887 = vst.msk [vmem:[%s10106_s24 + $0x48] sm:$0xff] %vm981_vm2, %v6787_v20 }
 0xb1b   : > { %v7607_v43 = vpop.f32.mrb[56].mxu0 }
 0xb1c   : > { %v6808_v45 = vadd.f32 %v7607_v43, %v10344_v24  ;;  %v6799_v57 = vpop.f32.mrb[57].mxu0 }
 0xb1d   : > { %v6800_v10 = vadd.f32 %v10344_v24, %v6799_v57  ;;  %v7608_v58 = vpop.f32.mrb[58].mxu0 }
 0xb1e   : > { %6892 = vst.msk [vmem:[%s10106_s24 + $0x70] sm:$0xff] %vm981_vm2, %v6808_v45  ;;  %v6811_v21 = vadd.f32 %v7608_v58, %v10344_v24  ;;  %v6802_v60 = vpop.f32.mrb[59].mxu0 }
 0xb1f   : > { %6890 = vst.msk [vmem:[%s10106_s24 + $0x60] sm:$0xff] %vm981_vm2, %v6800_v10  ;;  %v6803_v23 = vadd.f32 %v10344_v24, %v6802_v60 }
 0xb20   : > { %6893 = vst.msk [vmem:[%s10106_s24 + $0x78] sm:$0xff] %vm981_vm2, %v6811_v21 }
 0xb21   : > { %6891 = vst.msk [vmem:[%s10106_s24 + $0x68] sm:$0xff] %vm981_vm2, %v6803_v23 }
 0xb2b   : > { %v7611_v49 = vpop.f32.mrb[60].mxu0 }
 0xb2c   : > { %v6824_v42 = vadd.f32 %v7611_v49, %v10344_v24  ;;  %v6815_v2 = vpop.f32.mrb[61].mxu0 }
 0xb2d   : > { %v6816_v40 = vadd.f32 %v10344_v24, %v6815_v2  ;;  %v7612_v56 = vpop.f32.mrb[62].mxu0 }
 0xb2e   : > { %6896 = vst.msk [vmem:[%s10106_s24 + $0x90] sm:$0xff] %vm981_vm2, %v6824_v42  ;;  %v6827_v6 = vadd.f32 %v7612_v56, %v10344_v24  ;;  %v6818_v29 = vpop.f32.mrb[63].mxu0 }
 0xb2f   : > { %6894 = vst.msk [vmem:[%s10106_s24 + $0x80] sm:$0xff] %vm981_vm2, %v6816_v40  ;;  %v6819_v63 = vadd.f32 %v10344_v24, %v6818_v29 }
 0xb30   : > { %6897 = vst.msk [vmem:[%s10106_s24 + $0x98] sm:$0xff] %vm981_vm2, %v6827_v6 }
 0xb31   : > { %6895 = vst.msk [vmem:[%s10106_s24 + $0x88] sm:$0xff] %vm981_vm2, %v6819_v63 }
 0xb3b   : > { %v7615_v31 = vpop.f32.mrb[64].mxu0 }
 0xb3c   : > { %v6840_v4 = vadd.f32 %v7615_v31, %v10344_v24  ;;  %v6831_v52 = vpop.f32.mrb[65].mxu0 }
 0xb3d   : > { %v6832_v37 = vadd.f32 %v10344_v24, %v6831_v52  ;;  %v7616_v50 = vpop.f32.mrb[66].mxu0 }
 0xb3e   : > { %6900 = vst.msk [vmem:[%s10106_s24 + $0xb0] sm:$0xff] %vm981_vm2, %v6840_v4  ;;  %v6843_v46 = vadd.f32 %v7616_v50, %v10344_v24  ;;  %v6834_v0 = vpop.f32.mrb[67].mxu0 }
 0xb3f   : > { %6898 = vst.msk [vmem:[%s10106_s24 + $0xa0] sm:$0xff] %vm981_vm2, %v6832_v37  ;;  %v6835_v11 = vadd.f32 %v10344_v24, %v6834_v0 }
 0xb40   : > { %6901 = vst.msk [vmem:[%s10106_s24 + $0xb8] sm:$0xff] %vm981_vm2, %v6843_v46 }
 0xb41   : > { %6899 = vst.msk [vmem:[%s10106_s24 + $0xa8] sm:$0xff] %vm981_vm2, %v6835_v11 }
 0xb4b   : > { %v7619_v26 = vpop.f32.mrb[68].mxu0 }
 0xb4c   : > { %v6856_v39 = vadd.f32 %v7619_v26, %v10344_v24  ;;  %v6847_v14 = vpop.f32.mrb[69].mxu0 }
 0xb4d   : > { %v6848_v30 = vadd.f32 %v10344_v24, %v6847_v14  ;;  %v7620_v16 = vpop.f32.mrb[70].mxu0 }
 0xb4e   : > { %6904 = vst.msk [vmem:[%s10106_s24 + $0xd0] sm:$0xff] %vm981_vm2, %v6856_v39  ;;  %v6859_v15 = vadd.f32 %v7620_v16, %v10344_v24  ;;  %v6850_v8 = vpop.f32.mrb[71].mxu0 }
 0xb4f   : > { %6902 = vst.msk [vmem:[%s10106_s24 + $0xc0] sm:$0xff] %vm981_vm2, %v6848_v30  ;;  %v6851_v12 = vadd.f32 %v10344_v24, %v6850_v8 }
 0xb50   : > { %6905 = vst.msk [vmem:[%s10106_s24 + $0xd8] sm:$0xff] %vm981_vm2, %v6859_v15 }
 0xb51   : > { %6903 = vst.msk [vmem:[%s10106_s24 + $0xc8] sm:$0xff] %vm981_vm2, %v6851_v12 }
 0xb5b   : > { %v7623_v62 = vpop.f32.mrb[72].mxu0 }
 0xb5c   : > { %v6872_v18 = vadd.f32 %v7623_v62, %v10344_v24  ;;  %v6863_v61 = vpop.f32.mrb[73].mxu0 }
 0xb5d   : > { %v6864_v33 = vadd.f32 %v10344_v24, %v6863_v61  ;;  %v7624_v36 = vpop.f32.mrb[74].mxu0 }
 0xb5e   : > { %6908 = vst.msk [vmem:[%s10106_s24 + $0xf0] sm:$0xff] %vm981_vm2, %v6872_v18  ;;  %v6875_v19 = vadd.f32 %v7624_v36, %v10344_v24  ;;  %v6866_v22 = vpop.f32.mrb[75].mxu0 }
 0xb5f   : > { %6906 = vst.msk [vmem:[%s10106_s24 + $0xe0] sm:$0xff] %vm981_vm2, %v6864_v33  ;;  %v6867_v32 = vadd.f32 %v10344_v24, %v6866_v22 }
 0xb60   : > { %6909 = vst.msk [vmem:[%s10106_s24 + $0xf8] sm:$0xff] %vm981_vm2, %v6875_v19 }
 0xb61   : > { %6907 = vst.msk [vmem:[%s10106_s24 + $0xe8] sm:$0xff] %vm981_vm2, %v6867_v32 }
 0xb62 PF: > { %s43_s8 = sadd.s32 1, %s8436_s8  }
 0xb63   : > { %p40_p7 = scmp.ge.s32.totalorder %s43_s8, 4  }
 0xb65   :  { %42 = sbr.rel (!%p40_p7) target bundleno = 22 (0x16), region = 187 }
 0xb6c   :  { %6932 = vsyncpa [#allocation4], 1 }
 0xb6d   :  { %6934 = vsyncpa [#allocation4 + $0x1], 1 }
 0xb6e   :  { %6935 = vsyncpa [#allocation6], 1 }
 0xb6f   :  { %6936 = vsyncpa [#allocation9], 1 }
 0xb70   :  { %6937 = vsyncpa [#allocation12], 1 }

</bundles_post_ra>
